<compile_context>
chip_gen: v6e
topology: v6e:2x2x1
jax: 0.10.0
libtpu: 0.0.40
codegen_flags: <defaults>
</compile_context>

<pallas_src>
import functools

import jax
import jax.numpy as jnp
from jax.experimental import pallas as pl
from jax.experimental.pallas import tpu as pltpu


def _round_up(n, m):
    return ((n + m - 1) // m) * m


# ----------------------------------------------------------------------------
# Pallas kernels
# ----------------------------------------------------------------------------
def _conv_s2d_kernel(x_ref, w_ref, b_ref, o_ref, *, ho, wo):
    """Per-image 2x2/stride-1 conv over a space-to-depth(2) input, + bias + ReLU.

    x_ref: (1, ho+1, wo+1, 4*Cin)  bf16  (s2d of the padded 4x4/s2/p1 conv input)
    w_ref: (4, 4*Cin, Cout)        bf16  (tap (di, dj) lives at w_ref[di*2+dj])
    b_ref: (1, Cout)               f32
    o_ref: (1, ho, wo, Cout)       bf16
    """
    c4 = x_ref.shape[-1]
    cout = w_ref.shape[-1]
    acc = jnp.zeros((ho * wo, cout), jnp.float32)
    for di in range(2):
        for dj in range(2):
            xs = x_ref[0, pl.ds(di, ho), pl.ds(dj, wo), :]      # (ho, wo, 4*Cin)
            xs = xs.reshape(ho * wo, c4)
            acc = acc + jnp.dot(xs, w_ref[di * 2 + dj],
                                preferred_element_type=jnp.float32)
    y = jnp.maximum(acc + b_ref[...], 0.0)                       # f32 epilogue
    o_ref[0] = y.reshape(ho, wo, cout).astype(o_ref.dtype)


def _linear_kernel(x_ref, w_ref, b_ref, o_ref, *, activation):
    """One row tile: y = act(x @ w + b); bf16 MXU operands, f32 epilogue."""
    y = jnp.dot(x_ref[...], w_ref[...], preferred_element_type=jnp.float32)
    y = y + b_ref[...]
    if activation == "relu":
        y = jnp.maximum(y, 0.0)
    elif activation == "tanh":
        y = jnp.tanh(y)
    o_ref[...] = y.astype(o_ref.dtype)


def _fc_mlp_kernel(x_ref, w1_ref, b1_ref, w2_ref, b2_ref, w3_ref, b3_ref,
                   w4_ref, b4_ref, o_ref):
    """Fused LatentFC MLP: 3x (Linear + ReLU) -> Linear -> tanh (one row tile)."""
    h = jnp.dot(x_ref[...], w1_ref[...], preferred_element_type=jnp.float32)
    h = jnp.maximum(h + b1_ref[...], 0.0).astype(jnp.bfloat16)
    h = jnp.dot(h, w2_ref[...], preferred_element_type=jnp.float32)
    h = jnp.maximum(h + b2_ref[...], 0.0).astype(jnp.bfloat16)
    h = jnp.dot(h, w3_ref[...], preferred_element_type=jnp.float32)
    h = jnp.maximum(h + b3_ref[...], 0.0).astype(jnp.bfloat16)
    y = jnp.dot(h, w4_ref[...], preferred_element_type=jnp.float32)
    o_ref[...] = jnp.tanh(y + b4_ref[...]).astype(o_ref.dtype)


# ----------------------------------------------------------------------------
# Wrappers around pallas_call
# ----------------------------------------------------------------------------
def conv4x4_s2_relu(x_nhwc, w_packed, b_row):
    """NHWC Conv2d(k=4, s=2, p=1) + ReLU.  Patch assembly happens inside the
    Pallas kernel (no im2col matrix in HBM); pad + space-to-depth is XLA glue."""
    B, H, W, _ = x_nhwc.shape
    ho, wo = H // 2, W // 2
    xp = jnp.pad(x_nhwc, ((0, 0), (1, 1), (1, 1), (0, 0)))
    _, Hp, Wp, C = xp.shape
    xs = xp.reshape(B, Hp // 2, 2, Wp // 2, 2, C)
    xs = xs.transpose(0, 1, 3, 2, 4, 5).reshape(B, Hp // 2, Wp // 2, 4 * C)
    hs, ws, c4 = xs.shape[1:]
    cout = w_packed.shape[-1]

    flops = 2 * B * ho * wo * (4 * c4) * cout
    bytes_accessed = (int(xs.size) + int(w_packed.size)
                      + B * ho * wo * cout) * 2 + int(b_row.size) * 4

    kernel = functools.partial(_conv_s2d_kernel, ho=ho, wo=wo)
    return pl.pallas_call(
        kernel,
        out_shape=jax.ShapeDtypeStruct((B, ho, wo, cout), jnp.bfloat16),
        grid=(B,),
        in_specs=[
            pl.BlockSpec((1, hs, ws, c4), lambda n: (n, 0, 0, 0)),
            pl.BlockSpec((4, c4, cout), lambda n: (0, 0, 0)),
            pl.BlockSpec((1, cout), lambda n: (0, 0)),
        ],
        out_specs=pl.BlockSpec((1, ho, wo, cout), lambda n: (n, 0, 0, 0)),
        compiler_params=pltpu.CompilerParams(
            dimension_semantics=("parallel",)),
        cost_estimate=pl.CostEstimate(flops=flops, transcendentals=0,
                                      bytes_accessed=bytes_accessed),
    )(xs.astype(jnp.bfloat16), w_packed, b_row)


def pallas_linear(x, w, b, activation=None, out_dtype=jnp.float32, block_m=512):
    """x: (M, K), w: (K, N) bf16, b: (N,) -> (M, N).  Row-tiled over M with the
    weight/bias VMEM-resident and the row axis marked 'parallel'."""
    M, K = x.shape
    K2, N = w.shape
    assert K == K2
    tm = min(block_m, _round_up(M, 16))
    mp = _round_up(M, tm)
    xb = x.astype(jnp.bfloat16)
    if mp != M:
        xb = jnp.pad(xb, ((0, mp - M), (0, 0)))
    b_row = jnp.asarray(b, jnp.float32).reshape(1, N)

    flops = 2 * mp * K * N
    bytes_accessed = (mp * K + K * N) * 2 + (mp * N + N) * 4

    kernel = functools.partial(_linear_kernel, activation=activation)
    out = pl.pallas_call(
        kernel,
        out_shape=jax.ShapeDtypeStruct((mp, N), out_dtype),
        grid=(mp // tm,),
        in_specs=[
            pl.BlockSpec((tm, K), lambda i: (i, 0)),
            pl.BlockSpec((K, N), lambda i: (0, 0)),
            pl.BlockSpec((1, N), lambda i: (0, 0)),
        ],
        out_specs=pl.BlockSpec((tm, N), lambda i: (i, 0)),
        compiler_params=pltpu.CompilerParams(
            dimension_semantics=("parallel",)),
        cost_estimate=pl.CostEstimate(flops=flops, transcendentals=0,
                                      bytes_accessed=bytes_accessed),
    )(xb, w.astype(jnp.bfloat16), b_row)
    return out[:M]


def pallas_fc_mlp(x, fc_params, block_m=512):
    """Whole LatentFC head fused into one Pallas kernel, row-tiled over batch
    (weights ~0.4 MiB bf16, VMEM-resident on all generations)."""
    (w1, b1), (w2, b2), (w3, b3), (w4, b4) = fc_params
    M, K = x.shape
    n_out = w4.shape[1]
    tm = min(block_m, _round_up(M, 16))
    mp = _round_up(M, tm)
    xb = x.astype(jnp.bfloat16)
    if mp != M:
        xb = jnp.pad(xb, ((0, mp - M), (0, 0)))

    weights_and_biases = [w1, b1, w2, b2, w3, b3, w4, b4]
    flops = 2 * mp * (K * w1.shape[1] + w1.shape[1] * w2.shape[1]
                      + w2.shape[1] * w3.shape[1] + w3.shape[1] * n_out)
    bytes_accessed = ((mp * K + sum(int(a.size) for a in (w1, w2, w3, w4))) * 2
                      + (mp * n_out + sum(int(a.size) for a in (b1, b2, b3, b4))) * 4)

    resident = lambda i: (0, 0)
    in_specs = ([pl.BlockSpec((tm, K), lambda i: (i, 0))]
                + [pl.BlockSpec(a.shape, resident) for a in weights_and_biases])
    out = pl.pallas_call(
        _fc_mlp_kernel,
        out_shape=jax.ShapeDtypeStruct((mp, n_out), jnp.float32),
        grid=(mp // tm,),
        in_specs=in_specs,
        out_specs=pl.BlockSpec((tm, n_out), lambda i: (i, 0)),
        compiler_params=pltpu.CompilerParams(
            dimension_semantics=("parallel",)),
        cost_estimate=pl.CostEstimate(flops=flops, transcendentals=mp * n_out,
                                      bytes_accessed=bytes_accessed),
    )(xb, *weights_and_biases)
    return out[:M]


# ----------------------------------------------------------------------------
# Deterministic parameter init (PyTorch default U(-1/sqrt(fan_in), 1/sqrt(fan_in)))
# and conversion to Pallas-ready layouts.
# ----------------------------------------------------------------------------
def _init_linear(key, fan_in, fan_out):
    k_w, k_b = jax.random.split(key)
    bound = 1.0 / (fan_in ** 0.5)
    w = jax.random.uniform(k_w, (fan_in, fan_out), jnp.float32, -bound, bound)
    b = jax.random.uniform(k_b, (fan_out,), jnp.float32, -bound, bound)
    return w, b


def _init_conv(key, c_in, c_out, kh, kw):
    k_w, k_b = jax.random.split(key)
    fan_in = c_in * kh * kw
    bound = 1.0 / (fan_in ** 0.5)
    w = jax.random.uniform(k_w, (c_out, c_in, kh, kw), jnp.float32, -bound, bound)
    b = jax.random.uniform(k_b, (c_out,), jnp.float32, -bound, bound)
    return w, b


def init_vae_latent_ctrl(key, input_dim, in_channels, z_dim, extra_dim):
    keys = jax.random.split(key, 9)
    enc_conv = [
        _init_conv(keys[0], in_channels, 32, 4, 4),
        _init_conv(keys[1], 32, 64, 4, 4),
        _init_conv(keys[2], 64, 128, 4, 4),
        _init_conv(keys[3], 128, 256, 4, 4),
    ]
    flat_dim = 256 * (input_dim // 16) ** 2
    mu_fc = _init_linear(keys[4], flat_dim, z_dim)
    fc = [
        _init_linear(keys[5], z_dim + extra_dim, 512),
        _init_linear(keys[6], 512, 256),
        _init_linear(keys[7], 256, 256),
        _init_linear(keys[8], 256, 1),
    ]
    return dict(enc_conv=enc_conv, mu_fc=mu_fc, fc=fc)


def _pack_conv_weight(w):
    """(C_out, C_in, 4, 4) torch conv weight -> (4, 4*C_in, C_out) bf16 packed
    so that w_packed[di*2+dj, (dr*2+dc)*C_in + c, o] == w[o, c, 2*di+dr, 2*dj+dc],
    matching the space-to-depth channel ordering used by the conv kernel."""
    c_out, c_in, kh, kw = w.shape
    assert kh == 4 and kw == 4
    w6 = w.reshape(c_out, c_in, 2, 2, 2, 2)            # (o, c, di, dr, dj, dc)
    w6 = w6.transpose(2, 4, 3, 5, 1, 0)                # (di, dj, dr, dc, c, o)
    return w6.reshape(4, 4 * c_in, c_out).astype(jnp.bfloat16)


def prepare_params(params, input_dim):
    """Torch-layout f32 params -> Pallas GEMM-ready bf16 layouts (one-time)."""
    enc = [(_pack_conv_weight(w), jnp.asarray(b, jnp.float32).reshape(1, -1))
           for (w, b) in params["enc_conv"]]
    w_mu, b_mu = params["mu_fc"]
    f = input_dim // 16
    z = w_mu.shape[1]
    # mu_fc rows are in torch NCHW-flatten order (c, h, w); permute once to the
    # NHWC-flatten order (h, w, c) used by the transpose-free activation path.
    w_mu = (w_mu.reshape(256, f, f, z).transpose(1, 2, 0, 3)
            .reshape(256 * f * f, z).astype(jnp.bfloat16))
    fc = [(w.astype(jnp.bfloat16), jnp.asarray(b, jnp.float32).reshape(1, -1))
          for (w, b) in params["fc"]]
    return dict(enc_conv=enc, mu_fc=(w_mu, jnp.asarray(b_mu, jnp.float32)), fc=fc)


# ----------------------------------------------------------------------------
# VAELatentCtrl.forward
# ----------------------------------------------------------------------------
def vae_latent_ctrl_forward(prepared, x_nchw, z_extra=None):
    # Single NCHW (torch) -> NHWC transpose at the input; NHWC thereafter.
    h = jnp.transpose(x_nchw, (0, 2, 3, 1)).astype(jnp.bfloat16)
    for (w_packed, b_row) in prepared["enc_conv"]:
        h = conv4x4_s2_relu(h, w_packed, b_row)
    B = h.shape[0]
    flat = h.reshape(B, -1)                # NHWC flatten; mu weight pre-permuted
    w_mu, b_mu = prepared["mu_fc"]
    mu = pallas_linear(flat, w_mu, b_mu, activation=None, out_dtype=jnp.bfloat16)
    z = mu
    # LatentFC: concat extra states, fused 4-layer MLP kernel, tanh output.
    if z_extra is not None:
        z = jnp.concatenate([z, z_extra.astype(jnp.bfloat16)], axis=1)
    return pallas_fc_mlp(z, prepared["fc"])


if __name__ == "__main__":
    B, C, H, W = 2, 4, 16, 16
    z_dim, extra_dim = 8, 4

    key = jax.random.PRNGKey(0)
    k_param, k_x, k_extra = jax.random.split(key, 3)

    params = init_vae_latent_ctrl(k_param, input_dim=H, in_channels=C,
                                  z_dim=z_dim, extra_dim=extra_dim)
    prepared = prepare_params(params, input_dim=H)
    x = jax.random.normal(k_x, (B, C, H, W), jnp.float32)
    z_extra = jax.random.normal(k_extra, (B, extra_dim), jnp.float32)

    fwd = jax.jit(vae_latent_ctrl_forward)
    y = jax.block_until_ready(fwd(prepared, x, z_extra))
    assert y.shape == (B, 1), y.shape
    assert bool(jnp.all(jnp.isfinite(y)))
    assert bool(jnp.all(jnp.abs(y) <= 1.0))  # tanh output
    print("KERNEL_OK")
</pallas_src>

<mosaic_0001>
module attributes {stable_mosaic.version = 11 : i64} {
  func.func @_conv_s2d_kernel(%arg0: i32, %arg1: memref<1x9x9x16xbf16, #tpu.memory_space<vmem>>, %arg2: memref<4x16x32xbf16, #tpu.memory_space<vmem>>, %arg3: memref<1x32xf32, #tpu.memory_space<vmem>>, %arg4: memref<1x8x8x32xbf16, #tpu.memory_space<vmem>>) attributes {dimension_semantics = [#tpu.dimension_semantics<parallel>], iteration_bounds = array<i64: 2>, scalar_prefetch = 0 : i64, scratch_operands = 0 : i64, tpu.core_type = #tpu.core_type<tc>, window_params = [{transform_indices = @transform_0, window_bounds = array<i64: 1, 9, 9, 16>}, {pipeline_mode = #tpu.pipeline_mode<synchronous>, transform_indices = @transform_1, window_bounds = array<i64: 4, 16, 32>}, {pipeline_mode = #tpu.pipeline_mode<synchronous>, transform_indices = @transform_2, window_bounds = array<i64: 1, 32>}, {transform_indices = @transform_3, window_bounds = array<i64: 1, 8, 8, 32>}]} {
    %cst = arith.constant 0.000000e+00 : f32
    %0 = vector.broadcast %cst : f32 to vector<64x32xf32>
    %c0 = arith.constant 0 : index
    %c0_0 = arith.constant 0 : index
    %c0_1 = arith.constant 0 : index
    %c0_2 = arith.constant 0 : index
    %1 = vector.load %arg1[%c0, %c0_0, %c0_1, %c0_2] : memref<1x9x9x16xbf16, #tpu.memory_space<vmem>>, vector<1x8x8x16xbf16>
    %2 = vector.shape_cast %1 : vector<1x8x8x16xbf16> to vector<8x8x16xbf16>
    %3 = vector.shape_cast %2 : vector<8x8x16xbf16> to vector<64x16xbf16>
    %c0_3 = arith.constant 0 : index
    %c0_4 = arith.constant 0 : index
    %c0_5 = arith.constant 0 : index
    %4 = vector.load %arg2[%c0_3, %c0_4, %c0_5] : memref<4x16x32xbf16, #tpu.memory_space<vmem>>, vector<1x16x32xbf16>
    %5 = vector.shape_cast %4 : vector<1x16x32xbf16> to vector<16x32xbf16>
    %cst_6 = arith.constant dense<0.000000e+00> : vector<64x32xf32>
    %6 = tpu.matmul %3, %5, %cst_6 {dimension_numbers = #tpu.dot_dimension_numbers<[1], [0], [0], [1], [0, 0, 1, 1], [], []>} : vector<64x16xbf16>, vector<16x32xbf16>, vector<64x32xf32> -> vector<64x32xf32>
    %7 = arith.addf %0, %6 : vector<64x32xf32>
    %c0_7 = arith.constant 0 : index
    %c0_8 = arith.constant 0 : index
    %c1 = arith.constant 1 : index
    %c0_9 = arith.constant 0 : index
    %8 = vector.load %arg1[%c0_7, %c0_8, %c1, %c0_9] : memref<1x9x9x16xbf16, #tpu.memory_space<vmem>>, vector<1x8x8x16xbf16>
    %9 = vector.shape_cast %8 : vector<1x8x8x16xbf16> to vector<8x8x16xbf16>
    %10 = vector.shape_cast %9 : vector<8x8x16xbf16> to vector<64x16xbf16>
    %c1_10 = arith.constant 1 : index
    %c0_11 = arith.constant 0 : index
    %c0_12 = arith.constant 0 : index
    %11 = vector.load %arg2[%c1_10, %c0_11, %c0_12] : memref<4x16x32xbf16, #tpu.memory_space<vmem>>, vector<1x16x32xbf16>
    %12 = vector.shape_cast %11 : vector<1x16x32xbf16> to vector<16x32xbf16>
    %cst_13 = arith.constant dense<0.000000e+00> : vector<64x32xf32>
    %13 = tpu.matmul %10, %12, %cst_13 {dimension_numbers = #tpu.dot_dimension_numbers<[1], [0], [0], [1], [0, 0, 1, 1], [], []>} : vector<64x16xbf16>, vector<16x32xbf16>, vector<64x32xf32> -> vector<64x32xf32>
    %14 = arith.addf %7, %13 : vector<64x32xf32>
    %c0_14 = arith.constant 0 : index
    %c1_15 = arith.constant 1 : index
    %c0_16 = arith.constant 0 : index
    %c0_17 = arith.constant 0 : index
    %15 = vector.load %arg1[%c0_14, %c1_15, %c0_16, %c0_17] : memref<1x9x9x16xbf16, #tpu.memory_space<vmem>>, vector<1x8x8x16xbf16>
    %16 = vector.shape_cast %15 : vector<1x8x8x16xbf16> to vector<8x8x16xbf16>
    %17 = vector.shape_cast %16 : vector<8x8x16xbf16> to vector<64x16xbf16>
    %c2 = arith.constant 2 : index
    %c0_18 = arith.constant 0 : index
    %c0_19 = arith.constant 0 : index
    %18 = vector.load %arg2[%c2, %c0_18, %c0_19] : memref<4x16x32xbf16, #tpu.memory_space<vmem>>, vector<1x16x32xbf16>
    %19 = vector.shape_cast %18 : vector<1x16x32xbf16> to vector<16x32xbf16>
    %cst_20 = arith.constant dense<0.000000e+00> : vector<64x32xf32>
    %20 = tpu.matmul %17, %19, %cst_20 {dimension_numbers = #tpu.dot_dimension_numbers<[1], [0], [0], [1], [0, 0, 1, 1], [], []>} : vector<64x16xbf16>, vector<16x32xbf16>, vector<64x32xf32> -> vector<64x32xf32>
    %21 = arith.addf %14, %20 : vector<64x32xf32>
    %c0_21 = arith.constant 0 : index
    %c1_22 = arith.constant 1 : index
    %c1_23 = arith.constant 1 : index
    %c0_24 = arith.constant 0 : index
    %22 = vector.load %arg1[%c0_21, %c1_22, %c1_23, %c0_24] : memref<1x9x9x16xbf16, #tpu.memory_space<vmem>>, vector<1x8x8x16xbf16>
    %23 = vector.shape_cast %22 : vector<1x8x8x16xbf16> to vector<8x8x16xbf16>
    %24 = vector.shape_cast %23 : vector<8x8x16xbf16> to vector<64x16xbf16>
    %c3 = arith.constant 3 : index
    %c0_25 = arith.constant 0 : index
    %c0_26 = arith.constant 0 : index
    %25 = vector.load %arg2[%c3, %c0_25, %c0_26] : memref<4x16x32xbf16, #tpu.memory_space<vmem>>, vector<1x16x32xbf16>
    %26 = vector.shape_cast %25 : vector<1x16x32xbf16> to vector<16x32xbf16>
    %cst_27 = arith.constant dense<0.000000e+00> : vector<64x32xf32>
    %27 = tpu.matmul %24, %26, %cst_27 {dimension_numbers = #tpu.dot_dimension_numbers<[1], [0], [0], [1], [0, 0, 1, 1], [], []>} : vector<64x16xbf16>, vector<16x32xbf16>, vector<64x32xf32> -> vector<64x32xf32>
    %28 = arith.addf %21, %27 : vector<64x32xf32>
    %c0_28 = arith.constant 0 : index
    %c0_29 = arith.constant 0 : index
    %29 = vector.load %arg3[%c0_28, %c0_29] : memref<1x32xf32, #tpu.memory_space<vmem>>, vector<1x32xf32>
    %30 = vector.broadcast %29 : vector<1x32xf32> to vector<64x32xf32>
    %31 = arith.addf %28, %30 : vector<64x32xf32>
    %cst_30 = arith.constant 0.000000e+00 : f32
    %32 = vector.broadcast %cst_30 : f32 to vector<64x32xf32>
    %33 = arith.maximumf %31, %32 : vector<64x32xf32>
    %34 = vector.shape_cast %33 : vector<64x32xf32> to vector<8x8x32xf32>
    %35 = arith.truncf %34 : vector<8x8x32xf32> to vector<8x8x32xbf16>
    %c0_31 = arith.constant 0 : index
    %c0_32 = arith.constant 0 : index
    %c0_33 = arith.constant 0 : index
    %c0_34 = arith.constant 0 : index
    %36 = vector.load %arg4[%c0_31, %c0_32, %c0_33, %c0_34] : memref<1x8x8x32xbf16, #tpu.memory_space<vmem>>, vector<1x8x8x32xbf16>
    %37 = vector.shape_cast %36 : vector<1x8x8x32xbf16> to vector<8x8x32xbf16>
    %38 = vector.shape_cast %35 : vector<8x8x32xbf16> to vector<1x8x8x32xbf16>
    tpu.vector_store %arg4[%c0_31, %c0_32, %c0_33, %c0_34], %38 {strides = array<i32>} : memref<1x8x8x32xbf16, #tpu.memory_space<vmem>>, vector<1x8x8x32xbf16>,
    return
  }
  func.func @transform_0(%arg0: i32) -> (i32, i32, i32, i32) {
    %c0_i32 = arith.constant 0 : i32
    %c0_i32_0 = arith.constant 0 : i32
    %c0_i32_1 = arith.constant 0 : i32
    %c0_i32_2 = arith.constant 0 : i32
    return %arg0, %c0_i32, %c0_i32_0, %c0_i32_1 : i32, i32, i32, i32
  }
  func.func @transform_1(%arg0: i32) -> (i32, i32, i32) {
    %c0_i32 = arith.constant 0 : i32
    %c0_i32_0 = arith.constant 0 : i32
    %c0_i32_1 = arith.constant 0 : i32
    %c0_i32_2 = arith.constant 0 : i32
    return %c0_i32, %c0_i32_0, %c0_i32_1 : i32, i32, i32
  }
  func.func @transform_2(%arg0: i32) -> (i32, i32) {
    %c0_i32 = arith.constant 0 : i32
    %c0_i32_0 = arith.constant 0 : i32
    %c0_i32_1 = arith.constant 0 : i32
    return %c0_i32, %c0_i32_0 : i32, i32
  }
  func.func @transform_3(%arg0: i32) -> (i32, i32, i32, i32) {
    %c0_i32 = arith.constant 0 : i32
    %c0_i32_0 = arith.constant 0 : i32
    %c0_i32_1 = arith.constant 0 : i32
    %c0_i32_2 = arith.constant 0 : i32
    return %arg0, %c0_i32, %c0_i32_0, %c0_i32_1 : i32, i32, i32, i32
  }
}

module attributes {stable_mosaic.version = 11 : i64} {
  func.func @_conv_s2d_kernel(%arg0: i32, %arg1: memref<1x5x5x128xbf16, #tpu.memory_space<vmem>>, %arg2: memref<4x128x64xbf16, #tpu.memory_space<vmem>>, %arg3: memref<1x64xf32, #tpu.memory_space<vmem>>, %arg4: memref<1x4x4x64xbf16, #tpu.memory_space<vmem>>) attributes {dimension_semantics = [#tpu.dimension_semantics<parallel>], iteration_bounds = array<i64: 2>, scalar_prefetch = 0 : i64, scratch_operands = 0 : i64, tpu.core_type = #tpu.core_type<tc>, window_params = [{transform_indices = @transform_0, window_bounds = array<i64: 1, 5, 5, 128>}, {pipeline_mode = #tpu.pipeline_mode<synchronous>, transform_indices = @transform_1, window_bounds = array<i64: 4, 128, 64>}, {pipeline_mode = #tpu.pipeline_mode<synchronous>, transform_indices = @transform_2, window_bounds = array<i64: 1, 64>}, {transform_indices = @transform_3, window_bounds = array<i64: 1, 4, 4, 64>}]} {
    %cst = arith.constant 0.000000e+00 : f32
    %0 = vector.broadcast %cst : f32 to vector<16x64xf32>
    %c0 = arith.constant 0 : index
    %c0_0 = arith.constant 0 : index
    %c0_1 = arith.constant 0 : index
    %c0_2 = arith.constant 0 : index
    %1 = vector.load %arg1[%c0, %c0_0, %c0_1, %c0_2] : memref<1x5x5x128xbf16, #tpu.memory_space<vmem>>, vector<1x4x4x128xbf16>
    %2 = vector.shape_cast %1 : vector<1x4x4x128xbf16> to vector<4x4x128xbf16>
    %3 = vector.shape_cast %2 : vector<4x4x128xbf16> to vector<16x128xbf16>
    %c0_3 = arith.constant 0 : index
    %c0_4 = arith.constant 0 : index
    %c0_5 = arith.constant 0 : index
    %4 = vector.load %arg2[%c0_3, %c0_4, %c0_5] : memref<4x128x64xbf16, #tpu.memory_space<vmem>>, vector<1x128x64xbf16>
    %5 = vector.shape_cast %4 : vector<1x128x64xbf16> to vector<128x64xbf16>
    %cst_6 = arith.constant dense<0.000000e+00> : vector<16x64xf32>
    %6 = tpu.matmul %3, %5, %cst_6 {dimension_numbers = #tpu.dot_dimension_numbers<[1], [0], [0], [1], [0, 0, 1, 1], [], []>} : vector<16x128xbf16>, vector<128x64xbf16>, vector<16x64xf32> -> vector<16x64xf32>
    %7 = arith.addf %0, %6 : vector<16x64xf32>
    %c0_7 = arith.constant 0 : index
    %c0_8 = arith.constant 0 : index
    %c1 = arith.constant 1 : index
    %c0_9 = arith.constant 0 : index
    %8 = vector.load %arg1[%c0_7, %c0_8, %c1, %c0_9] : memref<1x5x5x128xbf16, #tpu.memory_space<vmem>>, vector<1x4x4x128xbf16>
    %9 = vector.shape_cast %8 : vector<1x4x4x128xbf16> to vector<4x4x128xbf16>
    %10 = vector.shape_cast %9 : vector<4x4x128xbf16> to vector<16x128xbf16>
    %c1_10 = arith.constant 1 : index
    %c0_11 = arith.constant 0 : index
    %c0_12 = arith.constant 0 : index
    %11 = vector.load %arg2[%c1_10, %c0_11, %c0_12] : memref<4x128x64xbf16, #tpu.memory_space<vmem>>, vector<1x128x64xbf16>
    %12 = vector.shape_cast %11 : vector<1x128x64xbf16> to vector<128x64xbf16>
    %cst_13 = arith.constant dense<0.000000e+00> : vector<16x64xf32>
    %13 = tpu.matmul %10, %12, %cst_13 {dimension_numbers = #tpu.dot_dimension_numbers<[1], [0], [0], [1], [0, 0, 1, 1], [], []>} : vector<16x128xbf16>, vector<128x64xbf16>, vector<16x64xf32> -> vector<16x64xf32>
    %14 = arith.addf %7, %13 : vector<16x64xf32>
    %c0_14 = arith.constant 0 : index
    %c1_15 = arith.constant 1 : index
    %c0_16 = arith.constant 0 : index
    %c0_17 = arith.constant 0 : index
    %15 = vector.load %arg1[%c0_14, %c1_15, %c0_16, %c0_17] : memref<1x5x5x128xbf16, #tpu.memory_space<vmem>>, vector<1x4x4x128xbf16>
    %16 = vector.shape_cast %15 : vector<1x4x4x128xbf16> to vector<4x4x128xbf16>
    %17 = vector.shape_cast %16 : vector<4x4x128xbf16> to vector<16x128xbf16>
    %c2 = arith.constant 2 : index
    %c0_18 = arith.constant 0 : index
    %c0_19 = arith.constant 0 : index
    %18 = vector.load %arg2[%c2, %c0_18, %c0_19] : memref<4x128x64xbf16, #tpu.memory_space<vmem>>, vector<1x128x64xbf16>
    %19 = vector.shape_cast %18 : vector<1x128x64xbf16> to vector<128x64xbf16>
    %cst_20 = arith.constant dense<0.000000e+00> : vector<16x64xf32>
    %20 = tpu.matmul %17, %19, %cst_20 {dimension_numbers = #tpu.dot_dimension_numbers<[1], [0], [0], [1], [0, 0, 1, 1], [], []>} : vector<16x128xbf16>, vector<128x64xbf16>, vector<16x64xf32> -> vector<16x64xf32>
    %21 = arith.addf %14, %20 : vector<16x64xf32>
    %c0_21 = arith.constant 0 : index
    %c1_22 = arith.constant 1 : index
    %c1_23 = arith.constant 1 : index
    %c0_24 = arith.constant 0 : index
    %22 = vector.load %arg1[%c0_21, %c1_22, %c1_23, %c0_24] : memref<1x5x5x128xbf16, #tpu.memory_space<vmem>>, vector<1x4x4x128xbf16>
    %23 = vector.shape_cast %22 : vector<1x4x4x128xbf16> to vector<4x4x128xbf16>
    %24 = vector.shape_cast %23 : vector<4x4x128xbf16> to vector<16x128xbf16>
    %c3 = arith.constant 3 : index
    %c0_25 = arith.constant 0 : index
    %c0_26 = arith.constant 0 : index
    %25 = vector.load %arg2[%c3, %c0_25, %c0_26] : memref<4x128x64xbf16, #tpu.memory_space<vmem>>, vector<1x128x64xbf16>
    %26 = vector.shape_cast %25 : vector<1x128x64xbf16> to vector<128x64xbf16>
    %cst_27 = arith.constant dense<0.000000e+00> : vector<16x64xf32>
    %27 = tpu.matmul %24, %26, %cst_27 {dimension_numbers = #tpu.dot_dimension_numbers<[1], [0], [0], [1], [0, 0, 1, 1], [], []>} : vector<16x128xbf16>, vector<128x64xbf16>, vector<16x64xf32> -> vector<16x64xf32>
    %28 = arith.addf %21, %27 : vector<16x64xf32>
    %c0_28 = arith.constant 0 : index
    %c0_29 = arith.constant 0 : index
    %29 = vector.load %arg3[%c0_28, %c0_29] : memref<1x64xf32, #tpu.memory_space<vmem>>, vector<1x64xf32>
    %30 = vector.broadcast %29 : vector<1x64xf32> to vector<16x64xf32>
    %31 = arith.addf %28, %30 : vector<16x64xf32>
    %cst_30 = arith.constant 0.000000e+00 : f32
    %32 = vector.broadcast %cst_30 : f32 to vector<16x64xf32>
    %33 = arith.maximumf %31, %32 : vector<16x64xf32>
    %34 = vector.shape_cast %33 : vector<16x64xf32> to vector<4x4x64xf32>
    %35 = arith.truncf %34 : vector<4x4x64xf32> to vector<4x4x64xbf16>
    %c0_31 = arith.constant 0 : index
    %c0_32 = arith.constant 0 : index
    %c0_33 = arith.constant 0 : index
    %c0_34 = arith.constant 0 : index
    %36 = vector.load %arg4[%c0_31, %c0_32, %c0_33, %c0_34] : memref<1x4x4x64xbf16, #tpu.memory_space<vmem>>, vector<1x4x4x64xbf16>
    %37 = vector.shape_cast %36 : vector<1x4x4x64xbf16> to vector<4x4x64xbf16>
    %38 = vector.shape_cast %35 : vector<4x4x64xbf16> to vector<1x4x4x64xbf16>
    tpu.vector_store %arg4[%c0_31, %c0_32, %c0_33, %c0_34], %38 {strides = array<i32>} : memref<1x4x4x64xbf16, #tpu.memory_space<vmem>>, vector<1x4x4x64xbf16>,
    return
  }
  func.func @transform_0(%arg0: i32) -> (i32, i32, i32, i32) {
    %c0_i32 = arith.constant 0 : i32
    %c0_i32_0 = arith.constant 0 : i32
    %c0_i32_1 = arith.constant 0 : i32
    %c0_i32_2 = arith.constant 0 : i32
    return %arg0, %c0_i32, %c0_i32_0, %c0_i32_1 : i32, i32, i32, i32
  }
  func.func @transform_1(%arg0: i32) -> (i32, i32, i32) {
    %c0_i32 = arith.constant 0 : i32
    %c0_i32_0 = arith.constant 0 : i32
    %c0_i32_1 = arith.constant 0 : i32
    %c0_i32_2 = arith.constant 0 : i32
    return %c0_i32, %c0_i32_0, %c0_i32_1 : i32, i32, i32
  }
  func.func @transform_2(%arg0: i32) -> (i32, i32) {
    %c0_i32 = arith.constant 0 : i32
    %c0_i32_0 = arith.constant 0 : i32
    %c0_i32_1 = arith.constant 0 : i32
    return %c0_i32, %c0_i32_0 : i32, i32
  }
  func.func @transform_3(%arg0: i32) -> (i32, i32, i32, i32) {
    %c0_i32 = arith.constant 0 : i32
    %c0_i32_0 = arith.constant 0 : i32
    %c0_i32_1 = arith.constant 0 : i32
    %c0_i32_2 = arith.constant 0 : i32
    return %arg0, %c0_i32, %c0_i32_0, %c0_i32_1 : i32, i32, i32, i32
  }
}

module attributes {stable_mosaic.version = 11 : i64} {
  func.func @_conv_s2d_kernel(%arg0: i32, %arg1: memref<1x3x3x256xbf16, #tpu.memory_space<vmem>>, %arg2: memref<4x256x128xbf16, #tpu.memory_space<vmem>>, %arg3: memref<1x128xf32, #tpu.memory_space<vmem>>, %arg4: memref<1x2x2x128xbf16, #tpu.memory_space<vmem>>) attributes {dimension_semantics = [#tpu.dimension_semantics<parallel>], iteration_bounds = array<i64: 2>, scalar_prefetch = 0 : i64, scratch_operands = 0 : i64, tpu.core_type = #tpu.core_type<tc>, window_params = [{transform_indices = @transform_0, window_bounds = array<i64: 1, 3, 3, 256>}, {pipeline_mode = #tpu.pipeline_mode<synchronous>, transform_indices = @transform_1, window_bounds = array<i64: 4, 256, 128>}, {pipeline_mode = #tpu.pipeline_mode<synchronous>, transform_indices = @transform_2, window_bounds = array<i64: 1, 128>}, {transform_indices = @transform_3, window_bounds = array<i64: 1, 2, 2, 128>}]} {
    %cst = arith.constant 0.000000e+00 : f32
    %0 = vector.broadcast %cst : f32 to vector<4x128xf32>
    %c0 = arith.constant 0 : index
    %c0_0 = arith.constant 0 : index
    %c0_1 = arith.constant 0 : index
    %c0_2 = arith.constant 0 : index
    %1 = vector.load %arg1[%c0, %c0_0, %c0_1, %c0_2] : memref<1x3x3x256xbf16, #tpu.memory_space<vmem>>, vector<1x2x2x256xbf16>
    %2 = vector.shape_cast %1 : vector<1x2x2x256xbf16> to vector<2x2x256xbf16>
    %3 = vector.shape_cast %2 : vector<2x2x256xbf16> to vector<4x256xbf16>
    %c0_3 = arith.constant 0 : index
    %c0_4 = arith.constant 0 : index
    %c0_5 = arith.constant 0 : index
    %4 = vector.load %arg2[%c0_3, %c0_4, %c0_5] : memref<4x256x128xbf16, #tpu.memory_space<vmem>>, vector<1x256x128xbf16>
    %5 = vector.shape_cast %4 : vector<1x256x128xbf16> to vector<256x128xbf16>
    %cst_6 = arith.constant dense<0.000000e+00> : vector<4x128xf32>
    %6 = tpu.matmul %3, %5, %cst_6 {dimension_numbers = #tpu.dot_dimension_numbers<[1], [0], [0], [1], [0, 0, 1, 1], [], []>} : vector<4x256xbf16>, vector<256x128xbf16>, vector<4x128xf32> -> vector<4x128xf32>
    %7 = arith.addf %0, %6 : vector<4x128xf32>
    %c0_7 = arith.constant 0 : index
    %c0_8 = arith.constant 0 : index
    %c1 = arith.constant 1 : index
    %c0_9 = arith.constant 0 : index
    %8 = vector.load %arg1[%c0_7, %c0_8, %c1, %c0_9] : memref<1x3x3x256xbf16, #tpu.memory_space<vmem>>, vector<1x2x2x256xbf16>
    %9 = vector.shape_cast %8 : vector<1x2x2x256xbf16> to vector<2x2x256xbf16>
    %10 = vector.shape_cast %9 : vector<2x2x256xbf16> to vector<4x256xbf16>
    %c1_10 = arith.constant 1 : index
    %c0_11 = arith.constant 0 : index
    %c0_12 = arith.constant 0 : index
    %11 = vector.load %arg2[%c1_10, %c0_11, %c0_12] : memref<4x256x128xbf16, #tpu.memory_space<vmem>>, vector<1x256x128xbf16>
    %12 = vector.shape_cast %11 : vector<1x256x128xbf16> to vector<256x128xbf16>
    %cst_13 = arith.constant dense<0.000000e+00> : vector<4x128xf32>
    %13 = tpu.matmul %10, %12, %cst_13 {dimension_numbers = #tpu.dot_dimension_numbers<[1], [0], [0], [1], [0, 0, 1, 1], [], []>} : vector<4x256xbf16>, vector<256x128xbf16>, vector<4x128xf32> -> vector<4x128xf32>
    %14 = arith.addf %7, %13 : vector<4x128xf32>
    %c0_14 = arith.constant 0 : index
    %c1_15 = arith.constant 1 : index
    %c0_16 = arith.constant 0 : index
    %c0_17 = arith.constant 0 : index
    %15 = vector.load %arg1[%c0_14, %c1_15, %c0_16, %c0_17] : memref<1x3x3x256xbf16, #tpu.memory_space<vmem>>, vector<1x2x2x256xbf16>
    %16 = vector.shape_cast %15 : vector<1x2x2x256xbf16> to vector<2x2x256xbf16>
    %17 = vector.shape_cast %16 : vector<2x2x256xbf16> to vector<4x256xbf16>
    %c2 = arith.constant 2 : index
    %c0_18 = arith.constant 0 : index
    %c0_19 = arith.constant 0 : index
    %18 = vector.load %arg2[%c2, %c0_18, %c0_19] : memref<4x256x128xbf16, #tpu.memory_space<vmem>>, vector<1x256x128xbf16>
    %19 = vector.shape_cast %18 : vector<1x256x128xbf16> to vector<256x128xbf16>
    %cst_20 = arith.constant dense<0.000000e+00> : vector<4x128xf32>
    %20 = tpu.matmul %17, %19, %cst_20 {dimension_numbers = #tpu.dot_dimension_numbers<[1], [0], [0], [1], [0, 0, 1, 1], [], []>} : vector<4x256xbf16>, vector<256x128xbf16>, vector<4x128xf32> -> vector<4x128xf32>
    %21 = arith.addf %14, %20 : vector<4x128xf32>
    %c0_21 = arith.constant 0 : index
    %c1_22 = arith.constant 1 : index
    %c1_23 = arith.constant 1 : index
    %c0_24 = arith.constant 0 : index
    %22 = vector.load %arg1[%c0_21, %c1_22, %c1_23, %c0_24] : memref<1x3x3x256xbf16, #tpu.memory_space<vmem>>, vector<1x2x2x256xbf16>
    %23 = vector.shape_cast %22 : vector<1x2x2x256xbf16> to vector<2x2x256xbf16>
    %24 = vector.shape_cast %23 : vector<2x2x256xbf16> to vector<4x256xbf16>
    %c3 = arith.constant 3 : index
    %c0_25 = arith.constant 0 : index
    %c0_26 = arith.constant 0 : index
    %25 = vector.load %arg2[%c3, %c0_25, %c0_26] : memref<4x256x128xbf16, #tpu.memory_space<vmem>>, vector<1x256x128xbf16>
    %26 = vector.shape_cast %25 : vector<1x256x128xbf16> to vector<256x128xbf16>
    %cst_27 = arith.constant dense<0.000000e+00> : vector<4x128xf32>
    %27 = tpu.matmul %24, %26, %cst_27 {dimension_numbers = #tpu.dot_dimension_numbers<[1], [0], [0], [1], [0, 0, 1, 1], [], []>} : vector<4x256xbf16>, vector<256x128xbf16>, vector<4x128xf32> -> vector<4x128xf32>
    %28 = arith.addf %21, %27 : vector<4x128xf32>
    %c0_28 = arith.constant 0 : index
    %c0_29 = arith.constant 0 : index
    %29 = vector.load %arg3[%c0_28, %c0_29] : memref<1x128xf32, #tpu.memory_space<vmem>>, vector<1x128xf32>
    %30 = vector.broadcast %29 : vector<1x128xf32> to vector<4x128xf32>
    %31 = arith.addf %28, %30 : vector<4x128xf32>
    %cst_30 = arith.constant 0.000000e+00 : f32
    %32 = vector.broadcast %cst_30 : f32 to vector<4x128xf32>
    %33 = arith.maximumf %31, %32 : vector<4x128xf32>
    %34 = vector.shape_cast %33 : vector<4x128xf32> to vector<2x2x128xf32>
    %35 = arith.truncf %34 : vector<2x2x128xf32> to vector<2x2x128xbf16>
    %c0_31 = arith.constant 0 : index
    %c0_32 = arith.constant 0 : index
    %c0_33 = arith.constant 0 : index
    %c0_34 = arith.constant 0 : index
    %36 = vector.load %arg4[%c0_31, %c0_32, %c0_33, %c0_34] : memref<1x2x2x128xbf16, #tpu.memory_space<vmem>>, vector<1x2x2x128xbf16>
    %37 = vector.shape_cast %36 : vector<1x2x2x128xbf16> to vector<2x2x128xbf16>
    %38 = vector.shape_cast %35 : vector<2x2x128xbf16> to vector<1x2x2x128xbf16>
    tpu.vector_store %arg4[%c0_31, %c0_32, %c0_33, %c0_34], %38 {strides = array<i32>} : memref<1x2x2x128xbf16, #tpu.memory_space<vmem>>, vector<1x2x2x128xbf16>,
    return
  }
  func.func @transform_0(%arg0: i32) -> (i32, i32, i32, i32) {
    %c0_i32 = arith.constant 0 : i32
    %c0_i32_0 = arith.constant 0 : i32
    %c0_i32_1 = arith.constant 0 : i32
    %c0_i32_2 = arith.constant 0 : i32
    return %arg0, %c0_i32, %c0_i32_0, %c0_i32_1 : i32, i32, i32, i32
  }
  func.func @transform_1(%arg0: i32) -> (i32, i32, i32) {
    %c0_i32 = arith.constant 0 : i32
    %c0_i32_0 = arith.constant 0 : i32
    %c0_i32_1 = arith.constant 0 : i32
    %c0_i32_2 = arith.constant 0 : i32
    return %c0_i32, %c0_i32_0, %c0_i32_1 : i32, i32, i32
  }
  func.func @transform_2(%arg0: i32) -> (i32, i32) {
    %c0_i32 = arith.constant 0 : i32
    %c0_i32_0 = arith.constant 0 : i32
    %c0_i32_1 = arith.constant 0 : i32
    return %c0_i32, %c0_i32_0 : i32, i32
  }
  func.func @transform_3(%arg0: i32) -> (i32, i32, i32, i32) {
    %c0_i32 = arith.constant 0 : i32
    %c0_i32_0 = arith.constant 0 : i32
    %c0_i32_1 = arith.constant 0 : i32
    %c0_i32_2 = arith.constant 0 : i32
    return %arg0, %c0_i32, %c0_i32_0, %c0_i32_1 : i32, i32, i32, i32
  }
}

module attributes {stable_mosaic.version = 11 : i64} {
  func.func @_conv_s2d_kernel(%arg0: i32, %arg1: memref<1x2x2x512xbf16, #tpu.memory_space<vmem>>, %arg2: memref<4x512x256xbf16, #tpu.memory_space<vmem>>, %arg3: memref<1x256xf32, #tpu.memory_space<vmem>>, %arg4: memref<1x1x1x256xbf16, #tpu.memory_space<vmem>>) attributes {dimension_semantics = [#tpu.dimension_semantics<parallel>], iteration_bounds = array<i64: 2>, scalar_prefetch = 0 : i64, scratch_operands = 0 : i64, tpu.core_type = #tpu.core_type<tc>, window_params = [{transform_indices = @transform_0, window_bounds = array<i64: 1, 2, 2, 512>}, {pipeline_mode = #tpu.pipeline_mode<synchronous>, transform_indices = @transform_1, window_bounds = array<i64: 4, 512, 256>}, {pipeline_mode = #tpu.pipeline_mode<synchronous>, transform_indices = @transform_2, window_bounds = array<i64: 1, 256>}, {transform_indices = @transform_3, window_bounds = array<i64: 1, 1, 1, 256>}]} {
    %cst = arith.constant 0.000000e+00 : f32
    %0 = vector.broadcast %cst : f32 to vector<1x256xf32>
    %c0 = arith.constant 0 : index
    %c0_0 = arith.constant 0 : index
    %c0_1 = arith.constant 0 : index
    %c0_2 = arith.constant 0 : index
    %1 = vector.load %arg1[%c0, %c0_0, %c0_1, %c0_2] : memref<1x2x2x512xbf16, #tpu.memory_space<vmem>>, vector<1x1x1x512xbf16>
    %2 = vector.shape_cast %1 : vector<1x1x1x512xbf16> to vector<1x1x512xbf16>
    %3 = vector.shape_cast %2 : vector<1x1x512xbf16> to vector<1x512xbf16>
    %c0_3 = arith.constant 0 : index
    %c0_4 = arith.constant 0 : index
    %c0_5 = arith.constant 0 : index
    %4 = vector.load %arg2[%c0_3, %c0_4, %c0_5] : memref<4x512x256xbf16, #tpu.memory_space<vmem>>, vector<1x512x256xbf16>
    %5 = vector.shape_cast %4 : vector<1x512x256xbf16> to vector<512x256xbf16>
    %cst_6 = arith.constant dense<0.000000e+00> : vector<1x256xf32>
    %6 = tpu.matmul %3, %5, %cst_6 {dimension_numbers = #tpu.dot_dimension_numbers<[1], [0], [0], [1], [0, 0, 1, 1], [], []>} : vector<1x512xbf16>, vector<512x256xbf16>, vector<1x256xf32> -> vector<1x256xf32>
    %7 = arith.addf %0, %6 : vector<1x256xf32>
    %c0_7 = arith.constant 0 : index
    %c0_8 = arith.constant 0 : index
    %c1 = arith.constant 1 : index
    %c0_9 = arith.constant 0 : index
    %8 = vector.load %arg1[%c0_7, %c0_8, %c1, %c0_9] : memref<1x2x2x512xbf16, #tpu.memory_space<vmem>>, vector<1x1x1x512xbf16>
    %9 = vector.shape_cast %8 : vector<1x1x1x512xbf16> to vector<1x1x512xbf16>
    %10 = vector.shape_cast %9 : vector<1x1x512xbf16> to vector<1x512xbf16>
    %c1_10 = arith.constant 1 : index
    %c0_11 = arith.constant 0 : index
    %c0_12 = arith.constant 0 : index
    %11 = vector.load %arg2[%c1_10, %c0_11, %c0_12] : memref<4x512x256xbf16, #tpu.memory_space<vmem>>, vector<1x512x256xbf16>
    %12 = vector.shape_cast %11 : vector<1x512x256xbf16> to vector<512x256xbf16>
    %cst_13 = arith.constant dense<0.000000e+00> : vector<1x256xf32>
    %13 = tpu.matmul %10, %12, %cst_13 {dimension_numbers = #tpu.dot_dimension_numbers<[1], [0], [0], [1], [0, 0, 1, 1], [], []>} : vector<1x512xbf16>, vector<512x256xbf16>, vector<1x256xf32> -> vector<1x256xf32>
    %14 = arith.addf %7, %13 : vector<1x256xf32>
    %c0_14 = arith.constant 0 : index
    %c1_15 = arith.constant 1 : index
    %c0_16 = arith.constant 0 : index
    %c0_17 = arith.constant 0 : index
    %15 = vector.load %arg1[%c0_14, %c1_15, %c0_16, %c0_17] : memref<1x2x2x512xbf16, #tpu.memory_space<vmem>>, vector<1x1x1x512xbf16>
    %16 = vector.shape_cast %15 : vector<1x1x1x512xbf16> to vector<1x1x512xbf16>
    %17 = vector.shape_cast %16 : vector<1x1x512xbf16> to vector<1x512xbf16>
    %c2 = arith.constant 2 : index
    %c0_18 = arith.constant 0 : index
    %c0_19 = arith.constant 0 : index
    %18 = vector.load %arg2[%c2, %c0_18, %c0_19] : memref<4x512x256xbf16, #tpu.memory_space<vmem>>, vector<1x512x256xbf16>
    %19 = vector.shape_cast %18 : vector<1x512x256xbf16> to vector<512x256xbf16>
    %cst_20 = arith.constant dense<0.000000e+00> : vector<1x256xf32>
    %20 = tpu.matmul %17, %19, %cst_20 {dimension_numbers = #tpu.dot_dimension_numbers<[1], [0], [0], [1], [0, 0, 1, 1], [], []>} : vector<1x512xbf16>, vector<512x256xbf16>, vector<1x256xf32> -> vector<1x256xf32>
    %21 = arith.addf %14, %20 : vector<1x256xf32>
    %c0_21 = arith.constant 0 : index
    %c1_22 = arith.constant 1 : index
    %c1_23 = arith.constant 1 : index
    %c0_24 = arith.constant 0 : index
    %22 = vector.load %arg1[%c0_21, %c1_22, %c1_23, %c0_24] : memref<1x2x2x512xbf16, #tpu.memory_space<vmem>>, vector<1x1x1x512xbf16>
    %23 = vector.shape_cast %22 : vector<1x1x1x512xbf16> to vector<1x1x512xbf16>
    %24 = vector.shape_cast %23 : vector<1x1x512xbf16> to vector<1x512xbf16>
    %c3 = arith.constant 3 : index
    %c0_25 = arith.constant 0 : index
    %c0_26 = arith.constant 0 : index
    %25 = vector.load %arg2[%c3, %c0_25, %c0_26] : memref<4x512x256xbf16, #tpu.memory_space<vmem>>, vector<1x512x256xbf16>
    %26 = vector.shape_cast %25 : vector<1x512x256xbf16> to vector<512x256xbf16>
    %cst_27 = arith.constant dense<0.000000e+00> : vector<1x256xf32>
    %27 = tpu.matmul %24, %26, %cst_27 {dimension_numbers = #tpu.dot_dimension_numbers<[1], [0], [0], [1], [0, 0, 1, 1], [], []>} : vector<1x512xbf16>, vector<512x256xbf16>, vector<1x256xf32> -> vector<1x256xf32>
    %28 = arith.addf %21, %27 : vector<1x256xf32>
    %c0_28 = arith.constant 0 : index
    %c0_29 = arith.constant 0 : index
    %29 = vector.load %arg3[%c0_28, %c0_29] : memref<1x256xf32, #tpu.memory_space<vmem>>, vector<1x256xf32>
    %30 = arith.addf %28, %29 : vector<1x256xf32>
    %cst_30 = arith.constant 0.000000e+00 : f32
    %31 = vector.broadcast %cst_30 : f32 to vector<1x256xf32>
    %32 = arith.maximumf %30, %31 : vector<1x256xf32>
    %33 = vector.shape_cast %32 : vector<1x256xf32> to vector<1x1x256xf32>
    %34 = arith.truncf %33 : vector<1x1x256xf32> to vector<1x1x256xbf16>
    %c0_31 = arith.constant 0 : index
    %c0_32 = arith.constant 0 : index
    %c0_33 = arith.constant 0 : index
    %c0_34 = arith.constant 0 : index
    %35 = vector.load %arg4[%c0_31, %c0_32, %c0_33, %c0_34] : memref<1x1x1x256xbf16, #tpu.memory_space<vmem>>, vector<1x1x1x256xbf16>
    %36 = vector.shape_cast %35 : vector<1x1x1x256xbf16> to vector<1x1x256xbf16>
    %37 = vector.shape_cast %34 : vector<1x1x256xbf16> to vector<1x1x1x256xbf16>
    tpu.vector_store %arg4[%c0_31, %c0_32, %c0_33, %c0_34], %37 {strides = array<i32>} : memref<1x1x1x256xbf16, #tpu.memory_space<vmem>>, vector<1x1x1x256xbf16>,
    return
  }
  func.func @transform_0(%arg0: i32) -> (i32, i32, i32, i32) {
    %c0_i32 = arith.constant 0 : i32
    %c0_i32_0 = arith.constant 0 : i32
    %c0_i32_1 = arith.constant 0 : i32
    %c0_i32_2 = arith.constant 0 : i32
    return %arg0, %c0_i32, %c0_i32_0, %c0_i32_1 : i32, i32, i32, i32
  }
  func.func @transform_1(%arg0: i32) -> (i32, i32, i32) {
    %c0_i32 = arith.constant 0 : i32
    %c0_i32_0 = arith.constant 0 : i32
    %c0_i32_1 = arith.constant 0 : i32
    %c0_i32_2 = arith.constant 0 : i32
    return %c0_i32, %c0_i32_0, %c0_i32_1 : i32, i32, i32
  }
  func.func @transform_2(%arg0: i32) -> (i32, i32) {
    %c0_i32 = arith.constant 0 : i32
    %c0_i32_0 = arith.constant 0 : i32
    %c0_i32_1 = arith.constant 0 : i32
    return %c0_i32, %c0_i32_0 : i32, i32
  }
  func.func @transform_3(%arg0: i32) -> (i32, i32, i32, i32) {
    %c0_i32 = arith.constant 0 : i32
    %c0_i32_0 = arith.constant 0 : i32
    %c0_i32_1 = arith.constant 0 : i32
    %c0_i32_2 = arith.constant 0 : i32
    return %arg0, %c0_i32, %c0_i32_0, %c0_i32_1 : i32, i32, i32, i32
  }
}

module attributes {stable_mosaic.version = 11 : i64} {
  func.func @_linear_kernel(%arg0: i32, %arg1: memref<16x256xbf16, #tpu.memory_space<vmem>>, %arg2: memref<256x8xbf16, #tpu.memory_space<vmem>>, %arg3: memref<1x8xf32, #tpu.memory_space<vmem>>, %arg4: memref<16x8xbf16, #tpu.memory_space<vmem>>) attributes {dimension_semantics = [#tpu.dimension_semantics<parallel>], iteration_bounds = array<i64: 1>, scalar_prefetch = 0 : i64, scratch_operands = 0 : i64, tpu.core_type = #tpu.core_type<tc>, window_params = [{transform_indices = @transform_0, window_bounds = array<i64: 16, 256>}, {pipeline_mode = #tpu.pipeline_mode<synchronous>, transform_indices = @transform_1, window_bounds = array<i64: 256, 8>}, {pipeline_mode = #tpu.pipeline_mode<synchronous>, transform_indices = @transform_2, window_bounds = array<i64: 1, 8>}, {transform_indices = @transform_3, window_bounds = array<i64: 16, 8>}]} {
    %c0 = arith.constant 0 : index
    %c0_0 = arith.constant 0 : index
    %0 = vector.load %arg1[%c0, %c0_0] : memref<16x256xbf16, #tpu.memory_space<vmem>>, vector<16x256xbf16>
    %c0_1 = arith.constant 0 : index
    %c0_2 = arith.constant 0 : index
    %1 = vector.load %arg2[%c0_1, %c0_2] : memref<256x8xbf16, #tpu.memory_space<vmem>>, vector<256x8xbf16>
    %cst = arith.constant dense<0.000000e+00> : vector<16x8xf32>
    %2 = tpu.matmul %0, %1, %cst {dimension_numbers = #tpu.dot_dimension_numbers<[1], [0], [0], [1], [0, 0, 1, 1], [], []>} : vector<16x256xbf16>, vector<256x8xbf16>, vector<16x8xf32> -> vector<16x8xf32>
    %c0_3 = arith.constant 0 : index
    %c0_4 = arith.constant 0 : index
    %3 = vector.load %arg3[%c0_3, %c0_4] : memref<1x8xf32, #tpu.memory_space<vmem>>, vector<1x8xf32>
    %4 = vector.broadcast %3 : vector<1x8xf32> to vector<16x8xf32>
    %5 = arith.addf %2, %4 : vector<16x8xf32>
    %6 = arith.truncf %5 : vector<16x8xf32> to vector<16x8xbf16>
    %c0_5 = arith.constant 0 : index
    %c0_6 = arith.constant 0 : index
    %7 = vector.load %arg4[%c0_5, %c0_6] : memref<16x8xbf16, #tpu.memory_space<vmem>>, vector<16x8xbf16>
    tpu.vector_store %arg4[%c0_5, %c0_6], %6 {strides = array<i32>} : memref<16x8xbf16, #tpu.memory_space<vmem>>, vector<16x8xbf16>,
    return
  }
  func.func @transform_0(%arg0: i32) -> (i32, i32) {
    %c0_i32 = arith.constant 0 : i32
    %c0_i32_0 = arith.constant 0 : i32
    return %arg0, %c0_i32 : i32, i32
  }
  func.func @transform_1(%arg0: i32) -> (i32, i32) {
    %c0_i32 = arith.constant 0 : i32
    %c0_i32_0 = arith.constant 0 : i32
    %c0_i32_1 = arith.constant 0 : i32
    return %c0_i32, %c0_i32_0 : i32, i32
  }
  func.func @transform_2(%arg0: i32) -> (i32, i32) {
    %c0_i32 = arith.constant 0 : i32
    %c0_i32_0 = arith.constant 0 : i32
    %c0_i32_1 = arith.constant 0 : i32
    return %c0_i32, %c0_i32_0 : i32, i32
  }
  func.func @transform_3(%arg0: i32) -> (i32, i32) {
    %c0_i32 = arith.constant 0 : i32
    %c0_i32_0 = arith.constant 0 : i32
    return %arg0, %c0_i32 : i32, i32
  }
}

module attributes {stable_mosaic.version = 11 : i64} {
  func.func @_fc_mlp_kernel(%arg0: i32, %arg1: memref<16x12xbf16, #tpu.memory_space<vmem>>, %arg2: memref<12x512xbf16, #tpu.memory_space<vmem>>, %arg3: memref<1x512xf32, #tpu.memory_space<vmem>>, %arg4: memref<512x256xbf16, #tpu.memory_space<vmem>>, %arg5: memref<1x256xf32, #tpu.memory_space<vmem>>, %arg6: memref<256x256xbf16, #tpu.memory_space<vmem>>, %arg7: memref<1x256xf32, #tpu.memory_space<vmem>>, %arg8: memref<256x1xbf16, #tpu.memory_space<vmem>>, %arg9: memref<1x1xf32, #tpu.memory_space<vmem>>, %arg10: memref<16x1xf32, #tpu.memory_space<vmem>>) attributes {dimension_semantics = [#tpu.dimension_semantics<parallel>], iteration_bounds = array<i64: 1>, scalar_prefetch = 0 : i64, scratch_operands = 0 : i64, tpu.core_type = #tpu.core_type<tc>, window_params = [{transform_indices = @transform_0, window_bounds = array<i64: 16, 12>}, {pipeline_mode = #tpu.pipeline_mode<synchronous>, transform_indices = @transform_1, window_bounds = array<i64: 12, 512>}, {pipeline_mode = #tpu.pipeline_mode<synchronous>, transform_indices = @transform_2, window_bounds = array<i64: 1, 512>}, {pipeline_mode = #tpu.pipeline_mode<synchronous>, transform_indices = @transform_3, window_bounds = array<i64: 512, 256>}, {pipeline_mode = #tpu.pipeline_mode<synchronous>, transform_indices = @transform_4, window_bounds = array<i64: 1, 256>}, {pipeline_mode = #tpu.pipeline_mode<synchronous>, transform_indices = @transform_5, window_bounds = array<i64: 256, 256>}, {pipeline_mode = #tpu.pipeline_mode<synchronous>, transform_indices = @transform_6, window_bounds = array<i64: 1, 256>}, {pipeline_mode = #tpu.pipeline_mode<synchronous>, transform_indices = @transform_7, window_bounds = array<i64: 256, 1>}, {pipeline_mode = #tpu.pipeline_mode<synchronous>, transform_indices = @transform_8, window_bounds = array<i64: 1, 1>}, {transform_indices = @transform_9, window_bounds = array<i64: 16, 1>}]} {
    %c0 = arith.constant 0 : index
    %c0_0 = arith.constant 0 : index
    %0 = vector.load %arg1[%c0, %c0_0] : memref<16x12xbf16, #tpu.memory_space<vmem>>, vector<16x12xbf16>
    %c0_1 = arith.constant 0 : index
    %c0_2 = arith.constant 0 : index
    %1 = vector.load %arg2[%c0_1, %c0_2] : memref<12x512xbf16, #tpu.memory_space<vmem>>, vector<12x512xbf16>
    %cst = arith.constant dense<0.000000e+00> : vector<16x512xf32>
    %2 = tpu.matmul %0, %1, %cst {dimension_numbers = #tpu.dot_dimension_numbers<[1], [0], [0], [1], [0, 0, 1, 1], [], []>} : vector<16x12xbf16>, vector<12x512xbf16>, vector<16x512xf32> -> vector<16x512xf32>
    %c0_3 = arith.constant 0 : index
    %c0_4 = arith.constant 0 : index
    %3 = vector.load %arg3[%c0_3, %c0_4] : memref<1x512xf32, #tpu.memory_space<vmem>>, vector<1x512xf32>
    %4 = vector.broadcast %3 : vector<1x512xf32> to vector<16x512xf32>
    %5 = arith.addf %2, %4 : vector<16x512xf32>
    %cst_5 = arith.constant 0.000000e+00 : f32
    %6 = vector.broadcast %cst_5 : f32 to vector<16x512xf32>
    %7 = arith.maximumf %5, %6 : vector<16x512xf32>
    %8 = arith.truncf %7 : vector<16x512xf32> to vector<16x512xbf16>
    %c0_6 = arith.constant 0 : index
    %c0_7 = arith.constant 0 : index
    %9 = vector.load %arg4[%c0_6, %c0_7] : memref<512x256xbf16, #tpu.memory_space<vmem>>, vector<512x256xbf16>
    %cst_8 = arith.constant dense<0.000000e+00> : vector<16x256xf32>
    %10 = tpu.matmul %8, %9, %cst_8 {dimension_numbers = #tpu.dot_dimension_numbers<[1], [0], [0], [1], [0, 0, 1, 1], [], []>} : vector<16x512xbf16>, vector<512x256xbf16>, vector<16x256xf32> -> vector<16x256xf32>
    %c0_9 = arith.constant 0 : index
    %c0_10 = arith.constant 0 : index
    %11 = vector.load %arg5[%c0_9, %c0_10] : memref<1x256xf32, #tpu.memory_space<vmem>>, vector<1x256xf32>
    %12 = vector.broadcast %11 : vector<1x256xf32> to vector<16x256xf32>
    %13 = arith.addf %10, %12 : vector<16x256xf32>
    %cst_11 = arith.constant 0.000000e+00 : f32
    %14 = vector.broadcast %cst_11 : f32 to vector<16x256xf32>
    %15 = arith.maximumf %13, %14 : vector<16x256xf32>
    %16 = arith.truncf %15 : vector<16x256xf32> to vector<16x256xbf16>
    %c0_12 = arith.constant 0 : index
    %c0_13 = arith.constant 0 : index
    %17 = vector.load %arg6[%c0_12, %c0_13] : memref<256x256xbf16, #tpu.memory_space<vmem>>, vector<256x256xbf16>
    %cst_14 = arith.constant dense<0.000000e+00> : vector<16x256xf32>
    %18 = tpu.matmul %16, %17, %cst_14 {dimension_numbers = #tpu.dot_dimension_numbers<[1], [0], [0], [1], [0, 0, 1, 1], [], []>} : vector<16x256xbf16>, vector<256x256xbf16>, vector<16x256xf32> -> vector<16x256xf32>
    %c0_15 = arith.constant 0 : index
    %c0_16 = arith.constant 0 : index
    %19 = vector.load %arg7[%c0_15, %c0_16] : memref<1x256xf32, #tpu.memory_space<vmem>>, vector<1x256xf32>
    %20 = vector.broadcast %19 : vector<1x256xf32> to vector<16x256xf32>
    %21 = arith.addf %18, %20 : vector<16x256xf32>
    %cst_17 = arith.constant 0.000000e+00 : f32
    %22 = vector.broadcast %cst_17 : f32 to vector<16x256xf32>
    %23 = arith.maximumf %21, %22 : vector<16x256xf32>
    %24 = arith.truncf %23 : vector<16x256xf32> to vector<16x256xbf16>
    %c0_18 = arith.constant 0 : index
    %c0_19 = arith.constant 0 : index
    %25 = vector.load %arg8[%c0_18, %c0_19] : memref<256x1xbf16, #tpu.memory_space<vmem>>, vector<256x1xbf16>
    %cst_20 = arith.constant dense<0.000000e+00> : vector<16x1xf32>
    %26 = tpu.matmul %24, %25, %cst_20 {dimension_numbers = #tpu.dot_dimension_numbers<[1], [0], [0], [1], [0, 0, 1, 1], [], []>} : vector<16x256xbf16>, vector<256x1xbf16>, vector<16x1xf32> -> vector<16x1xf32>
    %c0_21 = arith.constant 0 : index
    %c0_22 = arith.constant 0 : index
    %27 = vector.load %arg9[%c0_21, %c0_22] : memref<1x1xf32, #tpu.memory_space<vmem>>, vector<1x1xf32>
    %28 = vector.broadcast %27 : vector<1x1xf32> to vector<16x1xf32>
    %29 = arith.addf %26, %28 : vector<16x1xf32>
    %30 = math.tanh %29 : vector<16x1xf32>
    %c0_23 = arith.constant 0 : index
    %c0_24 = arith.constant 0 : index
    %31 = vector.load %arg10[%c0_23, %c0_24] : memref<16x1xf32, #tpu.memory_space<vmem>>, vector<16x1xf32>
    tpu.vector_store %arg10[%c0_23, %c0_24], %30 {strides = array<i32>} : memref<16x1xf32, #tpu.memory_space<vmem>>, vector<16x1xf32>,
    return
  }
  func.func @transform_0(%arg0: i32) -> (i32, i32) {
    %c0_i32 = arith.constant 0 : i32
    %c0_i32_0 = arith.constant 0 : i32
    return %arg0, %c0_i32 : i32, i32
  }
  func.func @transform_1(%arg0: i32) -> (i32, i32) {
    %c0_i32 = arith.constant 0 : i32
    %c0_i32_0 = arith.constant 0 : i32
    %c0_i32_1 = arith.constant 0 : i32
    return %c0_i32, %c0_i32_0 : i32, i32
  }
  func.func @transform_2(%arg0: i32) -> (i32, i32) {
    %c0_i32 = arith.constant 0 : i32
    %c0_i32_0 = arith.constant 0 : i32
    %c0_i32_1 = arith.constant 0 : i32
    return %c0_i32, %c0_i32_0 : i32, i32
  }
  func.func @transform_3(%arg0: i32) -> (i32, i32) {
    %c0_i32 = arith.constant 0 : i32
    %c0_i32_0 = arith.constant 0 : i32
    %c0_i32_1 = arith.constant 0 : i32
    return %c0_i32, %c0_i32_0 : i32, i32
  }
  func.func @transform_4(%arg0: i32) -> (i32, i32) {
    %c0_i32 = arith.constant 0 : i32
    %c0_i32_0 = arith.constant 0 : i32
    %c0_i32_1 = arith.constant 0 : i32
    return %c0_i32, %c0_i32_0 : i32, i32
  }
  func.func @transform_5(%arg0: i32) -> (i32, i32) {
    %c0_i32 = arith.constant 0 : i32
    %c0_i32_0 = arith.constant 0 : i32
    %c0_i32_1 = arith.constant 0 : i32
    return %c0_i32, %c0_i32_0 : i32, i32
  }
  func.func @transform_6(%arg0: i32) -> (i32, i32) {
    %c0_i32 = arith.constant 0 : i32
    %c0_i32_0 = arith.constant 0 : i32
    %c0_i32_1 = arith.constant 0 : i32
    return %c0_i32, %c0_i32_0 : i32, i32
  }
  func.func @transform_7(%arg0: i32) -> (i32, i32) {
    %c0_i32 = arith.constant 0 : i32
    %c0_i32_0 = arith.constant 0 : i32
    %c0_i32_1 = arith.constant 0 : i32
    return %c0_i32, %c0_i32_0 : i32, i32
  }
  func.func @transform_8(%arg0: i32) -> (i32, i32) {
    %c0_i32 = arith.constant 0 : i32
    %c0_i32_0 = arith.constant 0 : i32
    %c0_i32_1 = arith.constant 0 : i32
    return %c0_i32, %c0_i32_0 : i32, i32
  }
  func.func @transform_9(%arg0: i32) -> (i32, i32) {
    %c0_i32 = arith.constant 0 : i32
    %c0_i32_0 = arith.constant 0 : i32
    return %arg0, %c0_i32 : i32, i32
  }
}

</mosaic_0001>

<bundles_post_ra>
// kernel: vae_latent_ctrl_forward.6
= control target key start
LH: loop header
LB: loop body
LE: loop exit
PB: predicated region body
PF: predicated region fallthrough
CT: control target
= control target key end

     0   :  { %s1146_s12 = smov 0   ;;  %s1296_s0 = inlined_call_operand.vmem [shape: bf16[2,9,9,16], index: 0, kind: input, shape index: {}]   ;;  %s1297_s1 = inlined_call_operand.vmem [shape: bf16[4,16,32], index: 1, kind: input, shape index: {}]   ;;  %s1298_s2 = inlined_call_operand.vmem [shape: f32[1,32], index: 2, kind: input, shape index: {}]   ;;  %s1299_s3 = inlined_call_operand.vmem [shape: bf16[2,8,8,32], index: 3, kind: output, shape index: {}]  }
   0x1 LB: > { %s959_s13 = sadd.s32 4294967295, %s1124_s12   ;;  %p963_p0 = scmp.ge.s32.totalorder %s1124_s12, 1  ;;  %s1124_s12 = sphi %s1146_s12, %s13_s12  }
   0x2   : > { %p137_p1 = scmp.lt.s32.totalorder %s1124_s12, 3 }
   0x4   : > { %p138_p2 = pnand %p963_p0, %p137_p1 }
   0x5   : > { %p161_p3 = scmp.lt.s32.totalorder (!%p138_p2), %s959_s13, 1 }
   0x6   : > { %141 = sbr.rel (%p138_p2) target bundleno = 269 (0x10d), region = 32 }
   0xb   : > { %v1106_v0 = vld [vmem:[%s1297_s1] sm:$0xff]   ;;  %v1107_v1 = vld [vmem:[%s1297_s1 + $0x8] sm:$0xff]   ;;  %s1303_s13 = smov (!%p161_p3, %s959_s13), 1  ;;  %v1165_v2 = vld [vmem:[%s1297_s1 + $0x10] sm:$0xff]   ;;  %vm326_vm0 = vcmask 130048   ;;  %vm895_vm4 = vcmask 257024  }
   0xc   : > { %1067 = vmatprep.subr.bf16.mxu1 %v1106_v0  ;;  %1057 = vmatprep.subr.bf16.mxu0 %v1107_v1  ;;  %s1097_s20 = smul.u32 72, %s1303_s13  ;;  %v1111_v3 = vld [vmem:[%s1297_s1 + $0x18] sm:$0xff]   ;;  %vm190_vm1 = vsmask.f32 3328  ;;  %vm191_vm2 = vsmask.f32 7440 }
   0xd   : > { %1068 = vmatpush3.bf16.msra.mxu1 %v1106_v0  ;;  %1058 = vmatpush3.bf16.msra.mxu0 %v1107_v1  ;;  %vm1188_vm3 = vmor %vm190_vm1, %vm191_vm2  ;;  %s1036_s28 = sshll.u32 %s1303_s13, 5 }
   0xe   : > { %1077 = vmatprep.subr.bf16.mxu0 %v1165_v2  ;;  %s1175_s25 = scalar_lea.vmem %s1296_s0, %s1097_s20  ;;  %1087 = vmatprep.subr.bf16.mxu1 %v1111_v3  ;;  %s1275_s4 = scalar_lea.vmem %s1299_s3, %s1036_s28 }
   0xf   : > { %v172_v4 = vld [vmem:[%s1175_s25] sm:$0xf]  ;;  %v173_v5 = vld [vmem:[%s1175_s25 + $0x8] sm:$0xf]  ;;  %v174_v6 = vld [vmem:[%s1175_s25 + $0x10] sm:$0xf] }
  0x10   : > { %v194_v7 = vshrl.u32 %v172_v4, 16  ;;  %v197_v8 = vshll.u32 %v172_v4, 16  ;;  %v208_v9 = vshrl.u32 %v173_v5, 16  ;;  %v211_v10 = vshll.u32 %v173_v5, 16  ;;  %v175_v11 = vld [vmem:[%s1175_s25 + $0x18] sm:$0xf] }
  0x11   : > { %v978_v12 = vcombine.low %v172_v4, %v173_v5  ;;  %v222_v13 = vshrl.u32 %v174_v6, 16  ;;  %v225_v14 = vshll.u32 %v174_v6, 16  ;;  %v236_v15 = vshrl.u32 %v175_v11, 16  ;;  %v182_v16 = vld [vmem:[%s1175_s25 + $0x4] sm:$0x1] }
  0x12   : > { %v196_v17 = vrot.slane %v194_v7, 4  ;;  %v199_v18 = vrot.slane %v197_v8, 5  ;;  %v210_v19 = vrot.slane %v208_v9, 4  ;;  %v213_v20 = vrot.slane %v211_v10, 5  ;;  %v183_v21 = vld [vmem:[%s1175_s25 + $0xc] sm:$0x1] }
  0x13   : > { %1069 = vmatprep.mubr.msk.bf16.mxu1 %vm326_vm0, %v978_v12  ;;  %v224_v22 = vrot.slane %v222_v13, 4  ;;  %v227_v23 = vrot.slane %v225_v14, 5  ;;  %v238_v24 = vrot.slane %v236_v15, 4  ;;  %v239_v25 = vshll.u32 %v175_v11, 16  ;;  %v184_v26 = vld [vmem:[%s1175_s25 + $0x14] sm:$0x1] }
  0x14   : > { %v979_v27 = vcombine.low %v174_v6, %v175_v11  ;;  %v200_v28 = vor.u32 %v199_v18, %v196_v17  ;;  %v203_v29 = vshll.u32 %v182_v16, 16  ;;  %v214_v30 = vor.u32 %v213_v20, %v210_v19  ;;  %v185_v31 = vld [vmem:[%s1175_s25 + $0x1c] sm:$0x1]  ;;  %v176_v37 = vld [vmem:[%s1175_s25 + $0x20] sm:$0xf] }
  0x15   : > { %v241_v32 = vrot.slane %v239_v25, 5  ;;  %v217_v34 = vshll.u32 %v183_v21, 16  ;;  %v228_v35 = vor.u32 %v227_v23, %v224_v22  ;;  %v231_v36 = vshll.u32 %v184_v26, 16  ;;  %v177_v42 = vld [vmem:[%s1175_s25 + $0x28] sm:$0xf] }
  0x16   : > { %1070 = vmatmul.mubr.msk.bf16.vlgmr.msra.gmra.mxu1 %vm326_vm0, %v979_v27  ;;  %v201_v38 = vrot.slane %v200_v28, 4  ;;  %v205_v39 = vrot.slane %v203_v29, 5  ;;  %v215_v40 = vrot.slane %v214_v30, 4  ;;  %v245_v41 = vshll.u32 %v185_v31, 16  ;;  %v178_v51 = vld [vmem:[%s1175_s25 + $0x30] sm:$0xf] }
  0x17   : > { %v219_v43 = vrot.slane %v217_v34, 5  ;;  %v229_v44 = vrot.slane %v228_v35, 4  ;;  %v233_v45 = vrot.slane %v231_v36, 5  ;;  %v242_v46 = vor.u32 %v241_v32, %v238_v24  ;;  %1088 = vmatpush3.bf16.msra.mxu1 %v1111_v3  ;;  %v179_v56 = vld [vmem:[%s1175_s25 + $0x38] sm:$0xf] }
  0x18   : > { %v206_v47 = vsel %vm1188_vm3, %v201_v38, %v205_v39  ;;  %v247_v48 = vrot.slane %v245_v41, 5  ;;  %v250_v49 = vshrl.u32 %v176_v37, 16  ;;  %v253_v50 = vshll.u32 %v176_v37, 16  ;;  %v186_v1 = vld [vmem:[%s1175_s25 + $0x24] sm:$0x1] }
  0x19   : > { %v220_v52 = vsel %vm1188_vm3, %v215_v40, %v219_v43  ;;  %v234_v53 = vsel %vm1188_vm3, %v229_v44, %v233_v45  ;;  %v243_v54 = vrot.slane %v242_v46, 4  ;;  %v264_v55 = vshrl.u32 %v177_v42, 16  ;;  %v187_v3 = vld [vmem:[%s1175_s25 + $0x2c] sm:$0x1]  ;;  %v188_v8 = vld [vmem:[%s1175_s25 + $0x34] sm:$0x1] }
  0x1a   : > { %v969_v57 = vcombine.low %v206_v47, %v220_v52  ;;  %v252_v58 = vrot.slane %v250_v49, 4  ;;  %v255_v59 = vrot.slane %v253_v50, 5  ;;  %v267_v60 = vshll.u32 %v177_v42, 16  ;;  %v189_v13 = vld [vmem:[%s1175_s25 + $0x3c] sm:$0x1] }
  0x1b   : > { %v248_v61 = vsel %vm1188_vm3, %v243_v54, %v247_v48  ;;  %v266_v62 = vrot.slane %v264_v55, 4  ;;  %v980_v63 = vcombine.low %v176_v37, %v177_v42  ;;  %v278_v0 = vshrl.u32 %v178_v51, 16  ;;  %v1006_v14 = vld [vmem:[%s1175_s25 + $0x8] sm:$0xf]  ;;  %v1007_v19 = vld [vmem:[%s1175_s25 + $0xc] sm:$0x1] }
  0x1c   : > { %1059 = vmatprep.mubr.msk.bf16.mxu0 %vm326_vm0, %v969_v57  ;;  %v970_v4 = vcombine.low %v234_v53, %v248_v61  ;;  %v269_v5 = vrot.slane %v267_v60, 5  ;;  %v281_v6 = vshll.u32 %v178_v51, 16  ;;  %v292_v7 = vshrl.u32 %v179_v56, 16  ;;  %v1008_v24 = vld [vmem:[%s1175_s25 + $0x10] sm:$0xf] }
  0x1d   : > { %1073 = vmatprep.mubr.msk.bf16.mxu1 %vm326_vm0, %v980_v63  ;;  %v280_v9 = vrot.slane %v278_v0, 4  ;;  %v295_v10 = vshll.u32 %v179_v56, 16  ;;  %v981_v11 = vcombine.low %v178_v51, %v179_v56  ;;  %v256_v12 = vor.u32 %v255_v59, %v252_v58  ;;  %v1009_v29 = vld [vmem:[%s1175_s25 + $0x14] sm:$0x1]  ;;  %v1011_v39 = vld [vmem:[%s1175_s25 + $0x1c] sm:$0x1] }
  0x1e   : > { %1060 = vmatmul.mubr.msk.bf16.vlgmr.msra.gmra.mxu0 %vm326_vm0, %v970_v4  ;;  %v283_v15 = vrot.slane %v281_v6, 5  ;;  %v294_v16 = vrot.slane %v292_v7, 4  ;;  %v259_v17 = vshll.u32 %v186_v1, 16  ;;  %v270_v18 = vor.u32 %v269_v5, %v266_v62  ;;  %v1012_v44 = vld [vmem:[%s1175_s25 + $0x20] sm:$0xf] }
  0x1f   : > { %1078 = vmatpush3.bf16.msra.mxu0 %v1165_v2  ;;  %v297_v20 = vrot.slane %v295_v10, 5  ;;  %1074 = vmatmul.mubr.msk.bf16.gmra.mxu1 %vm326_vm0, %v981_v11  ;;  %v257_v21 = vrot.slane %v256_v12, 4  ;;  %v273_v22 = vshll.u32 %v187_v3, 16  ;;  %v287_v23 = vshll.u32 %v188_v8, 16  ;;  %v1010_v2 = vld [vmem:[%s1175_s25 + $0x18] sm:$0xf] }
  0x20   : > { %v261_v25 = vrot.slane %v259_v17, 5  ;;  %v271_v26 = vrot.slane %v270_v18, 4  ;;  %v284_v27 = vor.u32 %v283_v15, %v280_v9  ;;  %v301_v28 = vshll.u32 %v189_v13, 16  ;;  %v1114_v53 = vld [vmem:[%s1175_s25 + $0x8] ss:$8 sps:$4 sm:$0xff]  }
  0x21   : > { %v275_v30 = vrot.slane %v273_v22, 5  ;;  %v289_v31 = vrot.slane %v287_v23, 5  ;;  %v298_v32 = vor.u32 %v297_v20, %v294_v16  ;;  %v647_v34 = vshrl.u32 %v1006_v14, 16  ;;  %v1013_v57 = vld [vmem:[%s1175_s25 + $0x24] sm:$0x1] }
  0x22   : > { %v262_v35 = vsel %vm1188_vm3, %v257_v21, %v261_v25  ;;  %v285_v36 = vrot.slane %v284_v27, 4  ;;  %v303_v37 = vrot.slane %v301_v28, 5  ;;  %v650_v38 = vshll.u32 %v1006_v14, 16  ;;  %v1014_v63 = vld [vmem:[%s1175_s25 + $0x28] sm:$0xf] }
  0x23   : > { %v276_v40 = vsel %vm1188_vm3, %v271_v26, %v275_v30  ;;  %v299_v41 = vrot.slane %v298_v32, 4  ;;  %v649_v42 = vrot.slane %v647_v34, 4  ;;  %v656_v43 = vshll.u32 %v1007_v19, 16  ;;  %v1015_v5 = vld [vmem:[%s1175_s25 + $0x2c] sm:$0x1] }
  0x24   : > { %v971_v45 = vcombine.low %v262_v35, %v276_v40  ;;  %v290_v46 = vsel %vm1188_vm3, %v285_v36, %v289_v31  ;;  %v652_v47 = vrot.slane %v650_v38, 5  ;;  %v661_v48 = vshrl.u32 %v1008_v24, 16  ;;  %v1016_v10 = vld [vmem:[%s1175_s25 + $0x30] sm:$0xf]  ;;  %v1115_v14 = vld [vmem:[%s1175_s25 + $0x18] ss:$8 sps:$4 sm:$0xff]  }
  0x25   : > { %v304_v49 = vsel %vm1188_vm3, %v299_v41, %v303_v37  ;;  %v658_v50 = vrot.slane %v656_v43, 5  ;;  %v664_v51 = vshll.u32 %v1008_v24, 16  ;;  %v670_v52 = vshll.u32 %v1009_v29, 16  ;;  %v1017_v15 = vld [vmem:[%s1175_s25 + $0x34] sm:$0x1] }
  0x26   : > { %1063 = vmatprep.mubr.msk.bf16.mxu0 %vm326_vm0, %v971_v45  ;;  %v972_v54 = vcombine.low %v290_v46, %v304_v49  ;;  %v653_v55 = vor.u32 %v652_v47, %v649_v42  ;;  %v663_v56 = vrot.slane %v661_v48, 4  ;;  %v675_v58 = vshrl.u32 %v1010_v2, 16  ;;  %v1018_v21 = vld [vmem:[%s1175_s25 + $0x38] sm:$0xf]  ;;  %v1019_v26 = vld [vmem:[%s1175_s25 + $0x3c] sm:$0x1] }
  0x27   : > { %v666_v59 = vrot.slane %v664_v51, 5  ;;  %v672_v60 = vrot.slane %v670_v52, 5  ;;  %v678_v61 = vshll.u32 %v1010_v2, 16  ;;  %v684_v62 = vshll.u32 %v1011_v39, 16  ;;  %v1020_v31 = vld [vmem:[%s1175_s25 + $0x40] sm:$0xf] }
  0x28   : > { %1064 = vmatmul.mubr.msk.bf16.gmra.mxu0 %vm326_vm0, %v972_v54  ;;  %v654_v0 = vrot.slane %v653_v55, 4  ;;  %v677_v1 = vrot.slane %v675_v58, 4  ;;  %v689_v3 = vshrl.u32 %v1012_v44, 16  ;;  %v692_v4 = vshll.u32 %v1012_v44, 16  ;;  %v1021_v36 = vld [vmem:[%s1175_s25 + $0x44] sm:$0x1] }
  0x29   : > { %v667_v6 = vor.u32 %v666_v59, %v663_v56  ;;  %v680_v7 = vrot.slane %v678_v61, 5  ;;  %v686_v8 = vrot.slane %v684_v62, 5  ;;  %v698_v9 = vshll.u32 %v1013_v57, 16  ;;  %1079 = vmatprep.mubr.msk.bf16.mxu0 %vm326_vm0, %v1114_v53  ;;  %v1116_v41 = vld [vmem:[%s1175_s25 + $0x28] ss:$8 sps:$4 sm:$0xff]  }
  0x2a   : > { %v659_v11 = vsel %vm1188_vm3, %v654_v0, %v658_v50  ;;  %v691_v12 = vrot.slane %v689_v3, 4  ;;  %v694_v13 = vrot.slane %v692_v4, 5  ;;  %v703_v16 = vshrl.u32 %v1014_v63, 16  ;;  %v1117_v59 = vld [vmem:[%s1175_s25 + $0x38] ss:$8 sps:$4 sm:$0xff]  }
  0x2b   : > { %v668_v17 = vrot.slane %v667_v6, 4  ;;  %v681_v18 = vor.u32 %v680_v7, %v677_v1  ;;  %v700_v19 = vrot.slane %v698_v9, 5  ;;  %v706_v20 = vshll.u32 %v1014_v63, 16 }
  0x2c   : > { %v695_v22 = vor.u32 %v694_v13, %v691_v12  ;;  %v705_v23 = vrot.slane %v703_v16, 4  ;;  %v712_v24 = vshll.u32 %v1015_v5, 16  ;;  %v717_v25 = vshrl.u32 %v1016_v10, 16 }
  0x2d   : > { %v673_v27 = vsel %vm1188_vm3, %v668_v17, %v672_v60  ;;  %v682_v28 = vrot.slane %v681_v18, 4  ;;  %v708_v29 = vrot.slane %v706_v20, 5  ;;  %v720_v30 = vshll.u32 %v1016_v10, 16 }
  0x2e   : > { %v1024_v32 = vcombine.low %v659_v11, %v673_v27  ;;  %v696_v34 = vrot.slane %v695_v22, 4  ;;  %v714_v2 = vrot.slane %v712_v24, 5  ;;  %v719_v35 = vrot.slane %v717_v25, 4 }
  0x2f   : > { %v687_v37 = vsel %vm1188_vm3, %v682_v28, %v686_v8  ;;  %v709_v38 = vor.u32 %v708_v29, %v705_v23  ;;  %v722_v39 = vrot.slane %v720_v30, 5  ;;  %v726_v40 = vshll.u32 %v1017_v15, 16  ;;  %v1033_v30 = vld [vmem:[%s1298_s2] ss:$0 sm:$0xff] }
  0x30   : > { %1089 = vmatprep.mubr.msk.bf16.mxu1 %vm326_vm0, %v1024_v32  ;;  %v701_v42 = vsel %vm1188_vm3, %v696_v34, %v700_v19  ;;  %1080 = vmatmul.mubr.msk.bf16.vlgmr.msra.gmra.mxu0 %vm326_vm0, %v1115_v14  ;;  %v731_v43 = vshrl.u32 %v1018_v21, 16  ;;  %v734_v44 = vshll.u32 %v1018_v21, 16  ;;  %v740_v45 = vshll.u32 %v1019_v26, 16 }
  0x31   : > { %v1025_v46 = vcombine.low %v687_v37, %v701_v42  ;;  %v710_v47 = vrot.slane %v709_v38, 4  ;;  %v723_v48 = vor.u32 %v722_v39, %v719_v35  ;;  %v728_v49 = vrot.slane %v726_v40, 5  ;;  %1083 = vmatprep.mubr.msk.bf16.mxu0 %vm326_vm0, %v1116_v41 }
  0x32   : > { %v733_v50 = vrot.slane %v731_v43, 4  ;;  %v736_v51 = vrot.slane %v734_v44, 5  ;;  %v745_v52 = vshrl.u32 %v1020_v31, 16  ;;  %v748_v55 = vshll.u32 %v1020_v31, 16 }
  0x33   : > { %1090 = vmatmul.mubr.msk.bf16.vlgmr.msra.gmra.mxu1 %vm326_vm0, %v1025_v46  ;;  %v715_v53 = vsel %vm1188_vm3, %v710_v47, %v714_v2  ;;  %v724_v54 = vrot.slane %v723_v48, 4  ;;  %v754_v56 = vshll.u32 %v1021_v36, 16  ;;  %v742_v61 = vrot.slane %v740_v45, 5 }
  0x34   : > { %v737_v57 = vor.u32 %v736_v51, %v733_v50  ;;  %v747_v58 = vrot.slane %v745_v52, 4  ;;  %v750_v62 = vrot.slane %v748_v55, 5 }
  0x35   : > { %v729_v60 = vsel %vm1188_vm3, %v724_v54, %v728_v49  ;;  %v756_v3 = vrot.slane %v754_v56, 5 }
  0x36   : > { %v1026_v63 = vcombine.low %v715_v53, %v729_v60  ;;  %v738_v0 = vrot.slane %v737_v57, 4  ;;  %v751_v1 = vor.u32 %v750_v62, %v747_v58 }
  0x38   : > { %1093 = vmatprep.mubr.msk.bf16.mxu1 %vm326_vm0, %v1026_v63  ;;  %1084 = vmatmul.mubr.msk.bf16.gmra.mxu0 %vm326_vm0, %v1117_v59  ;;  %v743_v4 = vsel %vm1188_vm3, %v738_v0, %v742_v61  ;;  %v752_v5 = vrot.slane %v751_v1, 4 }
  0x3a   : > { %v757_v6 = vsel %vm1188_vm3, %v752_v5, %v756_v3 }
  0x3b   : > { %v1027_v7 = vcombine.low %v743_v4, %v757_v6 }
  0x3d   : > { %1094 = vmatmul.mubr.msk.bf16.gmra.mxu1 %vm326_vm0, %v1027_v7 }
  0xd6   : > { %v1071_v8 = vpop.f32.mrf.mxu1 }
  0xd8   : > { %v476_v9 = vpop.f32.mrf.mxu1 }
  0xda   : > { %v1072_v10 = vpop.f32.mrf.mxu1 }
  0xdc   : > { %v479_v12 = vpop.f32.mrf.mxu1 }
  0xde   : > { %v1061_v11 = vpop.f32.mrf.mxu0 }
  0xdf   : > { %v1075_v15 = vpop.f32.mrf.mxu1  ;;  %v485_v33 = vadd.f32 %v1071_v8, %v1061_v11 }
  0xe0   : > { %v373_v13 = vpop.f32.mrf.mxu0 }
  0xe1   : > { %v492_v17 = vpop.f32.mrf.mxu1  ;;  %v477_v25 = vadd.f32 %v476_v9, %v373_v13 }
  0xe2   : > { %v1062_v14 = vpop.f32.mrf.mxu0 }
  0xe3   : > { %v1076_v20 = vpop.f32.mrf.mxu1  ;;  %v488_v28 = vadd.f32 %v1072_v10, %v1062_v14 }
  0xe4   : > { %v376_v16 = vpop.f32.mrf.mxu0 }
  0xe5   : > { %v495_v23 = vpop.f32.mrf.mxu1  ;;  %v480_v2 = vadd.f32 %v479_v12, %v376_v16 }
  0xe8   : > { %v1065_v18 = vpop.f32.mrf.mxu0 }
  0xe9   : > { %v501_v46 = vadd.f32 %v1075_v15, %v1065_v18 }
  0xea   : > { %v389_v19 = vpop.f32.mrf.mxu0 }
  0xeb   : > { %v493_v53 = vadd.f32 %v492_v17, %v389_v19 }
  0xec   : > { %v1066_v21 = vpop.f32.mrf.mxu0 }
  0xed   : > { %v504_v59 = vadd.f32 %v1076_v20, %v1066_v21 }
  0xee   : > { %v392_v22 = vpop.f32.mrf.mxu0 }
  0xef   : > { %v496_v1 = vadd.f32 %v495_v23, %v392_v22 }
  0xf0   : > { %v1081_v24 = vpop.f32.mrf.mxu0 }
  0xf1   : > { %v624_v26 = vadd.f32 %v1081_v24, %v485_v33 }
  0xf2   : > { %v591_v27 = vpop.f32.mrf.mxu0 }
  0xf3   : > { %v1091_v29 = vpop.f32.mrf.mxu1  ;;  %v622_v31 = vadd.f32 %v591_v27, %v477_v25 }
  0xf4   : > { %v858_v32 = vadd.f32 %v1091_v29, %v624_v26  ;;  %v1082_v34 = vpop.f32.mrf.mxu0 }
  0xf5   : > { %v825_v35 = vpop.f32.mrf.mxu1  ;;  %v625_v36 = vadd.f32 %v1082_v34, %v488_v28 }
  0xf6   : > { %v873_v37 = vadd.f32 %v1033_v30, %v858_v32  ;;  %v856_v38 = vadd.f32 %v825_v35, %v622_v31  ;;  %v594_v39 = vpop.f32.mrf.mxu0 }
  0xf7   : > { %v1092_v40 = vpop.f32.mrf.mxu1  ;;  %v623_v41 = vadd.f32 %v594_v39, %v480_v2 }
  0xf8   : > { %v881_v42 = vmax.f32 %v873_v37, 0.0  ;;  %v871_v43 = vadd.f32 %v1033_v30, %v856_v38  ;;  %v859_v44 = vadd.f32 %v1092_v40, %v625_v36  ;;  %v1085_v45 = vpop.f32.mrf.mxu0 }
  0xf9   : > { %v828_v47 = vpop.f32.mrf.mxu1  ;;  %v628_v54 = vadd.f32 %v1085_v45, %v501_v46 }
  0xfa   : > { %v889_v48 = vpack.c.bf16 %v881_v42, %v881_v42  ;;  %v879_v49 = vmax.f32 %v871_v43, 0.0  ;;  %v874_v50 = vadd.f32 %v1033_v30, %v859_v44  ;;  %v857_v51 = vadd.f32 %v828_v47, %v623_v41  ;;  %v607_v52 = vpop.f32.mrf.mxu0 }
  0xfb   : > { %v626_v60 = vadd.f32 %v607_v52, %v493_v53 }
  0xfc   : > { %898 = vst.msk [vmem:[%s1275_s4 + $0x8] sm:$0xf] %vm895_vm4, %v889_v48  ;;  %v887_v55 = vpack.c.bf16 %v879_v49, %v879_v49  ;;  %v882_v56 = vmax.f32 %v874_v50, 0.0  ;;  %v872_v57 = vadd.f32 %v1033_v30, %v857_v51  ;;  %v1086_v58 = vpop.f32.mrf.mxu0 }
  0xfd   : > { %v1095_v62 = vpop.f32.mrf.mxu1  ;;  %v629_v4 = vadd.f32 %v1086_v58, %v504_v59 }
  0xfe   : > { %896 = vst.msk [vmem:[%s1275_s4] sm:$0xf] %vm895_vm4, %v887_v55  ;;  %v890_v61 = vpack.c.bf16 %v882_v56, %v882_v56  ;;  %v880_v63 = vmax.f32 %v872_v57, 0.0  ;;  %v610_v0 = vpop.f32.mrf.mxu0  ;;  %v862_v3 = vadd.f32 %v1095_v62, %v628_v54 }
  0xff   : > { %v841_v6 = vpop.f32.mrf.mxu1  ;;  %v627_v9 = vadd.f32 %v610_v0, %v496_v1 }
 0x100   : > { %899 = vst.msk [vmem:[%s1275_s4 + $0xc] sm:$0xf] %vm895_vm4, %v890_v61  ;;  %v888_v5 = vpack.c.bf16 %v880_v63, %v880_v63  ;;  %v877_v7 = vadd.f32 %v1033_v30, %v862_v3  ;;  %v860_v8 = vadd.f32 %v841_v6, %v626_v60 }
 0x101   : > { %v1096_v10 = vpop.f32.mrf.mxu1 }
 0x102   : > { %897 = vst.msk [vmem:[%s1275_s4 + $0x4] sm:$0xf] %vm895_vm4, %v888_v5  ;;  %v885_v11 = vmax.f32 %v877_v7, 0.0  ;;  %v875_v12 = vadd.f32 %v1033_v30, %v860_v8  ;;  %v863_v13 = vadd.f32 %v1096_v10, %v629_v4 }
 0x103   : > { %v844_v14 = vpop.f32.mrf.mxu1 }
 0x104   : > { %v893_v15 = vpack.c.bf16 %v885_v11, %v885_v11  ;;  %v883_v16 = vmax.f32 %v875_v12, 0.0  ;;  %v878_v17 = vadd.f32 %v1033_v30, %v863_v13  ;;  %v861_v18 = vadd.f32 %v844_v14, %v627_v9 }
 0x106   : > { %902 = vst.msk [vmem:[%s1275_s4 + $0x18] sm:$0xf] %vm895_vm4, %v893_v15  ;;  %v891_v19 = vpack.c.bf16 %v883_v16, %v883_v16  ;;  %v886_v20 = vmax.f32 %v878_v17, 0.0  ;;  %v876_v21 = vadd.f32 %v1033_v30, %v861_v18 }
 0x108   : > { %900 = vst.msk [vmem:[%s1275_s4 + $0x10] sm:$0xf] %vm895_vm4, %v891_v19  ;;  %v894_v22 = vpack.c.bf16 %v886_v20, %v886_v20  ;;  %v884_v33 = vmax.f32 %v876_v21, 0.0 }
 0x10a   : > { %903 = vst.msk [vmem:[%s1275_s4 + $0x1c] sm:$0xf] %vm895_vm4, %v894_v22  ;;  %v892_v23 = vpack.c.bf16 %v884_v33, %v884_v33 }
 0x10c   : > { %901 = vst.msk [vmem:[%s1275_s4 + $0x14] sm:$0xf] %vm895_vm4, %v892_v23 }
 0x10d PF: > { %s13_s12 = sadd.s32 1, %s1124_s12  }
 0x10e   : > { %p10_p4 = scmp.ge.s32.totalorder %s13_s12, 4  }
 0x110   :  { %12 = sbr.rel (!%p10_p4) target bundleno = 1 (0x1), region = 66 }

// kernel: vae_latent_ctrl_forward.7
= control target key start
LH: loop header
LB: loop body
LE: loop exit
PB: predicated region body
PF: predicated region fallthrough
CT: control target
= control target key end

     0   :  { %s1275_s12 = smov 0   ;;  %s1492_s0 = inlined_call_operand.vmem [shape: bf16[2,5,5,128], index: 0, kind: input, shape index: {}]   ;;  %s1493_s1 = inlined_call_operand.vmem [shape: bf16[4,128,64], index: 1, kind: input, shape index: {}]   ;;  %s1494_s2 = inlined_call_operand.vmem [shape: f32[1,64], index: 2, kind: input, shape index: {}]   ;;  %s1495_s3 = inlined_call_operand.vmem [shape: bf16[2,4,4,64], index: 3, kind: output, shape index: {}]  }
   0x1 LB: > { %s968_s13 = sadd.s32 4294967295, %s1250_s12   ;;  %p972_p0 = scmp.ge.s32.totalorder %s1250_s12, 1  ;;  %s1250_s12 = sphi %s1275_s12, %s13_s12  }
   0x2   : > { %p137_p1 = scmp.lt.s32.totalorder %s1250_s12, 3 }
   0x4   : > { %p138_p2 = pnand %p972_p0, %p137_p1 }
   0x5   : > { %p161_p3 = scmp.lt.s32.totalorder (!%p138_p2), %s968_s13, 1 }
   0x6   : > { %141 = sbr.rel (%p138_p2) target bundleno = 286 (0x11e), region = 32 }
   0xb   : > { %v1204_v0 = vld [vmem:[%s1493_s1 + $0x78] sm:$0xff]   ;;  %v1252_v1 = vmov 0.0   ;;  %v1206_v3 = vld [vmem:[%s1493_s1 + $0x70] sm:$0xff]   ;;  %vm1253_vm0 = vmmov 0   ;;  %s1503_s13 = smov (!%p161_p3, %s968_s13), 1  ;;  %v1208_v5 = vld [vmem:[%s1493_s1 + $0x68] sm:$0xff]   ;;  %v317_v21 = vlaneseq }
   0xc   : > { %1112 = vmatprep.subr.bf16.mxu0 %v1252_v1  ;;  %1132 = vmatprep.subr.bf16.mxu1 %v1252_v1  ;;  %v1205_v2 = vld [vmem:[%s1493_s1 + $0x38] sm:$0xff]   ;;  %v1207_v4 = vld [vmem:[%s1493_s1 + $0x30] sm:$0xff]   ;;  %v1209_v6 = vld [vmem:[%s1493_s1 + $0x28] sm:$0xff]   ;;  %s1192_s26 = smul.u32 20, %s1503_s13  ;;  %vm232_vm1 = vsmask.f32 1280 }
   0xd   : > { %1113 = vmatpush3.bf16.msra.mxu0 %v1204_v0  ;;  %1128 = vmatprep.mubr.msk.bf16.mxu0 %vm1253_vm0, %v1252_v1  ;;  %v1210_v7 = vld [vmem:[%s1493_s1 + $0x60] sm:$0xff]   ;;  %v1212_v9 = vld [vmem:[%s1493_s1 + $0x58] sm:$0xff]   ;;  %v1214_v11 = vld [vmem:[%s1493_s1 + $0x50] sm:$0xff]   ;;  %vm233_vm2 = vsmask.f32 3336  ;;  %v318_v53 = vshrl.u32 %v317_v21, 7 }
   0xe   : > { %1133 = vmatpush3.bf16.msra.mxu1 %v1205_v2  ;;  %1114 = vmatprep.subr.bf16.mxu0 %v1252_v1  ;;  %v1211_v8 = vld [vmem:[%s1493_s1 + $0x20] sm:$0xff]   ;;  %s1325_s6 = scalar_lea.vmem %s1492_s0, %s1192_s26  ;;  %v1213_v10 = vld [vmem:[%s1493_s1 + $0x18] sm:$0xff]   ;;  %v1215_v13 = vld [vmem:[%s1493_s1 + $0x10] sm:$0xff]   ;;  %vm235_vm3 = vsmask.f32 5392  ;;  %s1075_s8 = sshll.u32 %s1503_s13, 3 }
   0xf   : > { %1134 = vmatprep.subr.bf16.mxu1 %v1252_v1  ;;  %1148 = vmatprep.mubr.msk.bf16.mxu1 %vm1253_vm0, %v1252_v1  ;;  %v976_v12 = vld.sshfl [vmem:[%s1325_s6] sm:$0x13 pattern:$0x76325410]  ;;  %vm1346_vm4 = vmor %vm232_vm1, %vm233_vm2  ;;  %vm237_vm5 = vsmask.f32 7448  ;;  %s170_s11 = scalar_lea.vmem %s1495_s3, %s1075_s8 }
  0x10   : > { %v977_v14 = vld.sshfl [vmem:[%s1325_s6 + $0x4] sm:$0x13 pattern:$0x76325410]  ;;  %v207_v15 = vcombine.high %v976_v12, %v976_v12  ;;  %v1216_v22 = vld [vmem:[%s1493_s1 + $0x48] sm:$0xff]   ;;  %v240_v24 = vshrl.u32 %v976_v12, 16  ;;  %vm1360_vm6 = vmor %vm1346_vm4, %vm235_vm3 }
  0x11   : > { %1115 = vmatpush3.bf16.msra.mxu0 %v1206_v3  ;;  %v978_v16 = vld.sshfl [vmem:[%s1325_s6 + $0x8] sm:$0x13 pattern:$0x76325410]  ;;  %v215_v17 = vcombine.high %v977_v14, %v977_v14  ;;  %v243_v25 = vshll.u32 %v976_v12, 16  ;;  %v254_v28 = vshrl.u32 %v977_v14, 16  ;;  %vm1369_vm7 = vmor %vm1360_vm6, %vm237_vm5 }
  0x12   : > { %1135 = vmatpush3.bf16.msra.mxu1 %v1207_v4  ;;  %1116 = vmatprep.subr.bf16.mxu0 %v1252_v1  ;;  %v979_v18 = vld.sshfl [vmem:[%s1325_s6 + $0xc] sm:$0x13 pattern:$0x76325410]  ;;  %v223_v19 = vcombine.high %v978_v16, %v978_v16  ;;  %v249_v26 = vshll.u32 %v207_v15, 16  ;;  %v257_v29 = vshll.u32 %v977_v14, 16 }
  0x13   : > { %1136 = vmatprep.subr.bf16.mxu1 %v1252_v1  ;;  %v231_v23 = vcombine.high %v979_v18, %v979_v18  ;;  %v1217_v27 = vld [vmem:[%s1493_s1 + $0x8] sm:$0xff]   ;;  %v263_v30 = vshll.u32 %v215_v17, 16  ;;  %v268_v31 = vshrl.u32 %v978_v16, 16  ;;  %v242_v33 = vrot.slane %v240_v24, 6  ;;  %v1218_v49 = vld [vmem:[%s1493_s1 + $0x40] sm:$0xff]   ;;  %v1223_v12 = vld [vmem:[%s1493_s1 + $0xf8] sm:$0xff]  }
  0x14   : > { %v245_v34 = vrot.slane %v243_v25, 7  ;;  %v251_v35 = vrot.slane %v249_v26, 7  ;;  %v271_v36 = vshll.u32 %v978_v16, 16  ;;  %v256_v37 = vrot.slane %v254_v28, 6  ;;  %v1219_v54 = vld [vmem:[%s1493_s1] sm:$0xff]   ;;  %v1222_v15 = vld [vmem:[%s1493_s1 + $0xb8] sm:$0xff]  }
  0x15   : > { %1117 = vmatpush3.bf16.msra.mxu0 %v1208_v5  ;;  %v259_v38 = vrot.slane %v257_v29, 7  ;;  %v265_v39 = vrot.slane %v263_v30, 7  ;;  %v270_v40 = vrot.slane %v268_v31, 6  ;;  %v277_v43 = vshll.u32 %v223_v19, 16  ;;  %v1225_v17 = vld [vmem:[%s1493_s1 + $0xf0] sm:$0xff]   ;;  %v1227_v19 = vld [vmem:[%s1493_s1 + $0xe8] sm:$0xff]  }
  0x16   : > { %1137 = vmatpush3.bf16.msra.mxu1 %v1209_v6  ;;  %1118 = vmatprep.subr.bf16.mxu0 %v1252_v1  ;;  %v246_v41 = vor.u32 %v245_v34, %v242_v33  ;;  %v273_v42 = vrot.slane %v271_v36, 7  ;;  %v282_v44 = vshrl.u32 %v979_v18, 16  ;;  %v285_v47 = vshll.u32 %v979_v18, 16  ;;  %v1224_v18 = vld [vmem:[%s1493_s1 + $0xb0] sm:$0xff]   ;;  %v1226_v21 = vld [vmem:[%s1493_s1 + $0xa8] sm:$0xff]   ;;  %v1229_v24 = vld [vmem:[%s1493_s1 + $0xe0] sm:$0xff]  }
  0x17   : > { %1138 = vmatprep.subr.bf16.mxu1 %v1252_v1  ;;  %v260_v46 = vor.u32 %v259_v38, %v256_v37  ;;  %v291_v48 = vshll.u32 %v231_v23, 16  ;;  %v279_v56 = vrot.slane %v277_v43, 7  ;;  %v1254_v58 = vmov 1983009808   ;;  %v1228_v29 = vld [vmem:[%s1493_s1 + $0xa0] sm:$0xff]   ;;  %v1231_v30 = vld [vmem:[%s1493_s1 + $0xd8] sm:$0xff]  }
  0x18   : > { %v247_v50 = vrot.slane %v246_v41, 2  ;;  %v274_v51 = vor.u32 %v273_v42, %v270_v40  ;;  %v284_v52 = vrot.slane %v282_v44, 6  ;;  %v287_v57 = vrot.slane %v285_v47, 7  ;;  %v1230_v34 = vld [vmem:[%s1493_s1 + $0x98] sm:$0xff]   ;;  %v1232_v37 = vld [vmem:[%s1493_s1 + $0x90] sm:$0xff]   ;;  %v1235_v40 = vld [vmem:[%s1493_s1 + $0xc8] sm:$0xff]  }
  0x19   : > { %1119 = vmatpush3.bf16.msra.mxu0 %v1210_v7  ;;  %v261_v55 = vrot.slane %v260_v46, 2  ;;  %v315_v59 = vunpack.c.l.s4 %v1254_v58  ;;  %v1240_v60 = vld.sshfl [vmem:[%s1325_s6] sm:$0xf pattern:$0x76325410]  ;;  %v293_v0 = vrot.slane %v291_v48, 7 }
  0x1a   : > { %1139 = vmatpush3.bf16.msra.mxu1 %v1211_v8  ;;  %1120 = vmatprep.subr.bf16.mxu0 %v1252_v1  ;;  %v1241_v61 = vld.sshfl [vmem:[%s1325_s6 + $0x8] sm:$0xf pattern:$0x76325410]  ;;  %v252_v62 = vsel %vm1369_vm7, %v247_v50, %v251_v35  ;;  %v275_v63 = vrot.slane %v274_v51, 2  ;;  %v288_v3 = vor.u32 %v287_v57, %v284_v52  ;;  %v1233_v35 = vld [vmem:[%s1493_s1 + $0xd0] sm:$0xff]  }
  0x1b   : > { %1140 = vmatprep.subr.bf16.mxu1 %v1252_v1  ;;  %v1387_v2 = vsel %vm1369_vm7, %v261_v55, %v265_v39  ;;  %v316_v4 = vunpack.c.0.s8 %v315_v59  ;;  %v1047_v20 = vld.sshfl [vmem:[%s1325_s6 + $0x10] sm:$0x13 pattern:$0x76325410]  ;;  %v1234_v43 = vld [vmem:[%s1493_s1 + $0x88] sm:$0xff]   ;;  %v1237_v46 = vld [vmem:[%s1493_s1 + $0xc0] sm:$0xff]  }
  0x1c   : > { %v312_v5 = vcombine.low %v252_v62, %v1387_v2  ;;  %v1392_v6 = vsel %vm1369_vm7, %v275_v63, %v279_v56  ;;  %v289_v7 = vrot.slane %v288_v3, 2  ;;  %v748_v23 = vshrl.u32 %v1047_v20, 16  ;;  %v1242_v41 = vld.sshfl [vmem:[%s1325_s6 + $0x4] sm:$0xf pattern:$0x76325410] }
  0x1d   : > { %1121 = vmatpush3.bf16.msra.mxu0 %v1212_v9  ;;  %v1394_v8 = vsub.s32 %v316_v4, %v318_v53  ;;  %v751_v25 = vshll.u32 %v1047_v20, 16  ;;  %v778_v38 = vcombine.low %v1387_v2, %v1392_v6  ;;  %v1243_v42 = vld.sshfl [vmem:[%s1325_s6 + $0xc] sm:$0xf pattern:$0x76325410]  ;;  %v1236_v47 = vld [vmem:[%s1493_s1 + $0x80] sm:$0xff]  }
  0x1e   : > { %1141 = vmatpush3.bf16.msra.mxu1 %v1213_v10  ;;  %1122 = vmatprep.subr.bf16.mxu0 %v1252_v1  ;;  %v1400_v9 = vsel %vm1369_vm7, %v289_v7, %v293_v0  ;;  %v750_v26 = vrot.slane %v748_v23, 6  ;;  %v1072_v63 = vld [vmem:[%s1494_s2] ss:$0 sm:$0xff]  ;;  %vm908_vm8 = vcmask 517120  }
  0x1f   : > { %1142 = vmatprep.subr.bf16.mxu1 %v1252_v1  ;;  %v313_v10 = vcombine.low %v1392_v6, %v1400_v9  ;;  %v753_v28 = vrot.slane %v751_v25, 7  ;;  %v786_v44 = vrot.slane %v778_v38, %v1394_v8 }
  0x21   : > { %1123 = vmatpush3.bf16.msra.mxu0 %v1214_v11  ;;  %v320_v11 = vrot.slane %v312_v5, %v1394_v8  ;;  %v327_v14 = vrot.slane %v313_v10, %v1394_v8  ;;  %v754_v31 = vor.u32 %v753_v28, %v750_v26 }
  0x22   : > { %1143 = vmatpush3.bf16.msra.mxu1 %v1215_v13  ;;  %1124 = vmatprep.subr.bf16.mxu0 %v1252_v1  ;;  %v439_v13 = vcombine.low %v1240_v60, %v1241_v61 }
  0x23   : > { %1144 = vmatprep.subr.bf16.mxu1 %v1252_v1  ;;  %v328_v16 = vcombine.low %v320_v11, %v327_v14  ;;  %v755_v33 = vrot.slane %v754_v31, 2 }
  0x25   : > { %1125 = vmatpush3.bf16.msra.mxu0 %v1216_v22  ;;  %v704_v22 = vcombine.high %v1047_v20, %v1047_v20 }
  0x26   : > { %1145 = vmatpush3.bf16.msra.mxu1 %v1217_v27  ;;  %1126 = vmatprep.subr.bf16.mxu0 %v1252_v1 }
  0x27   : > { %1146 = vmatprep.subr.bf16.mxu1 %v1252_v1  ;;  %v757_v27 = vshll.u32 %v704_v22, 16 }
  0x29   : > { %1127 = vmatpush3.bf16.msra.mxu0 %v1218_v49  ;;  %v759_v32 = vrot.slane %v757_v27, 7  ;;  %v572_v49 = vcombine.low %v1242_v41, %v1243_v42 }
  0x2a   : > { %1147 = vmatpush3.bf16.msra.mxu1 %v1219_v54  ;;  %1152 = vmatprep.subr.bf16.mxu0 %v1252_v1 }
  0x2b   : > { %1172 = vmatprep.subr.bf16.mxu1 %v1252_v1  ;;  %v760_v36 = vsel %vm1369_vm7, %v755_v33, %v759_v32 }
  0x2c   : > { %1129 = vmatmul.mubr.bf16.vlgmr.msra.gmra.mxu0 %v328_v16  ;;  %v779_v39 = vcombine.low %v1400_v9, %v760_v36 }
  0x2d   : > { %1149 = vmatmul.mubr.bf16.vlgmr.msra.gmra.mxu1 %v439_v13  ;;  %1153 = vmatpush3.bf16.msra.mxu0 %v1222_v15 }
  0x2e   : > { %1173 = vmatpush3.bf16.msra.mxu1 %v1223_v12  ;;  %1188 = vmatprep.mubr.msk.bf16.mxu1 %vm1253_vm0, %v1252_v1  ;;  %v793_v45 = vrot.slane %v779_v39, %v1394_v8 }
  0x2f   : > { %1174 = vmatprep.subr.bf16.mxu1 %v1252_v1  ;;  %1168 = vmatprep.mubr.msk.bf16.mxu0 %vm1253_vm0, %v1252_v1 }
  0x30   : > { %1154 = vmatprep.subr.bf16.mxu0 %v1252_v1  ;;  %v794_v48 = vcombine.low %v786_v44, %v793_v45 }
  0x31   : > { %1155 = vmatpush3.bf16.msra.mxu0 %v1224_v18 }
  0x32   : > { %1175 = vmatpush3.bf16.msra.mxu1 %v1225_v17  ;;  %1156 = vmatprep.subr.bf16.mxu0 %v1252_v1 }
  0x33   : > { %1176 = vmatprep.subr.bf16.mxu1 %v1252_v1 }
  0x35   : > { %1157 = vmatpush3.bf16.msra.mxu0 %v1226_v21 }
  0x36   : > { %1177 = vmatpush3.bf16.msra.mxu1 %v1227_v19  ;;  %1158 = vmatprep.subr.bf16.mxu0 %v1252_v1 }
  0x37   : > { %1178 = vmatprep.subr.bf16.mxu1 %v1252_v1 }
  0x39   : > { %1159 = vmatpush3.bf16.msra.mxu0 %v1228_v29 }
  0x3a   : > { %1179 = vmatpush3.bf16.msra.mxu1 %v1229_v24  ;;  %1160 = vmatprep.subr.bf16.mxu0 %v1252_v1 }
  0x3b   : > { %1180 = vmatprep.subr.bf16.mxu1 %v1252_v1 }
  0x3d   : > { %1161 = vmatpush3.bf16.msra.mxu0 %v1230_v34 }
  0x3e   : > { %1181 = vmatpush3.bf16.msra.mxu1 %v1231_v30  ;;  %1162 = vmatprep.subr.bf16.mxu0 %v1252_v1 }
  0x3f   : > { %1182 = vmatprep.subr.bf16.mxu1 %v1252_v1 }
  0x41   : > { %1163 = vmatpush3.bf16.msra.mxu0 %v1232_v37 }
  0x42   : > { %1183 = vmatpush3.bf16.msra.mxu1 %v1233_v35  ;;  %1164 = vmatprep.subr.bf16.mxu0 %v1252_v1 }
  0x43   : > { %1184 = vmatprep.subr.bf16.mxu1 %v1252_v1 }
  0x45   : > { %1165 = vmatpush3.bf16.msra.mxu0 %v1234_v43 }
  0x46   : > { %1185 = vmatpush3.bf16.msra.mxu1 %v1235_v40  ;;  %1166 = vmatprep.subr.bf16.mxu0 %v1252_v1 }
  0x47   : > { %1186 = vmatprep.subr.bf16.mxu1 %v1252_v1 }
  0x49   : > { %1167 = vmatpush3.bf16.msra.mxu0 %v1236_v47 }
  0x4a   : > { %1187 = vmatpush3.bf16.msra.mxu1 %v1237_v46 }
  0x4c   : > { %1169 = vmatmul.mubr.bf16.vlgmr.msra.gmra.mxu0 %v572_v49 }
  0x4d   : > { %1189 = vmatmul.mubr.bf16.vlgmr.msra.gmra.mxu1 %v794_v48 }
  0xec   : > { %v412_v52 = vpop.f32.mrf.mxu0 }
  0xed   : > { %v523_v50 = vpop.f32.mrf.mxu1 }
  0xee   : > { %v1130_v54 = vpop.f32.mrf.mxu0  ;;  %v524_v59 = vadd.f32 %v523_v50, %v412_v52 }
  0xef   : > { %v1150_v51 = vpop.f32.mrf.mxu1 }
  0xf0   : > { %v415_v56 = vpop.f32.mrf.mxu0 }
  0xf1   : > { %v526_v53 = vpop.f32.mrf.mxu1 }
  0xf2   : > { %v1131_v57 = vpop.f32.mrf.mxu0  ;;  %v527_v2 = vadd.f32 %v526_v53, %v415_v56 }
  0xf3   : > { %v1151_v55 = vpop.f32.mrf.mxu1 }
 0x10c   : > { %v656_v61 = vpop.f32.mrf.mxu0 }
 0x10d   : > { %v878_v58 = vpop.f32.mrf.mxu1  ;;  %v663_v62 = vadd.f32 %v656_v61, %v524_v59 }
 0x10e   : > { %v1170_v0 = vpop.f32.mrf.mxu0 }
 0x10f   : > { %v1190_v60 = vpop.f32.mrf.mxu1  ;;  %v885_v3 = vadd.f32 %v878_v58, %v663_v62 }
 0x110   : > { %v659_v5 = vpop.f32.mrf.mxu0 }
 0x111   : > { %v881_v1 = vpop.f32.mrf.mxu1  ;;  %v894_v6 = vadd.f32 %v1072_v63, %v885_v3  ;;  %v664_v7 = vadd.f32 %v659_v5, %v527_v2 }
 0x112   : > { %v1171_v8 = vpop.f32.mrf.mxu0 }
 0x113   : > { %v1191_v4 = vpop.f32.mrf.mxu1  ;;  %v896_v9 = vmax.f32 %v894_v6, 0.0  ;;  %v886_v10 = vadd.f32 %v881_v1, %v664_v7 }
 0x115   : > { %v900_v11 = vcombine.high %v896_v9, %v896_v9  ;;  %v904_v12 = vpack.c.bf16 %v896_v9, %v896_v9  ;;  %v895_v13 = vadd.f32 %v1072_v63, %v886_v10 }
 0x117   : > { %v905_v14 = vpack.c.bf16 %v900_v11, %v900_v11  ;;  %909 = vst.msk [vmem:[%s170_s11] sm:$0x3] %vm908_vm8, %v904_v12  ;;  %v897_v15 = vmax.f32 %v895_v13, 0.0 }
 0x119   : > { %910 = vst.msk [vmem:[%s170_s11 + $0x2] sm:$0x3] %vm908_vm8, %v905_v14  ;;  %v901_v16 = vcombine.high %v897_v15, %v897_v15  ;;  %v906_v17 = vpack.c.bf16 %v897_v15, %v897_v15 }
 0x11b   : > { %v907_v18 = vpack.c.bf16 %v901_v16, %v901_v16  ;;  %911 = vst.msk [vmem:[%s170_s11 + $0x4] sm:$0x3] %vm908_vm8, %v906_v17 }
 0x11d   : > { %912 = vst.msk [vmem:[%s170_s11 + $0x6] sm:$0x3] %vm908_vm8, %v907_v18 }
 0x11e PF: > { %s13_s12 = sadd.s32 1, %s1250_s12  }
 0x11f   : > { %p10_p4 = scmp.ge.s32.totalorder %s13_s12, 4  }
 0x121   :  { %12 = sbr.rel (!%p10_p4) target bundleno = 1 (0x1), region = 66 }

// kernel: vae_latent_ctrl_forward.8
= control target key start
LH: loop header
LB: loop body
LE: loop exit
PB: predicated region body
PF: predicated region fallthrough
CT: control target
= control target key end

     0   :  { %s1531_s12 = smov 0   ;;  %s1795_s0 = inlined_call_operand.vmem [shape: bf16[2,3,3,256], index: 0, kind: input, shape index: {}]   ;;  %s1796_s1 = inlined_call_operand.vmem [shape: bf16[4,256,128], index: 1, kind: input, shape index: {}]   ;;  %s1797_s2 = inlined_call_operand.vmem [shape: f32[1,128], index: 2, kind: input, shape index: {}]   ;;  %s1798_s3 = inlined_call_operand.vmem [shape: bf16[2,2,2,128], index: 3, kind: output, shape index: {}]  }
   0x1 LB: > { %s1152_s13 = sadd.s32 4294967295, %s1507_s12   ;;  %p1156_p0 = scmp.ge.s32.totalorder %s1507_s12, 1  ;;  %s1507_s12 = sphi %s1531_s12, %s13_s12  }
   0x2   : > { %p137_p1 = scmp.lt.s32.totalorder %s1507_s12, 3 }
   0x4   : > { %p138_p2 = pnand %p1156_p0, %p137_p1 }
   0x5   : > { %p160_p3 = scmp.lt.s32.totalorder (!%p138_p2), %s1152_s13, 1 }
   0x6   : > { %141 = sbr.rel (%p138_p2) target bundleno = 289 (0x121), region = 32 }
   0xb   : > { %v1437_v0 = vld [vmem:[%s1796_s1 + $0xf8] sm:$0xff]   ;;  %v1441_v4 = vld [vmem:[%s1796_s1 + $0xf0] sm:$0xff]   ;;  %v1445_v8 = vld [vmem:[%s1796_s1 + $0xe8] sm:$0xff]   ;;  %s1802_s13 = smov (!%p160_p3, %s1152_s13), 1  ;;  %v310_v28 = vlaneseq  ;;  %vm240_vm0 = vsmask.f32 256 }
   0xc   : > { %v1438_v1 = vld [vmem:[%s1796_s1 + $0x78] sm:$0xff]   ;;  %1338 = vmatprep.subr.bf16.mxu0 %v1437_v0  ;;  %v1442_v5 = vld [vmem:[%s1796_s1 + $0x70] sm:$0xff]   ;;  %v1446_v9 = vld [vmem:[%s1796_s1 + $0x68] sm:$0xff]   ;;  %s1426_s16 = smul.u32 12, %s1802_s13  ;;  %vm241_vm1 = vsmask.f32 1284 }
   0xd   : > { %v1439_v2 = vld [vmem:[%s1796_s1 + $0xb8] sm:$0xff]   ;;  %1360 = vmatprep.subr.bf16.mxu1 %v1438_v1  ;;  %v1443_v6 = vld [vmem:[%s1796_s1 + $0xb0] sm:$0xff]   ;;  %v1447_v10 = vld [vmem:[%s1796_s1 + $0xa8] sm:$0xff]   ;;  %v1647_v33 = vshrl.u32 %v310_v28, 7  ;;  %vm243_vm3 = vsmask.f32 2312 }
   0xe   : > { %v1440_v3 = vld [vmem:[%s1796_s1 + $0x38] sm:$0xff]   ;;  %1339 = vmatpush3.bf16.msra.mxu0 %v1439_v2  ;;  %v1444_v7 = vld [vmem:[%s1796_s1 + $0x30] sm:$0xff]   ;;  %v1448_v11 = vld [vmem:[%s1796_s1 + $0x28] sm:$0xff]   ;;  %s1639_s27 = scalar_lea.vmem %s1795_s0, %s1426_s16  ;;  %vm245_vm4 = vsmask.f32 3340  ;;  %s1158_s24 = sshll.u32 %s1802_s13, 1 }
   0xf   : > { %1361 = vmatpush3.bf16.msra.mxu1 %v1440_v3  ;;  %1340 = vmatprep.subr.bf16.mxu0 %v1441_v4  ;;  %v1449_v12 = vld [vmem:[%s1796_s1 + $0xe0] sm:$0xff]   ;;  %v1453_v16 = vld [vmem:[%s1796_s1 + $0xd8] sm:$0xff]   ;;  %v1457_v20 = vld [vmem:[%s1796_s1 + $0xd0] sm:$0xff]   ;;  %vm247_vm5 = vsmask.f32 4368  ;;  %s168_s28 = scalar_lea.vmem %s1798_s3, %s1158_s24 }
  0x10   : > { %1362 = vmatprep.subr.bf16.mxu1 %v1442_v5  ;;  %v1450_v13 = vld [vmem:[%s1796_s1 + $0x60] sm:$0xff]   ;;  %v1454_v17 = vld [vmem:[%s1796_s1 + $0x58] sm:$0xff]   ;;  %v1458_v21 = vld [vmem:[%s1796_s1 + $0x50] sm:$0xff]   ;;  %vm249_vm7 = vsmask.f32 5396 }
  0x11   : > { %v1451_v14 = vld [vmem:[%s1796_s1 + $0xa0] sm:$0xff]   ;;  %v1455_v18 = vld [vmem:[%s1796_s1 + $0x98] sm:$0xff]   ;;  %v1459_v22 = vld [vmem:[%s1796_s1 + $0x90] sm:$0xff]   ;;  %vm251_vm8 = vsmask.f32 6424 }
  0x12   : > { %1341 = vmatpush3.bf16.msra.mxu0 %v1443_v6  ;;  %v1452_v15 = vld [vmem:[%s1796_s1 + $0x20] sm:$0xff]   ;;  %v1456_v19 = vld [vmem:[%s1796_s1 + $0x18] sm:$0xff]   ;;  %v1460_v23 = vld [vmem:[%s1796_s1 + $0x10] sm:$0xff]   ;;  %vm253_vm9 = vsmask.f32 7452 }
  0x13   : > { %1363 = vmatpush3.bf16.msra.mxu1 %v1444_v7  ;;  %1342 = vmatprep.subr.bf16.mxu0 %v1445_v8  ;;  %v1461_v24 = vld [vmem:[%s1796_s1 + $0xc8] sm:$0xff]   ;;  %v1465_v29 = vld [vmem:[%s1796_s1 + $0xc0] sm:$0xff]   ;;  %vm242_vm2 = vmor %vm240_vm0, %vm241_vm1  ;;  %v1509_v43 = vmov 1966171168  }
  0x14   : > { %1364 = vmatprep.subr.bf16.mxu1 %v1446_v9  ;;  %v1462_v25 = vld [vmem:[%s1796_s1 + $0x48] sm:$0xff]   ;;  %v1466_v30 = vld [vmem:[%s1796_s1 + $0x40] sm:$0xff]   ;;  %vm244_vm6 = vmor %vm242_vm2, %vm243_vm3  ;;  %v308_v44 = vunpack.c.l.s4 %v1509_v43 }
  0x15   : > { %v1463_v26 = vld [vmem:[%s1796_s1 + $0x88] sm:$0xff]   ;;  %v1467_v31 = vld [vmem:[%s1796_s1 + $0x80] sm:$0xff]   ;;  %vm246_vm10 = vmor %vm244_vm6, %vm245_vm4 }
  0x16   : > { %1343 = vmatpush3.bf16.msra.mxu0 %v1447_v10  ;;  %v1464_v27 = vld [vmem:[%s1796_s1 + $0x8] sm:$0xff]   ;;  %v1468_v32 = vld [vmem:[%s1796_s1] sm:$0xff]   ;;  %vm248_vm11 = vmor %vm246_vm10, %vm247_vm5  ;;  %v309_v48 = vunpack.c.0.s8 %v308_v44 }
  0x17   : > { %1365 = vmatpush3.bf16.msra.mxu1 %v1448_v11  ;;  %1344 = vmatprep.subr.bf16.mxu0 %v1449_v12  ;;  %v1161_v34 = vld.sshfl [vmem:[%s1639_s27] sm:$0x33 pattern:$0x75316420]  ;;  %vm250_vm12 = vmor %vm248_vm11, %vm249_vm7  ;;  %v1469_v46 = vld [vmem:[%s1796_s1 + $0x178] sm:$0xff]  }
  0x18   : > { %1366 = vmatprep.subr.bf16.mxu1 %v1450_v13  ;;  %v1162_v35 = vld.sshfl [vmem:[%s1639_s27 + $0x4] sm:$0x33 pattern:$0x75316420]  ;;  %v231_v36 = vcombine.high %v1161_v34, %v1161_v34  ;;  %v256_v38 = vshrl.u32 %v1161_v34, 16  ;;  %vm252_vm13 = vmor %vm250_vm12, %vm251_vm8  ;;  %v1470_v50 = vld [vmem:[%s1796_s1 + $0x1f8] sm:$0xff]   ;;  %v1674_v54 = vsub.s32 %v309_v48, %v1647_v33 }
  0x19   : > { %v239_v37 = vcombine.high %v1162_v35, %v1162_v35  ;;  %v265_v40 = vshrl.u32 %v1162_v35, 16  ;;  %v1159_v42 = vld.sshfl [vmem:[%s1639_s27] sm:$0x3 pattern:$0x75316420]  ;;  %vm1658_vm14 = vmor %vm252_vm13, %vm253_vm9  ;;  %v1471_v59 = vld [vmem:[%s1796_s1 + $0x138] sm:$0xff]  }
  0x1a   : > { %1345 = vmatpush3.bf16.msra.mxu0 %v1451_v14  ;;  %v261_v39 = vshll.u32 %v231_v36, 16  ;;  %v1653_v45 = vld.sshfl [vmem:[%s1639_s27 + $0x4] sm:$0x3 pattern:$0x75316420]  ;;  %v1472_v62 = vld [vmem:[%s1796_s1 + $0x1b8] sm:$0xff]  }
  0x1b   : > { %1367 = vmatpush3.bf16.msra.mxu1 %v1452_v15  ;;  %1346 = vmatprep.subr.bf16.mxu0 %v1453_v16  ;;  %v270_v41 = vshll.u32 %v239_v37, 16  ;;  %v467_v49 = vcombine.low %v1159_v42, %v1653_v45  ;;  %v1473_v1 = vld [vmem:[%s1796_s1 + $0x170] sm:$0xff]   ;;  %v1477_v5 = vld [vmem:[%s1796_s1 + $0x168] sm:$0xff]   ;;  %v1481_v9 = vld [vmem:[%s1796_s1 + $0x160] sm:$0xff]  }
  0x1c   : > { %1368 = vmatprep.subr.bf16.mxu1 %v1454_v17  ;;  %v263_v51 = vsel %vm1658_vm14, %v256_v38, %v261_v39  ;;  %v1474_v2 = vld [vmem:[%s1796_s1 + $0x1f0] sm:$0xff]   ;;  %v1478_v6 = vld [vmem:[%s1796_s1 + $0x1e8] sm:$0xff]   ;;  %v1482_v10 = vld [vmem:[%s1796_s1 + $0x1e0] sm:$0xff]  }
  0x1d   : > { %v1670_v52 = vsel %vm1658_vm14, %v265_v40, %v270_v41  ;;  %v474_v56 = vrot.slane %v467_v49, %v1674_v54  ;;  %v1475_v3 = vld [vmem:[%s1796_s1 + $0x130] sm:$0xff]   ;;  %v1479_v7 = vld [vmem:[%s1796_s1 + $0x128] sm:$0xff]   ;;  %v1483_v11 = vld [vmem:[%s1796_s1 + $0x120] sm:$0xff]  }
  0x1e   : > { %1347 = vmatpush3.bf16.msra.mxu0 %v1455_v18  ;;  %v306_v53 = vcombine.low %v263_v51, %v1670_v52  ;;  %v1476_v4 = vld [vmem:[%s1796_s1 + $0x1b0] sm:$0xff]   ;;  %v1480_v8 = vld [vmem:[%s1796_s1 + $0x1a8] sm:$0xff]   ;;  %v1484_v12 = vld [vmem:[%s1796_s1 + $0x1a0] sm:$0xff]  }
  0x1f   : > { %1369 = vmatpush3.bf16.msra.mxu1 %v1456_v19  ;;  %1348 = vmatprep.subr.bf16.mxu0 %v1457_v20  ;;  %v475_v58 = vcombine.high %v474_v56, %v474_v56  ;;  %v482_v61 = vrot.slane %v474_v56, %v1674_v54  ;;  %v1485_v13 = vld [vmem:[%s1796_s1 + $0x158] sm:$0xff]   ;;  %v1489_v17 = vld [vmem:[%s1796_s1 + $0x150] sm:$0xff]   ;;  %v1497_v28 = vld [vmem:[%s1796_s1 + $0x140] sm:$0xff]  }
  0x20   : > { %1370 = vmatprep.subr.bf16.mxu1 %v1458_v21  ;;  %v313_v55 = vrot.slane %v306_v53, %v1674_v54  ;;  %v1486_v14 = vld [vmem:[%s1796_s1 + $0x1d8] sm:$0xff]   ;;  %v1490_v18 = vld [vmem:[%s1796_s1 + $0x1d0] sm:$0xff]   ;;  %v1493_v21 = vld [vmem:[%s1796_s1 + $0x148] sm:$0xff]  }
  0x21   : > { %v489_v0 = vrot.slane %v475_v58, %v1674_v54  ;;  %v1487_v15 = vld [vmem:[%s1796_s1 + $0x118] sm:$0xff]   ;;  %v1491_v19 = vld [vmem:[%s1796_s1 + $0x110] sm:$0xff]   ;;  %v1499_v35 = vld [vmem:[%s1796_s1 + $0x100] sm:$0xff]  }
  0x22   : > { %1349 = vmatpush3.bf16.msra.mxu0 %v1459_v22  ;;  %v314_v57 = vcombine.high %v313_v55, %v313_v55  ;;  %v321_v60 = vrot.slane %v313_v55, %v1674_v54  ;;  %v1488_v16 = vld [vmem:[%s1796_s1 + $0x198] sm:$0xff]   ;;  %v1492_v20 = vld [vmem:[%s1796_s1 + $0x190] sm:$0xff]   ;;  %v1494_v22 = vld [vmem:[%s1796_s1 + $0x1c8] sm:$0xff]  }
  0x23   : > { %1371 = vmatpush3.bf16.msra.mxu1 %v1460_v23  ;;  %1350 = vmatprep.subr.bf16.mxu0 %v1461_v24  ;;  %v1232_v23 = vld.sshfl [vmem:[%s1639_s27 + $0x8] sm:$0x3 pattern:$0x75316420]  ;;  %v1500_v36 = vld [vmem:[%s1796_s1 + $0x180] sm:$0xff]  }
  0x24   : > { %1372 = vmatprep.subr.bf16.mxu1 %v1462_v25  ;;  %v328_v63 = vrot.slane %v314_v57, %v1674_v54  ;;  %620 = vmatprep.mubr.bf16.mxu1 %v489_v0  ;;  %v1495_v24 = vld [vmem:[%s1796_s1 + $0x108] sm:$0xff]  }
  0x25   : > { %v1496_v25 = vld [vmem:[%s1796_s1 + $0x188] sm:$0xff]  }
  0x26   : > { %1351 = vmatpush3.bf16.msra.mxu0 %v1463_v26  ;;  %459 = vmatprep.mubr.bf16.mxu0 %v328_v63  ;;  %v680_v26 = vcombine.low %v1653_v45, %v1232_v23 }
  0x27   : > { %1373 = vmatpush3.bf16.msra.mxu1 %v1464_v27  ;;  %1352 = vmatprep.subr.bf16.mxu0 %v1465_v29  ;;  %v1284_v27 = vld.sshfl [vmem:[%s1639_s27 + $0x8] sm:$0x33 pattern:$0x75316420]  ;;  %v1498_v29 = vld [vmem:[%s1796_s1 + $0x1c0] sm:$0xff]  }
  0x28   : > { %1374 = vmatprep.subr.bf16.mxu1 %v1466_v30  ;;  %v861_v30 = vcombine.high %v1284_v27, %v1284_v27 }
  0x2a   : > { %1353 = vmatpush3.bf16.msra.mxu0 %v1467_v31  ;;  %v872_v31 = vshrl.u32 %v1284_v27, 16  ;;  %v877_v34 = vshll.u32 %v861_v30, 16 }
  0x2b   : > { %1375 = vmatpush3.bf16.msra.mxu1 %v1468_v32  ;;  %1382 = vmatprep.subr.bf16.mxu0 %v1469_v46  ;;  %v687_v32 = vrot.slane %v680_v26, %v1674_v54 }
  0x2c   : > { %1404 = vmatprep.subr.bf16.mxu1 %v1470_v50  ;;  %v879_v38 = vsel %vm1658_vm14, %v872_v31, %v877_v34 }
  0x2d   : > { %460 = vmatmul.mubr.bf16.vlgmr.msra.gmra.mxu0 %v321_v60  ;;  %v688_v37 = vcombine.high %v687_v32, %v687_v32  ;;  %v913_v40 = vcombine.low %v1670_v52, %v879_v38  ;;  %v695_v41 = vrot.slane %v687_v32, %v1674_v54 }
  0x2e   : > { %621 = vmatmul.mubr.bf16.vlgmr.msra.gmra.mxu1 %v482_v61  ;;  %1383 = vmatpush3.bf16.msra.mxu0 %v1471_v59  ;;  %v1510_v61 = vmov 1983009808  }
  0x2f   : > { %1405 = vmatpush3.bf16.msra.mxu1 %v1472_v62  ;;  %1384 = vmatprep.subr.bf16.mxu0 %v1473_v1  ;;  %v702_v39 = vrot.slane %v688_v37, %v1674_v54  ;;  %v920_v42 = vrot.slane %v913_v40, %v1674_v54  ;;  %v1086_v62 = vunpack.c.l.s4 %v1510_v61 }
  0x30   : > { %1406 = vmatprep.subr.bf16.mxu1 %v1474_v2 }
  0x31   : > { %833 = vmatprep.mubr.bf16.mxu0 %v702_v39  ;;  %v921_v43 = vcombine.high %v920_v42, %v920_v42  ;;  %v928_v44 = vrot.slane %v920_v42, %v1674_v54 }
  0x32   : > { %1385 = vmatpush3.bf16.msra.mxu0 %v1475_v3 }
  0x33   : > { %1407 = vmatpush3.bf16.msra.mxu1 %v1476_v4  ;;  %1386 = vmatprep.subr.bf16.mxu0 %v1477_v5  ;;  %v935_v45 = vrot.slane %v921_v43, %v1674_v54  ;;  %v1087_v4 = vunpack.c.0.s8 %v1086_v62  ;;  %v1335_v5 = vld [vmem:[%s1797_s2] ss:$0 sm:$0xff] }
  0x34   : > { %1408 = vmatprep.subr.bf16.mxu1 %v1478_v6 }
  0x35   : > { %1066 = vmatprep.mubr.bf16.mxu1 %v935_v45 }
  0x36   : > { %1387 = vmatpush3.bf16.msra.mxu0 %v1479_v7 }
  0x37   : > { %1409 = vmatpush3.bf16.msra.mxu1 %v1480_v8  ;;  %1388 = vmatprep.subr.bf16.mxu0 %v1481_v9 }
  0x38   : > { %1410 = vmatprep.subr.bf16.mxu1 %v1482_v10  ;;  %v1090_v10 = vsub.s32 %v1087_v4, %v1647_v33 }
  0x3a   : > { %1389 = vmatpush3.bf16.msra.mxu0 %v1483_v11 }
  0x3b   : > { %1411 = vmatpush3.bf16.msra.mxu1 %v1484_v12  ;;  %1390 = vmatprep.subr.bf16.mxu0 %v1485_v13 }
  0x3c   : > { %1412 = vmatprep.subr.bf16.mxu1 %v1486_v14 }
  0x3e   : > { %1391 = vmatpush3.bf16.msra.mxu0 %v1487_v15 }
  0x3f   : > { %1413 = vmatpush3.bf16.msra.mxu1 %v1488_v16  ;;  %1392 = vmatprep.subr.bf16.mxu0 %v1489_v17 }
  0x40   : > { %1414 = vmatprep.subr.bf16.mxu1 %v1490_v18 }
  0x42   : > { %1393 = vmatpush3.bf16.msra.mxu0 %v1491_v19 }
  0x43   : > { %1415 = vmatpush3.bf16.msra.mxu1 %v1492_v20  ;;  %1394 = vmatprep.subr.bf16.mxu0 %v1493_v21 }
  0x44   : > { %1416 = vmatprep.subr.bf16.mxu1 %v1494_v22 }
  0x46   : > { %1395 = vmatpush3.bf16.msra.mxu0 %v1495_v24 }
  0x47   : > { %1417 = vmatpush3.bf16.msra.mxu1 %v1496_v25  ;;  %1396 = vmatprep.subr.bf16.mxu0 %v1497_v28 }
  0x48   : > { %1418 = vmatprep.subr.bf16.mxu1 %v1498_v29 }
  0x4a   : > { %1397 = vmatpush3.bf16.msra.mxu0 %v1499_v35 }
  0x4b   : > { %1419 = vmatpush3.bf16.msra.mxu1 %v1500_v36 }
  0x4d   : > { %834 = vmatmul.mubr.bf16.vlgmr.msra.gmra.mxu0 %v695_v41 }
  0x4e   : > { %1067 = vmatmul.mubr.bf16.vlgmr.msra.gmra.mxu1 %v928_v44 }
  0xed   : > { %v1354_v46 = vpop.f32.mrf.mxu0 }
  0xee   : > { %v1376_v47 = vpop.f32.mrf.mxu1 }
  0xef   : > { %v1355_v48 = vpop.f32.mrf.mxu0 }
  0xf0   : > { %v1377_v49 = vpop.f32.mrf.mxu1  ;;  %v1356_v55 = vadd.f32 %v1355_v48, %v1354_v46 }
  0xf1   : > { %v1357_v50 = vpop.f32.mrf.mxu0  ;;  %v1378_v56 = vadd.f32 %v1377_v49, %v1376_v47 }
  0xf2   : > { %v1379_v51 = vpop.f32.mrf.mxu1 }
  0xf3   : > { %v1358_v52 = vpop.f32.mrf.mxu0  ;;  %v623_v59 = vadd.f32 %v1378_v56, %v1356_v55 }
  0xf4   : > { %v1380_v53 = vpop.f32.mrf.mxu1 }
 0x10d   : > { %v1398_v57 = vpop.f32.mrf.mxu0 }
 0x10e   : > { %v1420_v54 = vpop.f32.mrf.mxu1 }
 0x10f   : > { %v1399_v58 = vpop.f32.mrf.mxu0 }
 0x110   : > { %v1400_v60 = vadd.f32 %v1399_v58, %v1398_v57  ;;  %v1421_v1 = vpop.f32.mrf.mxu1 }
 0x111   : > { %v1401_v63 = vpop.f32.mrf.mxu0  ;;  %v1422_v3 = vadd.f32 %v1421_v1, %v1420_v54 }
 0x112   : > { %v841_v0 = vadd.f32 %v1400_v60, %v623_v59  ;;  %v1423_v6 = vpop.f32.mrf.mxu1 }
 0x113   : > { %v1402_v2 = vpop.f32.mrf.mxu0 }
 0x114   : > { %v1074_v7 = vadd.f32 %v1422_v3, %v841_v0  ;;  %v1424_v8 = vpop.f32.mrf.mxu1 }
 0x116   : > { %v1082_v9 = vadd.f32 %v1335_v5, %v1074_v7 }
 0x118   : > { %v1083_v11 = vmax.f32 %v1082_v9, 0.0 }
 0x11a   : > { %v1091_v12 = vrot.slane %v1083_v11, %v1090_v10 }
 0x11c   : > { %v1092_v13 = vcombine.high %v1091_v12, %v1091_v12  ;;  %v1095_v14 = vpack.c.bf16 %v1091_v12, %v1091_v12 }
 0x11e   : > { %v1096_v15 = vpack.c.bf16 %v1092_v13, %v1092_v13  ;;  %1097 = vst [vmem:[%s168_s28] sm:$0x1] %v1095_v14 }
 0x120   : > { %1098 = vst [vmem:[%s168_s28 + $0x1] sm:$0x1] %v1096_v15 }
 0x121 PF: > { %s13_s12 = sadd.s32 1, %s1507_s12  }
 0x122   : > { %p10_p4 = scmp.ge.s32.totalorder %s13_s12, 4  }
 0x124   :  { %12 = sbr.rel (!%p10_p4) target bundleno = 1 (0x1), region = 66 }

// kernel: vae_latent_ctrl_forward.10
= control target key start
LH: loop header
LB: loop body
LE: loop exit
PB: predicated region body
PF: predicated region fallthrough
CT: control target
= control target key end

     0   :  { %vm211_vm0 = vcmask 60416   ;;  %s365_s1 = inlined_call_operand.vmem [shape: bf16[256,8], index: 1, kind: input, shape index: {}]   ;;  %s366_s0 = inlined_call_operand.vmem [shape: bf16[16,256], index: 0, kind: input, shape index: {}]   ;;  %s367_s2 = inlined_call_operand.vmem [shape: f32[1,8], index: 2, kind: input, shape index: {}]   ;;  %s368_s3 = inlined_call_operand.vmem [shape: bf16[16,8], index: 3, kind: output, shape index: {}]  }
   0x1   :  { %v263_v0 = vld [vmem:[%s365_s1 + $0x78] sm:$0xff]   ;;  %v265_v2 = vld [vmem:[%s365_s1 + $0x70] sm:$0xff]   ;;  %v267_v4 = vld [vmem:[%s365_s1 + $0x68] sm:$0xff]  }
   0x2   :  { %v264_v1 = vld [vmem:[%s365_s1 + $0x38] sm:$0xff]   ;;  %241 = vmatprep.subr.bf16.mxu0 %v263_v0  ;;  %v266_v3 = vld [vmem:[%s365_s1 + $0x30] sm:$0xff]   ;;  %v268_v5 = vld [vmem:[%s365_s1 + $0x28] sm:$0xff]  }
   0x3   :  { %242 = vmatpush3.bf16.msra.mxu0 %v264_v1  ;;  %v269_v6 = vld [vmem:[%s365_s1 + $0x60] sm:$0xff]   ;;  %v271_v8 = vld [vmem:[%s365_s1 + $0x58] sm:$0xff]   ;;  %v273_v10 = vld [vmem:[%s365_s1 + $0x50] sm:$0xff]  }
   0x4   :  { %243 = vmatprep.subr.bf16.mxu0 %v265_v2  ;;  %v270_v7 = vld [vmem:[%s365_s1 + $0x20] sm:$0xff]   ;;  %v272_v9 = vld [vmem:[%s365_s1 + $0x18] sm:$0xff]   ;;  %v274_v12 = vld [vmem:[%s365_s1 + $0x10] sm:$0xff]  }
   0x5   :  { %v281_v11 = vld [vmem:[%s366_s0 + $0x4] ss:$8 sps:$4 sm:$0xff]   ;;  %v279_v17 = vld [vmem:[%s366_s0] ss:$8 sps:$4 sm:$0xff]  }
   0x6   :  { %194 = vmatprep.mubr.bf16.mxu0 %v281_v11  ;;  %v275_v13 = vld [vmem:[%s365_s1 + $0x48] sm:$0xff]   ;;  %v277_v15 = vld [vmem:[%s365_s1 + $0x40] sm:$0xff]  }
   0x7   :  { %244 = vmatpush3.bf16.msra.mxu0 %v266_v3  ;;  %v276_v14 = vld [vmem:[%s365_s1 + $0x8] sm:$0xff]   ;;  %v278_v16 = vld [vmem:[%s365_s1] sm:$0xff]  }
   0x8   :  { %245 = vmatprep.subr.bf16.mxu0 %v267_v4  ;;  %v218_v19 = vld [vmem:[%s367_s2] ss:$0 sm:$0xff] }
   0xb   :  { %246 = vmatpush3.bf16.msra.mxu0 %v268_v5 }
   0xc   :  { %247 = vmatprep.subr.bf16.mxu0 %v269_v6 }
   0xf   :  { %248 = vmatpush3.bf16.msra.mxu0 %v270_v7 }
  0x10   :  { %249 = vmatprep.subr.bf16.mxu0 %v271_v8 }
  0x13   :  { %250 = vmatpush3.bf16.msra.mxu0 %v272_v9 }
  0x14   :  { %251 = vmatprep.subr.bf16.mxu0 %v273_v10 }
  0x17   :  { %252 = vmatpush3.bf16.msra.mxu0 %v274_v12 }
  0x18   :  { %253 = vmatprep.subr.bf16.mxu0 %v275_v13 }
  0x1b   :  { %254 = vmatpush3.bf16.msra.mxu0 %v276_v14 }
  0x1c   :  { %255 = vmatprep.subr.bf16.mxu0 %v277_v15 }
  0x1f   :  { %256 = vmatpush3.bf16.msra.mxu0 %v278_v16 }
  0x22   :  { %195 = vmatmul.mubr.bf16.vlgmr.msra.gmra.mxu0 %v279_v17 }
  0xe2   :  { %v257_v18 = vpop.f32.mrf.mxu0 }
  0xe4   :  { %v258_v20 = vpop.f32.mrf.mxu0 }
  0xe5   :  { %v259_v21 = vadd.f32 %v258_v20, %v257_v18 }
  0xe6   :  { %v260_v22 = vpop.f32.mrf.mxu0 }
  0xe7   :  { %v197_v23 = vadd.f32 %v259_v21, %v218_v19 }
  0xe8   :  { %v261_v24 = vpop.f32.mrf.mxu0 }
  0xe9   :  { %v239_v25 = vpack.c.bf16 %v197_v23, %v197_v23  ;;  %v262_v26 = vadd.f32 %v261_v24, %v260_v22 }
  0xeb   :  { %212 = vst.msk [vmem:[%s368_s3] sm:$0xf] %vm211_vm0, %v239_v25  ;;  %v200_v27 = vadd.f32 %v262_v26, %v218_v19 }
  0xed   :  { %v240_v28 = vpack.c.bf16 %v200_v27, %v200_v27 }
  0xef   :  { %213 = vst.msk [vmem:[%s368_s3 + $0x4] sm:$0xf] %vm211_vm0, %v240_v28 }

// kernel: vae_latent_ctrl_forward.9
= control target key start
LH: loop header
LB: loop body
LE: loop exit
PB: predicated region body
PF: predicated region fallthrough
CT: control target
= control target key end

     0   :  { %s3140_s12 = smov 0   ;;  %s3988_s0 = inlined_call_operand.vmem [shape: bf16[2,2,2,512], index: 0, kind: input, shape index: {}]   ;;  %s3989_s1 = inlined_call_operand.vmem [shape: bf16[4,512,256], index: 1, kind: input, shape index: {}]   ;;  %s3990_s2 = inlined_call_operand.vmem [shape: f32[1,256], index: 2, kind: input, shape index: {}]   ;;  %s3991_s3 = inlined_call_operand.vmem [shape: bf16[2,1,1,256], index: 3, kind: output, shape index: {}]  }
   0x1 LB: > { %s2255_s13 = sadd.s32 4294967295, %s3117_s12   ;;  %p2259_p0 = scmp.ge.s32.totalorder %s3117_s12, 1  ;;  %s3117_s12 = sphi %s3140_s12, %s13_s12  }
   0x2   : > { %p136_p1 = scmp.lt.s32.totalorder %s3117_s12, 3 }
   0x4   : > { %p137_p2 = pnand %p2259_p0, %p136_p1 }
   0x5   : > { %p158_p3 = scmp.lt.s32.totalorder (!%p137_p2), %s2255_s13, 1 }
   0x6   : > { %140 = sbr.rel (%p137_p2) target bundleno = 480 (0x1e0), region = 32 }
   0xb   : > { %v2727_v0 = vld [vmem:[%s3989_s1 + $0x274] ss:$8 sps:$4 sm:$0xff]   ;;  %v2731_v2 = vld [vmem:[%s3989_s1 + $0x270] ss:$8 sps:$4 sm:$0xff]   ;;  %v2733_v4 = vld [vmem:[%s3989_s1 + $0x264] ss:$8 sps:$4 sm:$0xff]   ;;  %v308_v40 = vlaneseq }
   0xc   : > { %v2729_v1 = vld [vmem:[%s3989_s1 + $0x374] ss:$8 sps:$4 sm:$0xff]   ;;  %657 = vmatprep.subr.bf16.mxu0 %v2727_v0  ;;  %v2732_v3 = vld [vmem:[%s3989_s1 + $0x370] ss:$8 sps:$4 sm:$0xff]   ;;  %v2735_v5 = vld [vmem:[%s3989_s1 + $0x364] ss:$8 sps:$4 sm:$0xff]  }
   0xd   : > { %698 = vmatprep.subr.bf16.mxu1 %v2729_v1  ;;  %658 = vmatpush1.bf16.msra.mxu0 %v2731_v2  ;;  %v2737_v6 = vld [vmem:[%s3989_s1 + $0x260] ss:$8 sps:$4 sm:$0xff]   ;;  %v2739_v8 = vld [vmem:[%s3989_s1 + $0x254] ss:$8 sps:$4 sm:$0xff]   ;;  %v2743_v10 = vld [vmem:[%s3989_s1 + $0x250] ss:$8 sps:$4 sm:$0xff]  }
   0xe   : > { %699 = vmatpush1.bf16.msra.mxu1 %v2732_v3  ;;  %659 = vmatprep.subr.bf16.mxu0 %v2733_v4  ;;  %v2738_v7 = vld [vmem:[%s3989_s1 + $0x360] ss:$8 sps:$4 sm:$0xff]   ;;  %v2741_v9 = vld [vmem:[%s3989_s1 + $0x354] ss:$8 sps:$4 sm:$0xff]   ;;  %v2744_v11 = vld [vmem:[%s3989_s1 + $0x350] ss:$8 sps:$4 sm:$0xff]  }
   0xf   : > { %700 = vmatprep.subr.bf16.mxu1 %v2735_v5  ;;  %v2745_v12 = vld [vmem:[%s3989_s1 + $0x244] ss:$8 sps:$4 sm:$0xff]   ;;  %v2749_v14 = vld [vmem:[%s3989_s1 + $0x240] ss:$8 sps:$4 sm:$0xff]   ;;  %v2751_v16 = vld [vmem:[%s3989_s1 + $0x234] ss:$8 sps:$4 sm:$0xff]  }
  0x10   : > { %v2747_v13 = vld [vmem:[%s3989_s1 + $0x344] ss:$8 sps:$4 sm:$0xff]   ;;  %v2750_v15 = vld [vmem:[%s3989_s1 + $0x340] ss:$8 sps:$4 sm:$0xff]   ;;  %v2753_v17 = vld [vmem:[%s3989_s1 + $0x334] ss:$8 sps:$4 sm:$0xff]  }
  0x11   : > { %660 = vmatpush1.bf16.msra.mxu0 %v2737_v6  ;;  %v2755_v18 = vld [vmem:[%s3989_s1 + $0x230] ss:$8 sps:$4 sm:$0xff]   ;;  %v2757_v20 = vld [vmem:[%s3989_s1 + $0x224] ss:$8 sps:$4 sm:$0xff]   ;;  %v2761_v22 = vld [vmem:[%s3989_s1 + $0x220] ss:$8 sps:$4 sm:$0xff]  }
  0x12   : > { %701 = vmatpush1.bf16.msra.mxu1 %v2738_v7  ;;  %661 = vmatprep.subr.bf16.mxu0 %v2739_v8  ;;  %v2756_v19 = vld [vmem:[%s3989_s1 + $0x330] ss:$8 sps:$4 sm:$0xff]   ;;  %v2759_v21 = vld [vmem:[%s3989_s1 + $0x324] ss:$8 sps:$4 sm:$0xff]   ;;  %v2762_v23 = vld [vmem:[%s3989_s1 + $0x320] ss:$8 sps:$4 sm:$0xff]  }
  0x13   : > { %702 = vmatprep.subr.bf16.mxu1 %v2741_v9  ;;  %v2763_v24 = vld [vmem:[%s3989_s1 + $0x214] ss:$8 sps:$4 sm:$0xff]   ;;  %v2767_v26 = vld [vmem:[%s3989_s1 + $0x210] ss:$8 sps:$4 sm:$0xff]   ;;  %v2769_v28 = vld [vmem:[%s3989_s1 + $0x204] ss:$8 sps:$4 sm:$0xff]  }
  0x14   : > { %v2765_v25 = vld [vmem:[%s3989_s1 + $0x314] ss:$8 sps:$4 sm:$0xff]   ;;  %v2768_v27 = vld [vmem:[%s3989_s1 + $0x310] ss:$8 sps:$4 sm:$0xff]   ;;  %v2771_v29 = vld [vmem:[%s3989_s1 + $0x304] ss:$8 sps:$4 sm:$0xff]  }
  0x15   : > { %662 = vmatpush1.bf16.msra.mxu0 %v2743_v10  ;;  %v2773_v30 = vld [vmem:[%s3989_s1 + $0x200] ss:$8 sps:$4 sm:$0xff]   ;;  %v2775_v32 = vld [vmem:[%s3989_s1 + $0x2f4] ss:$8 sps:$4 sm:$0xff]   ;;  %v2779_v34 = vld [vmem:[%s3989_s1 + $0x2f0] ss:$8 sps:$4 sm:$0xff]  }
  0x16   : > { %703 = vmatpush1.bf16.msra.mxu1 %v2744_v11  ;;  %663 = vmatprep.subr.bf16.mxu0 %v2745_v12  ;;  %v2774_v31 = vld [vmem:[%s3989_s1 + $0x300] ss:$8 sps:$4 sm:$0xff]   ;;  %v2777_v33 = vld [vmem:[%s3989_s1 + $0x3f4] ss:$8 sps:$4 sm:$0xff]   ;;  %v2780_v35 = vld [vmem:[%s3989_s1 + $0x3f0] ss:$8 sps:$4 sm:$0xff]  }
  0x17   : > { %704 = vmatprep.subr.bf16.mxu1 %v2747_v13  ;;  %v2781_v36 = vld [vmem:[%s3989_s1 + $0x2e4] ss:$8 sps:$4 sm:$0xff]   ;;  %s3993_s13 = smov (!%p158_p3, %s2255_s13), 1  ;;  %v3119_v38 = vmov 1966171168   ;;  %v3281_v46 = vshrl.u32 %v308_v40, 7 }
  0x18   : > { %v2783_v37 = vld [vmem:[%s3989_s1 + $0x3e4] ss:$8 sps:$4 sm:$0xff]   ;;  %v306_v39 = vunpack.c.l.s4 %v3119_v38  ;;  %v2785_v41 = vld [vmem:[%s3989_s1 + $0x2e0] ss:$8 sps:$4 sm:$0xff]   ;;  %v2787_v43 = vld [vmem:[%s3989_s1 + $0x2d4] ss:$8 sps:$4 sm:$0xff]  }
  0x19   : > { %664 = vmatpush1.bf16.msra.mxu0 %v2749_v14  ;;  %v2786_v42 = vld [vmem:[%s3989_s1 + $0x3e0] ss:$8 sps:$4 sm:$0xff]   ;;  %v2789_v44 = vld [vmem:[%s3989_s1 + $0x3d4] ss:$8 sps:$4 sm:$0xff]   ;;  %s2260_s23 = sshll.u32 %s3993_s13, 3  ;;  %vm2192_vm0 = vcmask 1040384  }
  0x1a   : > { %705 = vmatpush1.bf16.msra.mxu1 %v2750_v15  ;;  %665 = vmatprep.subr.bf16.mxu0 %v2751_v16  ;;  %v307_v45 = vunpack.c.0.s8 %v306_v39  ;;  %v2791_v47 = vld [vmem:[%s3989_s1 + $0x2d0] ss:$8 sps:$4 sm:$0xff]   ;;  %v2793_v49 = vld [vmem:[%s3989_s1 + $0x2c4] ss:$8 sps:$4 sm:$0xff]   ;;  %s3295_s5 = scalar_lea.vmem %s3988_s0, %s2260_s23  ;;  %v2797_v53 = vld [vmem:[%s3989_s1 + $0x2c0] ss:$8 sps:$4 sm:$0xff]  }
  0x1b   : > { %706 = vmatprep.subr.bf16.mxu1 %v2753_v17  ;;  %v2792_v48 = vld [vmem:[%s3989_s1 + $0x3d0] ss:$8 sps:$4 sm:$0xff]   ;;  %v2795_v50 = vld [vmem:[%s3989_s1 + $0x3c4] ss:$8 sps:$4 sm:$0xff]   ;;  %v2798_v54 = vld [vmem:[%s3989_s1 + $0x3c0] ss:$8 sps:$4 sm:$0xff]  }
  0x1c   : > { %v3301_v51 = vsub.s32 %v307_v45, %v3281_v46  ;;  %v2326_v52 = vld.sshfl [vmem:[%s3295_s5] sm:$0x33 pattern:$0x75316420]  ;;  %v2799_v56 = vld [vmem:[%s3989_s1 + $0x2b4] ss:$8 sps:$4 sm:$0xff]  }
  0x1d   : > { %666 = vmatpush1.bf16.msra.mxu0 %v2755_v18  ;;  %v304_v55 = vcombine.high %v2326_v52, %v2326_v52  ;;  %v2801_v57 = vld [vmem:[%s3989_s1 + $0x3b4] ss:$8 sps:$4 sm:$0xff]   ;;  %v2803_v59 = vld [vmem:[%s3989_s1 + $0x2b0] ss:$8 sps:$4 sm:$0xff]   ;;  %v2805_v61 = vld [vmem:[%s3989_s1 + $0x2a4] ss:$8 sps:$4 sm:$0xff]  }
  0x1e   : > { %707 = vmatpush1.bf16.msra.mxu1 %v2756_v19  ;;  %667 = vmatprep.subr.bf16.mxu0 %v2757_v20  ;;  %v2804_v60 = vld [vmem:[%s3989_s1 + $0x3b0] ss:$8 sps:$4 sm:$0xff]   ;;  %v2807_v0 = vld [vmem:[%s3989_s1 + $0x3a4] ss:$8 sps:$4 sm:$0xff]   ;;  %v2809_v2 = vld [vmem:[%s3989_s1 + $0x2a0] ss:$8 sps:$4 sm:$0xff]   ;;  %v3345_v7 = vrot.slane %v2326_v52, %v3301_v51 }
  0x1f   : > { %708 = vmatprep.subr.bf16.mxu1 %v2759_v21  ;;  %v318_v58 = vrot.slane %v304_v55, %v3301_v51  ;;  %v2810_v3 = vld [vmem:[%s3989_s1 + $0x3a0] ss:$8 sps:$4 sm:$0xff]   ;;  %v2811_v4 = vld [vmem:[%s3989_s1 + $0x294] ss:$8 sps:$4 sm:$0xff]   ;;  %v2815_v6 = vld [vmem:[%s3989_s1 + $0x290] ss:$8 sps:$4 sm:$0xff]  }
  0x20   : > { %v2813_v5 = vld [vmem:[%s3989_s1 + $0x394] ss:$8 sps:$4 sm:$0xff]   ;;  %v2816_v8 = vld [vmem:[%s3989_s1 + $0x390] ss:$8 sps:$4 sm:$0xff]   ;;  %v2817_v9 = vld [vmem:[%s3989_s1 + $0x284] ss:$8 sps:$4 sm:$0xff]   ;;  %v3361_v12 = vcombine.high %v3345_v7, %v3345_v7 }
  0x21   : > { %668 = vmatpush1.bf16.msra.mxu0 %v2761_v22  ;;  %v325_v62 = vshrl.u32 %v318_v58, 16  ;;  %v320_v63 = vcombine.high %v318_v58, %v318_v58  ;;  %v2819_v10 = vld [vmem:[%s3989_s1 + $0x384] ss:$8 sps:$4 sm:$0xff]   ;;  %v2821_v11 = vld [vmem:[%s3989_s1 + $0x280] ss:$8 sps:$4 sm:$0xff]   ;;  %v322_v16 = vshrl.u32 %v3345_v7, 16 }
  0x22   : > { %709 = vmatpush1.bf16.msra.mxu1 %v2762_v23  ;;  %669 = vmatprep.subr.bf16.mxu0 %v2763_v24  ;;  %v2822_v13 = vld [vmem:[%s3989_s1 + $0x380] ss:$8 sps:$4 sm:$0xff]   ;;  %v2825_v14 = vld [vmem:[%s3989_s1 + $0x74] ss:$8 sps:$4 sm:$0xff]   ;;  %v328_v17 = vshrl.u32 %v3361_v12, 16  ;;  %s2261_s14 = sshll.u32 %s3993_s13, 1 }
  0x23   : > { %710 = vmatprep.subr.bf16.mxu1 %v2765_v25  ;;  %689 = vmatprep.mubr.bf16.mxu0 %v325_v62  ;;  %v331_v1 = vshrl.u32 %v320_v63, 16  ;;  %v2828_v15 = vld [vmem:[%s3989_s1 + $0x174] ss:$8 sps:$4 sm:$0xff]   ;;  %v2823_v18 = vld [vmem:[%s3989_s1 + $0x70] ss:$8 sps:$4 sm:$0xff]   ;;  %vm2195_vm2 = vcmask 1041409   ;;  %s165_s17 = scalar_lea.vmem %s3991_s3, %s2261_s14 }
  0x24   : > { %v2826_v19 = vld [vmem:[%s3989_s1 + $0x170] ss:$8 sps:$4 sm:$0xff]   ;;  %v2831_v20 = vld [vmem:[%s3989_s1 + $0x64] ss:$8 sps:$4 sm:$0xff]   ;;  %v2829_v22 = vld [vmem:[%s3989_s1 + $0x60] ss:$8 sps:$4 sm:$0xff]  }
  0x25   : > { %670 = vmatpush1.bf16.msra.mxu0 %v2767_v26  ;;  %730 = vmatprep.mubr.bf16.mxu1 %v331_v1  ;;  %v2834_v21 = vld [vmem:[%s3989_s1 + $0x164] ss:$8 sps:$4 sm:$0xff]   ;;  %v2832_v23 = vld [vmem:[%s3989_s1 + $0x160] ss:$8 sps:$4 sm:$0xff]   ;;  %v2837_v24 = vld [vmem:[%s3989_s1 + $0x54] ss:$8 sps:$4 sm:$0xff]  }
  0x26   : > { %711 = vmatpush1.bf16.msra.mxu1 %v2768_v27  ;;  %671 = vmatprep.subr.bf16.mxu0 %v2769_v28  ;;  %v2840_v25 = vld [vmem:[%s3989_s1 + $0x154] ss:$8 sps:$4 sm:$0xff]   ;;  %v2835_v26 = vld [vmem:[%s3989_s1 + $0x50] ss:$8 sps:$4 sm:$0xff]   ;;  %v2843_v28 = vld [vmem:[%s3989_s1 + $0x44] ss:$8 sps:$4 sm:$0xff]  }
  0x27   : > { %712 = vmatprep.subr.bf16.mxu1 %v2771_v29  ;;  %v2838_v27 = vld [vmem:[%s3989_s1 + $0x150] ss:$8 sps:$4 sm:$0xff]   ;;  %v2846_v29 = vld [vmem:[%s3989_s1 + $0x144] ss:$8 sps:$4 sm:$0xff]   ;;  %v2853_v38 = vld [vmem:[%s3989_s1 + $0x20] ss:$8 sps:$4 sm:$0xff]  }
  0x28   : > { %v2856_v39 = vld [vmem:[%s3989_s1 + $0x120] ss:$8 sps:$4 sm:$0xff]   ;;  %v2861_v40 = vld [vmem:[%s3989_s1 + $0x14] ss:$8 sps:$4 sm:$0xff]   ;;  %v2870_v45 = vld [vmem:[%s3989_s1 + $0x104] ss:$8 sps:$4 sm:$0xff]  }
  0x29   : > { %672 = vmatpush1.bf16.msra.mxu0 %v2773_v30  ;;  %v2841_v30 = vld [vmem:[%s3989_s1 + $0x40] ss:$8 sps:$4 sm:$0xff]   ;;  %v2871_v52 = vld [vmem:[%s3989_s1 + $0xf0] ss:$8 sps:$4 sm:$0xff]   ;;  %v2882_v55 = vld [vmem:[%s3989_s1 + $0x1e4] ss:$8 sps:$4 sm:$0xff]  }
  0x2a   : > { %713 = vmatpush1.bf16.msra.mxu1 %v2774_v31  ;;  %673 = vmatprep.subr.bf16.mxu0 %v2775_v32  ;;  %v2844_v31 = vld [vmem:[%s3989_s1 + $0x140] ss:$8 sps:$4 sm:$0xff]   ;;  %v2849_v32 = vld [vmem:[%s3989_s1 + $0x34] ss:$8 sps:$4 sm:$0xff]   ;;  %v2891_v62 = vld [vmem:[%s3989_s1 + $0xc4] ss:$8 sps:$4 sm:$0xff]  }
  0x2b   : > { %714 = vmatprep.subr.bf16.mxu1 %v2777_v33  ;;  %v2852_v33 = vld [vmem:[%s3989_s1 + $0x134] ss:$8 sps:$4 sm:$0xff]   ;;  %v2892_v1 = vld [vmem:[%s3989_s1 + $0x1c0] ss:$8 sps:$4 sm:$0xff]   ;;  %vm2193_vm1 = vsmask.f32 256 }
  0x2c   : > { %vm2196_vm3 = vsmask.f32 1280  ;;  %vm2194_vm4 = vmand %vm2192_vm0, %vm2193_vm1 }
  0x2d   : > { %674 = vmatpush2.bf16.msra.mxu0 %v2779_v34  ;;  %v2847_v34 = vld [vmem:[%s3989_s1 + $0x30] ss:$8 sps:$4 sm:$0xff]   ;;  %vm2197_vm5 = vmand %vm2195_vm2, %vm2196_vm3 }
  0x2e   : > { %715 = vmatpush2.bf16.msra.mxu1 %v2780_v35  ;;  %675 = vmatprep.subr.bf16.mxu0 %v2781_v36  ;;  %v2850_v35 = vld [vmem:[%s3989_s1 + $0x130] ss:$8 sps:$4 sm:$0xff]   ;;  %v2855_v36 = vld [vmem:[%s3989_s1 + $0x24] ss:$8 sps:$4 sm:$0xff]   ;;  %vm2198_vm6 = vmor %vm2197_vm5, %vm2194_vm4 }
  0x2f   : > { %716 = vmatprep.subr.bf16.mxu1 %v2783_v37  ;;  %v2858_v37 = vld [vmem:[%s3989_s1 + $0x124] ss:$8 sps:$4 sm:$0xff]  }
  0x31   : > { %676 = vmatpush2.bf16.msra.mxu0 %v2785_v41  ;;  %v2864_v41 = vld [vmem:[%s3989_s1 + $0x114] ss:$8 sps:$4 sm:$0xff]  }
  0x32   : > { %717 = vmatpush2.bf16.msra.mxu1 %v2786_v42  ;;  %677 = vmatprep.subr.bf16.mxu0 %v2787_v43  ;;  %v2859_v42 = vld [vmem:[%s3989_s1 + $0x10] ss:$8 sps:$4 sm:$0xff]  }
  0x33   : > { %718 = vmatprep.subr.bf16.mxu1 %v2789_v44  ;;  %v2862_v43 = vld [vmem:[%s3989_s1 + $0x110] ss:$8 sps:$4 sm:$0xff]   ;;  %v2867_v44 = vld [vmem:[%s3989_s1 + $0x4] ss:$8 sps:$4 sm:$0xff]  }
  0x35   : > { %678 = vmatpush2.bf16.msra.mxu0 %v2791_v47  ;;  %v2865_v47 = vld [vmem:[%s3989_s1] ss:$8 sps:$4 sm:$0xff]  }
  0x36   : > { %719 = vmatpush2.bf16.msra.mxu1 %v2792_v48  ;;  %679 = vmatprep.subr.bf16.mxu0 %v2793_v49  ;;  %v2868_v48 = vld [vmem:[%s3989_s1 + $0x100] ss:$8 sps:$4 sm:$0xff]   ;;  %v2873_v49 = vld [vmem:[%s3989_s1 + $0xf4] ss:$8 sps:$4 sm:$0xff]  }
  0x37   : > { %720 = vmatprep.subr.bf16.mxu1 %v2795_v50  ;;  %v2876_v50 = vld [vmem:[%s3989_s1 + $0x1f4] ss:$8 sps:$4 sm:$0xff]  }
  0x39   : > { %680 = vmatpush2.bf16.msra.mxu0 %v2797_v53  ;;  %v2874_v53 = vld [vmem:[%s3989_s1 + $0x1f0] ss:$8 sps:$4 sm:$0xff]  }
  0x3a   : > { %721 = vmatpush2.bf16.msra.mxu1 %v2798_v54  ;;  %681 = vmatprep.subr.bf16.mxu0 %v2799_v56  ;;  %v2879_v54 = vld [vmem:[%s3989_s1 + $0xe4] ss:$8 sps:$4 sm:$0xff]   ;;  %v2877_v56 = vld [vmem:[%s3989_s1 + $0xe0] ss:$8 sps:$4 sm:$0xff]  }
  0x3b   : > { %722 = vmatprep.subr.bf16.mxu1 %v2801_v57  ;;  %v2880_v57 = vld [vmem:[%s3989_s1 + $0x1e0] ss:$8 sps:$4 sm:$0xff]  }
  0x3d   : > { %682 = vmatpush2.bf16.msra.mxu0 %v2803_v59  ;;  %v2888_v59 = vld [vmem:[%s3989_s1 + $0x1d4] ss:$8 sps:$4 sm:$0xff]  }
  0x3e   : > { %723 = vmatpush2.bf16.msra.mxu1 %v2804_v60  ;;  %683 = vmatprep.subr.bf16.mxu0 %v2805_v61  ;;  %v2883_v60 = vld [vmem:[%s3989_s1 + $0xd0] ss:$8 sps:$4 sm:$0xff]  }
  0x3f   : > { %724 = vmatprep.subr.bf16.mxu1 %v2807_v0  ;;  %v2886_v61 = vld [vmem:[%s3989_s1 + $0x1d0] ss:$8 sps:$4 sm:$0xff]   ;;  %v2889_v0 = vld [vmem:[%s3989_s1 + $0xc0] ss:$8 sps:$4 sm:$0xff]  }
  0x41   : > { %684 = vmatpush2.bf16.msra.mxu0 %v2809_v2  ;;  %v2897_v2 = vld [vmem:[%s3989_s1 + $0xb4] ss:$8 sps:$4 sm:$0xff]  }
  0x42   : > { %725 = vmatpush2.bf16.msra.mxu1 %v2810_v3  ;;  %685 = vmatprep.subr.bf16.mxu0 %v2811_v4  ;;  %v2900_v3 = vld [vmem:[%s3989_s1 + $0x1b4] ss:$8 sps:$4 sm:$0xff]   ;;  %v2895_v4 = vld [vmem:[%s3989_s1 + $0xb0] ss:$8 sps:$4 sm:$0xff]  }
  0x43   : > { %726 = vmatprep.subr.bf16.mxu1 %v2813_v5  ;;  %v2898_v5 = vld [vmem:[%s3989_s1 + $0x1b0] ss:$8 sps:$4 sm:$0xff]  }
  0x45   : > { %686 = vmatpush2.bf16.msra.mxu0 %v2815_v6  ;;  %v2903_v6 = vld [vmem:[%s3989_s1 + $0xa4] ss:$8 sps:$4 sm:$0xff]  }
  0x46   : > { %727 = vmatpush2.bf16.msra.mxu1 %v2816_v8  ;;  %687 = vmatprep.subr.bf16.mxu0 %v2817_v9  ;;  %v2906_v8 = vld [vmem:[%s3989_s1 + $0x1a4] ss:$8 sps:$4 sm:$0xff]   ;;  %v2901_v9 = vld [vmem:[%s3989_s1 + $0xa0] ss:$8 sps:$4 sm:$0xff]  }
  0x47   : > { %728 = vmatprep.subr.bf16.mxu1 %v2819_v10  ;;  %v2904_v10 = vld [vmem:[%s3989_s1 + $0x1a0] ss:$8 sps:$4 sm:$0xff]  }
  0x49   : > { %688 = vmatpush2.bf16.msra.mxu0 %v2821_v11  ;;  %v2909_v11 = vld [vmem:[%s3989_s1 + $0x94] ss:$8 sps:$4 sm:$0xff]  }
  0x4a   : > { %729 = vmatpush2.bf16.msra.mxu1 %v2822_v13  ;;  %1063 = vmatprep.subr.bf16.mxu0 %v2825_v14  ;;  %v2912_v13 = vld [vmem:[%s3989_s1 + $0x194] ss:$8 sps:$4 sm:$0xff]   ;;  %v2907_v14 = vld [vmem:[%s3989_s1 + $0x90] ss:$8 sps:$4 sm:$0xff]  }
  0x4b   : > { %1104 = vmatprep.subr.bf16.mxu1 %v2828_v15  ;;  %v2910_v15 = vld [vmem:[%s3989_s1 + $0x190] ss:$8 sps:$4 sm:$0xff]  }
  0x4c   : > { %690 = vmatmul.mubr.bf16.vlgmr.msra.gmra.mxu0 %v322_v16  ;;  %v2915_v16 = vld [vmem:[%s3989_s1 + $0x84] ss:$8 sps:$4 sm:$0xff]  }
  0x4d   : > { %731 = vmatmul.mubr.bf16.vlgmr.msra.gmra.mxu1 %v328_v17  ;;  %1064 = vmatpush1.bf16.msra.mxu0 %v2823_v18  ;;  %v2918_v17 = vld [vmem:[%s3989_s1 + $0x184] ss:$8 sps:$4 sm:$0xff]   ;;  %v2913_v18 = vld [vmem:[%s3989_s1 + $0x80] ss:$8 sps:$4 sm:$0xff]  }
  0x4e   : > { %1105 = vmatpush1.bf16.msra.mxu1 %v2826_v19  ;;  %1065 = vmatprep.subr.bf16.mxu0 %v2831_v20  ;;  %v2916_v19 = vld [vmem:[%s3989_s1 + $0x180] ss:$8 sps:$4 sm:$0xff]   ;;  %v2921_v20 = vld [vmem:[%s3989_s1 + $0x474] ss:$8 sps:$4 sm:$0xff]  }
  0x4f   : > { %1106 = vmatprep.subr.bf16.mxu1 %v2834_v21  ;;  %1095 = vmatprep.mubr.bf16.mxu0 %v318_v58  ;;  %v2885_v58 = vld [vmem:[%s3989_s1 + $0xd4] ss:$8 sps:$4 sm:$0xff]  }
  0x50   : > { %1136 = vmatprep.mubr.bf16.mxu1 %v320_v63  ;;  %v2894_v63 = vld [vmem:[%s3989_s1 + $0x1c4] ss:$8 sps:$4 sm:$0xff]   ;;  %v2924_v21 = vld [vmem:[%s3989_s1 + $0x574] ss:$8 sps:$4 sm:$0xff]  }
  0x51   : > { %1066 = vmatpush1.bf16.msra.mxu0 %v2829_v22  ;;  %v2919_v22 = vld [vmem:[%s3989_s1 + $0x470] ss:$8 sps:$4 sm:$0xff]  }
  0x52   : > { %1107 = vmatpush1.bf16.msra.mxu1 %v2832_v23  ;;  %1067 = vmatprep.subr.bf16.mxu0 %v2837_v24  ;;  %v2922_v23 = vld [vmem:[%s3989_s1 + $0x570] ss:$8 sps:$4 sm:$0xff]   ;;  %v2927_v24 = vld [vmem:[%s3989_s1 + $0x464] ss:$8 sps:$4 sm:$0xff]  }
  0x53   : > { %1108 = vmatprep.subr.bf16.mxu1 %v2840_v25  ;;  %v2930_v25 = vld [vmem:[%s3989_s1 + $0x564] ss:$8 sps:$4 sm:$0xff]  }
  0x55   : > { %1068 = vmatpush1.bf16.msra.mxu0 %v2835_v26  ;;  %v3579_v26 = vld.sshfl [vmem:[%s3295_s5 + $0x4] sm:$0x33 pattern:$0x75316420] }
  0x56   : > { %1109 = vmatpush1.bf16.msra.mxu1 %v2838_v27  ;;  %1069 = vmatprep.subr.bf16.mxu0 %v2843_v28  ;;  %v1220_v27 = vcombine.high %v3579_v26, %v3579_v26  ;;  %v2925_v28 = vld [vmem:[%s3989_s1 + $0x460] ss:$8 sps:$4 sm:$0xff]  }
  0x57   : > { %1110 = vmatprep.subr.bf16.mxu1 %v2846_v29  ;;  %v2928_v29 = vld [vmem:[%s3989_s1 + $0x560] ss:$8 sps:$4 sm:$0xff]  }
  0x59   : > { %1070 = vmatpush1.bf16.msra.mxu0 %v2841_v30  ;;  %v2933_v30 = vld [vmem:[%s3989_s1 + $0x454] ss:$8 sps:$4 sm:$0xff]  }
  0x5a   : > { %1111 = vmatpush1.bf16.msra.mxu1 %v2844_v31  ;;  %1071 = vmatprep.subr.bf16.mxu0 %v2849_v32  ;;  %v3595_v31 = vrot.slane %v1220_v27, %v3301_v51  ;;  %v2931_v32 = vld [vmem:[%s3989_s1 + $0x450] ss:$8 sps:$4 sm:$0xff]   ;;  %v3012_v27 = vld [vmem:[%s3989_s1 + $0x580] ss:$8 sps:$4 sm:$0xff]  }
  0x5b   : > { %1112 = vmatprep.subr.bf16.mxu1 %v2852_v33  ;;  %v2934_v33 = vld [vmem:[%s3989_s1 + $0x550] ss:$8 sps:$4 sm:$0xff]  }
  0x5d   : > { %1072 = vmatpush1.bf16.msra.mxu0 %v2847_v34  ;;  %v2939_v34 = vld [vmem:[%s3989_s1 + $0x444] ss:$8 sps:$4 sm:$0xff]  }
  0x5e   : > { %1113 = vmatpush1.bf16.msra.mxu1 %v2850_v35  ;;  %1073 = vmatprep.subr.bf16.mxu0 %v2855_v36  ;;  %v2942_v35 = vld [vmem:[%s3989_s1 + $0x544] ss:$8 sps:$4 sm:$0xff]   ;;  %v2937_v36 = vld [vmem:[%s3989_s1 + $0x440] ss:$8 sps:$4 sm:$0xff]  }
  0x5f   : > { %1114 = vmatprep.subr.bf16.mxu1 %v2858_v37  ;;  %v2940_v37 = vld [vmem:[%s3989_s1 + $0x540] ss:$8 sps:$4 sm:$0xff]  }
  0x61   : > { %1074 = vmatpush1.bf16.msra.mxu0 %v2853_v38  ;;  %v2945_v38 = vld [vmem:[%s3989_s1 + $0x434] ss:$8 sps:$4 sm:$0xff]  }
  0x62   : > { %1115 = vmatpush1.bf16.msra.mxu1 %v2856_v39  ;;  %1075 = vmatprep.subr.bf16.mxu0 %v2861_v40  ;;  %v2948_v39 = vld [vmem:[%s3989_s1 + $0x534] ss:$8 sps:$4 sm:$0xff]   ;;  %v2943_v40 = vld [vmem:[%s3989_s1 + $0x430] ss:$8 sps:$4 sm:$0xff]  }
  0x63   : > { %1116 = vmatprep.subr.bf16.mxu1 %v2864_v41  ;;  %v2946_v41 = vld [vmem:[%s3989_s1 + $0x530] ss:$8 sps:$4 sm:$0xff]  }
  0x65   : > { %1076 = vmatpush1.bf16.msra.mxu0 %v2859_v42  ;;  %v2951_v42 = vld [vmem:[%s3989_s1 + $0x424] ss:$8 sps:$4 sm:$0xff]  }
  0x66   : > { %1117 = vmatpush1.bf16.msra.mxu1 %v2862_v43  ;;  %1077 = vmatprep.subr.bf16.mxu0 %v2867_v44  ;;  %v2954_v43 = vld [vmem:[%s3989_s1 + $0x524] ss:$8 sps:$4 sm:$0xff]   ;;  %v2949_v44 = vld [vmem:[%s3989_s1 + $0x420] ss:$8 sps:$4 sm:$0xff]  }
  0x67   : > { %1118 = vmatprep.subr.bf16.mxu1 %v2870_v45  ;;  %v2952_v45 = vld [vmem:[%s3989_s1 + $0x520] ss:$8 sps:$4 sm:$0xff]  }
  0x69   : > { %1078 = vmatpush1.bf16.msra.mxu0 %v2865_v47  ;;  %v2957_v47 = vld [vmem:[%s3989_s1 + $0x414] ss:$8 sps:$4 sm:$0xff]  }
  0x6a   : > { %1119 = vmatpush1.bf16.msra.mxu1 %v2868_v48  ;;  %1079 = vmatprep.subr.bf16.mxu0 %v2873_v49  ;;  %v2960_v48 = vld [vmem:[%s3989_s1 + $0x514] ss:$8 sps:$4 sm:$0xff]   ;;  %v2955_v49 = vld [vmem:[%s3989_s1 + $0x410] ss:$8 sps:$4 sm:$0xff]  }
  0x6b   : > { %1120 = vmatprep.subr.bf16.mxu1 %v2876_v50  ;;  %v2958_v50 = vld [vmem:[%s3989_s1 + $0x510] ss:$8 sps:$4 sm:$0xff]  }
  0x6d   : > { %1080 = vmatpush2.bf16.msra.mxu0 %v2871_v52  ;;  %v2963_v52 = vld [vmem:[%s3989_s1 + $0x404] ss:$8 sps:$4 sm:$0xff]  }
  0x6e   : > { %1121 = vmatpush2.bf16.msra.mxu1 %v2874_v53  ;;  %1081 = vmatprep.subr.bf16.mxu0 %v2879_v54  ;;  %v2966_v53 = vld [vmem:[%s3989_s1 + $0x504] ss:$8 sps:$4 sm:$0xff]   ;;  %v2961_v54 = vld [vmem:[%s3989_s1 + $0x400] ss:$8 sps:$4 sm:$0xff]  }
  0x6f   : > { %1122 = vmatprep.subr.bf16.mxu1 %v2882_v55  ;;  %v2964_v55 = vld [vmem:[%s3989_s1 + $0x500] ss:$8 sps:$4 sm:$0xff]  }
  0x71   : > { %1082 = vmatpush2.bf16.msra.mxu0 %v2877_v56  ;;  %v2969_v56 = vld [vmem:[%s3989_s1 + $0x4f4] ss:$8 sps:$4 sm:$0xff]  }
  0x72   : > { %1123 = vmatpush2.bf16.msra.mxu1 %v2880_v57  ;;  %1083 = vmatprep.subr.bf16.mxu0 %v2885_v58  ;;  %v2972_v57 = vld [vmem:[%s3989_s1 + $0x5f4] ss:$8 sps:$4 sm:$0xff]   ;;  %v2967_v58 = vld [vmem:[%s3989_s1 + $0x4f0] ss:$8 sps:$4 sm:$0xff]  }
  0x73   : > { %1124 = vmatprep.subr.bf16.mxu1 %v2888_v59  ;;  %v2970_v59 = vld [vmem:[%s3989_s1 + $0x5f0] ss:$8 sps:$4 sm:$0xff]  }
  0x75   : > { %1084 = vmatpush2.bf16.msra.mxu0 %v2883_v60  ;;  %v2975_v60 = vld [vmem:[%s3989_s1 + $0x4e4] ss:$8 sps:$4 sm:$0xff]  }
  0x76   : > { %1125 = vmatpush2.bf16.msra.mxu1 %v2886_v61  ;;  %1085 = vmatprep.subr.bf16.mxu0 %v2891_v62  ;;  %v2978_v61 = vld [vmem:[%s3989_s1 + $0x5e4] ss:$8 sps:$4 sm:$0xff]   ;;  %v2973_v62 = vld [vmem:[%s3989_s1 + $0x4e0] ss:$8 sps:$4 sm:$0xff]  }
  0x77   : > { %1126 = vmatprep.subr.bf16.mxu1 %v2894_v63  ;;  %v2976_v63 = vld [vmem:[%s3989_s1 + $0x5e0] ss:$8 sps:$4 sm:$0xff]  }
  0x79   : > { %1086 = vmatpush2.bf16.msra.mxu0 %v2889_v0  ;;  %v2981_v0 = vld [vmem:[%s3989_s1 + $0x4d4] ss:$8 sps:$4 sm:$0xff]  }
  0x7a   : > { %1127 = vmatpush2.bf16.msra.mxu1 %v2892_v1  ;;  %1087 = vmatprep.subr.bf16.mxu0 %v2897_v2  ;;  %v2984_v1 = vld [vmem:[%s3989_s1 + $0x5d4] ss:$8 sps:$4 sm:$0xff]   ;;  %v2979_v2 = vld [vmem:[%s3989_s1 + $0x4d0] ss:$8 sps:$4 sm:$0xff]  }
  0x7b   : > { %1128 = vmatprep.subr.bf16.mxu1 %v2900_v3  ;;  %v2982_v3 = vld [vmem:[%s3989_s1 + $0x5d0] ss:$8 sps:$4 sm:$0xff]  }
  0x7d   : > { %1088 = vmatpush2.bf16.msra.mxu0 %v2895_v4  ;;  %v2987_v4 = vld [vmem:[%s3989_s1 + $0x4c4] ss:$8 sps:$4 sm:$0xff]  }
  0x7e   : > { %1129 = vmatpush2.bf16.msra.mxu1 %v2898_v5  ;;  %1089 = vmatprep.subr.bf16.mxu0 %v2903_v6  ;;  %v2990_v5 = vld [vmem:[%s3989_s1 + $0x5c4] ss:$8 sps:$4 sm:$0xff]   ;;  %v2985_v6 = vld [vmem:[%s3989_s1 + $0x4c0] ss:$8 sps:$4 sm:$0xff]  }
  0x7f   : > { %1130 = vmatprep.subr.bf16.mxu1 %v2906_v8  ;;  %v2988_v8 = vld [vmem:[%s3989_s1 + $0x5c0] ss:$8 sps:$4 sm:$0xff]  }
  0x81   : > { %1090 = vmatpush2.bf16.msra.mxu0 %v2901_v9  ;;  %v2993_v9 = vld [vmem:[%s3989_s1 + $0x4b4] ss:$8 sps:$4 sm:$0xff]  }
  0x82   : > { %1131 = vmatpush2.bf16.msra.mxu1 %v2904_v10  ;;  %1091 = vmatprep.subr.bf16.mxu0 %v2909_v11  ;;  %v2996_v10 = vld [vmem:[%s3989_s1 + $0x5b4] ss:$8 sps:$4 sm:$0xff]   ;;  %v2991_v11 = vld [vmem:[%s3989_s1 + $0x4b0] ss:$8 sps:$4 sm:$0xff]  }
  0x83   : > { %1132 = vmatprep.subr.bf16.mxu1 %v2912_v13  ;;  %v2994_v13 = vld [vmem:[%s3989_s1 + $0x5b0] ss:$8 sps:$4 sm:$0xff]  }
  0x85   : > { %1092 = vmatpush2.bf16.msra.mxu0 %v2907_v14  ;;  %v2999_v14 = vld [vmem:[%s3989_s1 + $0x4a4] ss:$8 sps:$4 sm:$0xff]  }
  0x86   : > { %1133 = vmatpush2.bf16.msra.mxu1 %v2910_v15  ;;  %1093 = vmatprep.subr.bf16.mxu0 %v2915_v16  ;;  %v3002_v15 = vld [vmem:[%s3989_s1 + $0x5a4] ss:$8 sps:$4 sm:$0xff]   ;;  %v2997_v16 = vld [vmem:[%s3989_s1 + $0x4a0] ss:$8 sps:$4 sm:$0xff]  }
  0x87   : > { %1134 = vmatprep.subr.bf16.mxu1 %v2918_v17  ;;  %v3000_v17 = vld [vmem:[%s3989_s1 + $0x5a0] ss:$8 sps:$4 sm:$0xff]  }
  0x89   : > { %1094 = vmatpush2.bf16.msra.mxu0 %v2913_v18  ;;  %v3005_v18 = vld [vmem:[%s3989_s1 + $0x494] ss:$8 sps:$4 sm:$0xff]  }
  0x8a   : > { %1135 = vmatpush2.bf16.msra.mxu1 %v2916_v19  ;;  %1561 = vmatprep.subr.bf16.mxu0 %v2921_v20  ;;  %v3008_v19 = vld [vmem:[%s3989_s1 + $0x594] ss:$8 sps:$4 sm:$0xff]   ;;  %v3003_v20 = vld [vmem:[%s3989_s1 + $0x490] ss:$8 sps:$4 sm:$0xff]  }
  0x8b   : > { %1602 = vmatprep.subr.bf16.mxu1 %v2924_v21  ;;  %v3006_v21 = vld [vmem:[%s3989_s1 + $0x590] ss:$8 sps:$4 sm:$0xff]  }
  0x8c   : > { %1096 = vmatmul.mubr.bf16.vlgmr.msra.gmra.mxu0 %v3345_v7  ;;  %v2936_v7 = vld [vmem:[%s3989_s1 + $0x554] ss:$8 sps:$4 sm:$0xff]  }
  0x8d   : > { %1137 = vmatmul.mubr.bf16.vlgmr.msra.gmra.mxu1 %v3361_v12  ;;  %1562 = vmatpush1.bf16.msra.mxu0 %v2919_v22  ;;  %v3603_v12 = vcombine.high %v3595_v31, %v3595_v31  ;;  %v3011_v22 = vld [vmem:[%s3989_s1 + $0x484] ss:$8 sps:$4 sm:$0xff]  }
  0x8e   : > { %1603 = vmatpush1.bf16.msra.mxu1 %v2922_v23  ;;  %1563 = vmatprep.subr.bf16.mxu0 %v2927_v24  ;;  %v3014_v23 = vld [vmem:[%s3989_s1 + $0x584] ss:$8 sps:$4 sm:$0xff]   ;;  %v3764_v24 = vrot.slane %v3579_v26, %v3301_v51  ;;  %v3020_v26 = vld [vmem:[%s3989_s1 + $0x774] ss:$8 sps:$4 sm:$0xff]  }
  0x8f   : > { %1604 = vmatprep.subr.bf16.mxu1 %v2930_v25  ;;  %1593 = vmatprep.mubr.bf16.mxu0 %v3595_v31  ;;  %v3009_v25 = vld [vmem:[%s3989_s1 + $0x480] ss:$8 sps:$4 sm:$0xff]  }
  0x90   : > { %1634 = vmatprep.mubr.bf16.mxu1 %v3603_v12 }
  0x91   : > { %1564 = vmatpush1.bf16.msra.mxu0 %v2925_v28  ;;  %v3017_v28 = vld [vmem:[%s3989_s1 + $0x674] ss:$8 sps:$4 sm:$0xff]  }
  0x92   : > { %1605 = vmatpush1.bf16.msra.mxu1 %v2928_v29  ;;  %1565 = vmatprep.subr.bf16.mxu0 %v2933_v30  ;;  %v3780_v29 = vcombine.high %v3764_v24, %v3764_v24  ;;  %v3015_v30 = vld [vmem:[%s3989_s1 + $0x670] ss:$8 sps:$4 sm:$0xff]  }
  0x93   : > { %1606 = vmatprep.subr.bf16.mxu1 %v2936_v7  ;;  %v3018_v7 = vld [vmem:[%s3989_s1 + $0x770] ss:$8 sps:$4 sm:$0xff]  }
  0x95   : > { %1566 = vmatpush1.bf16.msra.mxu0 %v2931_v32  ;;  %v3023_v32 = vld [vmem:[%s3989_s1 + $0x664] ss:$8 sps:$4 sm:$0xff]  }
  0x96   : > { %1607 = vmatpush1.bf16.msra.mxu1 %v2934_v33  ;;  %1567 = vmatprep.subr.bf16.mxu0 %v2939_v34  ;;  %v3026_v33 = vld [vmem:[%s3989_s1 + $0x764] ss:$8 sps:$4 sm:$0xff]   ;;  %v1740_v34 = vshrl.u32 %v3595_v31, 16  ;;  %v3029_v31 = vld [vmem:[%s3989_s1 + $0x654] ss:$8 sps:$4 sm:$0xff]  }
  0x97   : > { %1608 = vmatprep.subr.bf16.mxu1 %v2942_v35  ;;  %v1746_v35 = vshrl.u32 %v3603_v12, 16  ;;  %v3032_v12 = vld [vmem:[%s3989_s1 + $0x754] ss:$8 sps:$4 sm:$0xff]  }
  0x99   : > { %1568 = vmatpush1.bf16.msra.mxu0 %v2937_v36  ;;  %v3021_v36 = vld [vmem:[%s3989_s1 + $0x660] ss:$8 sps:$4 sm:$0xff]  }
  0x9a   : > { %1609 = vmatpush1.bf16.msra.mxu1 %v2940_v37  ;;  %1569 = vmatprep.subr.bf16.mxu0 %v2945_v38  ;;  %v3024_v37 = vld [vmem:[%s3989_s1 + $0x760] ss:$8 sps:$4 sm:$0xff]   ;;  %v3027_v38 = vld [vmem:[%s3989_s1 + $0x650] ss:$8 sps:$4 sm:$0xff]  }
  0x9b   : > { %1610 = vmatprep.subr.bf16.mxu1 %v2948_v39  ;;  %v3030_v39 = vld [vmem:[%s3989_s1 + $0x750] ss:$8 sps:$4 sm:$0xff]  }
  0x9d   : > { %1570 = vmatpush1.bf16.msra.mxu0 %v2943_v40  ;;  %v3035_v40 = vld [vmem:[%s3989_s1 + $0x644] ss:$8 sps:$4 sm:$0xff]  }
  0x9e   : > { %1611 = vmatpush1.bf16.msra.mxu1 %v2946_v41  ;;  %1571 = vmatprep.subr.bf16.mxu0 %v2951_v42  ;;  %v3038_v41 = vld [vmem:[%s3989_s1 + $0x744] ss:$8 sps:$4 sm:$0xff]   ;;  %v3033_v42 = vld [vmem:[%s3989_s1 + $0x640] ss:$8 sps:$4 sm:$0xff]  }
  0x9f   : > { %1612 = vmatprep.subr.bf16.mxu1 %v2954_v43  ;;  %v3036_v43 = vld [vmem:[%s3989_s1 + $0x740] ss:$8 sps:$4 sm:$0xff]  }
  0xa1   : > { %1572 = vmatpush1.bf16.msra.mxu0 %v2949_v44  ;;  %v3041_v44 = vld [vmem:[%s3989_s1 + $0x634] ss:$8 sps:$4 sm:$0xff]  }
  0xa2   : > { %1613 = vmatpush1.bf16.msra.mxu1 %v2952_v45  ;;  %1573 = vmatprep.subr.bf16.mxu0 %v2957_v47  ;;  %v3044_v45 = vld [vmem:[%s3989_s1 + $0x734] ss:$8 sps:$4 sm:$0xff]   ;;  %v3039_v47 = vld [vmem:[%s3989_s1 + $0x630] ss:$8 sps:$4 sm:$0xff]  }
  0xa3   : > { %1614 = vmatprep.subr.bf16.mxu1 %v2960_v48  ;;  %v3042_v48 = vld [vmem:[%s3989_s1 + $0x730] ss:$8 sps:$4 sm:$0xff]  }
  0xa5   : > { %1574 = vmatpush1.bf16.msra.mxu0 %v2955_v49  ;;  %v3047_v49 = vld [vmem:[%s3989_s1 + $0x624] ss:$8 sps:$4 sm:$0xff]  }
  0xa6   : > { %1615 = vmatpush1.bf16.msra.mxu1 %v2958_v50  ;;  %1575 = vmatprep.subr.bf16.mxu0 %v2963_v52  ;;  %v3050_v50 = vld [vmem:[%s3989_s1 + $0x724] ss:$8 sps:$4 sm:$0xff]   ;;  %v3045_v52 = vld [vmem:[%s3989_s1 + $0x620] ss:$8 sps:$4 sm:$0xff]  }
  0xa7   : > { %1616 = vmatprep.subr.bf16.mxu1 %v2966_v53  ;;  %v3048_v53 = vld [vmem:[%s3989_s1 + $0x720] ss:$8 sps:$4 sm:$0xff]  }
  0xa9   : > { %1576 = vmatpush1.bf16.msra.mxu0 %v2961_v54  ;;  %v3053_v54 = vld [vmem:[%s3989_s1 + $0x614] ss:$8 sps:$4 sm:$0xff]  }
  0xaa   : > { %1617 = vmatpush1.bf16.msra.mxu1 %v2964_v55  ;;  %1577 = vmatprep.subr.bf16.mxu0 %v2969_v56  ;;  %v3056_v55 = vld [vmem:[%s3989_s1 + $0x714] ss:$8 sps:$4 sm:$0xff]   ;;  %v3051_v56 = vld [vmem:[%s3989_s1 + $0x610] ss:$8 sps:$4 sm:$0xff]  }
  0xab   : > { %1618 = vmatprep.subr.bf16.mxu1 %v2972_v57  ;;  %v3054_v57 = vld [vmem:[%s3989_s1 + $0x710] ss:$8 sps:$4 sm:$0xff]  }
  0xad   : > { %1578 = vmatpush2.bf16.msra.mxu0 %v2967_v58  ;;  %v3059_v58 = vld [vmem:[%s3989_s1 + $0x604] ss:$8 sps:$4 sm:$0xff]  }
  0xae   : > { %1619 = vmatpush2.bf16.msra.mxu1 %v2970_v59  ;;  %1579 = vmatprep.subr.bf16.mxu0 %v2975_v60  ;;  %v3062_v59 = vld [vmem:[%s3989_s1 + $0x704] ss:$8 sps:$4 sm:$0xff]   ;;  %v3057_v60 = vld [vmem:[%s3989_s1 + $0x600] ss:$8 sps:$4 sm:$0xff]  }
  0xaf   : > { %1620 = vmatprep.subr.bf16.mxu1 %v2978_v61  ;;  %v3060_v61 = vld [vmem:[%s3989_s1 + $0x700] ss:$8 sps:$4 sm:$0xff]  }
  0xb1   : > { %1580 = vmatpush2.bf16.msra.mxu0 %v2973_v62  ;;  %v3065_v62 = vld [vmem:[%s3989_s1 + $0x6f4] ss:$8 sps:$4 sm:$0xff]  }
  0xb2   : > { %1621 = vmatpush2.bf16.msra.mxu1 %v2976_v63  ;;  %1581 = vmatprep.subr.bf16.mxu0 %v2981_v0  ;;  %v3068_v63 = vld [vmem:[%s3989_s1 + $0x7f4] ss:$8 sps:$4 sm:$0xff]   ;;  %v3063_v0 = vld [vmem:[%s3989_s1 + $0x6f0] ss:$8 sps:$4 sm:$0xff]  }
  0xb3   : > { %1622 = vmatprep.subr.bf16.mxu1 %v2984_v1  ;;  %v3066_v1 = vld [vmem:[%s3989_s1 + $0x7f0] ss:$8 sps:$4 sm:$0xff]  }
  0xb5   : > { %1582 = vmatpush2.bf16.msra.mxu0 %v2979_v2  ;;  %v3071_v2 = vld [vmem:[%s3989_s1 + $0x6e4] ss:$8 sps:$4 sm:$0xff]  }
  0xb6   : > { %1623 = vmatpush2.bf16.msra.mxu1 %v2982_v3  ;;  %1583 = vmatprep.subr.bf16.mxu0 %v2987_v4  ;;  %v3074_v3 = vld [vmem:[%s3989_s1 + $0x7e4] ss:$8 sps:$4 sm:$0xff]   ;;  %v3069_v4 = vld [vmem:[%s3989_s1 + $0x6e0] ss:$8 sps:$4 sm:$0xff]  }
  0xb7   : > { %1624 = vmatprep.subr.bf16.mxu1 %v2990_v5  ;;  %v3072_v5 = vld [vmem:[%s3989_s1 + $0x7e0] ss:$8 sps:$4 sm:$0xff]  }
  0xb9   : > { %1584 = vmatpush2.bf16.msra.mxu0 %v2985_v6  ;;  %v3077_v6 = vld [vmem:[%s3989_s1 + $0x6d4] ss:$8 sps:$4 sm:$0xff]  }
  0xba   : > { %1625 = vmatpush2.bf16.msra.mxu1 %v2988_v8  ;;  %1585 = vmatprep.subr.bf16.mxu0 %v2993_v9  ;;  %v3080_v8 = vld [vmem:[%s3989_s1 + $0x7d4] ss:$8 sps:$4 sm:$0xff]   ;;  %v3075_v9 = vld [vmem:[%s3989_s1 + $0x6d0] ss:$8 sps:$4 sm:$0xff]  }
  0xbb   : > { %1626 = vmatprep.subr.bf16.mxu1 %v2996_v10  ;;  %v3078_v10 = vld [vmem:[%s3989_s1 + $0x7d0] ss:$8 sps:$4 sm:$0xff]  }
  0xbd   : > { %1586 = vmatpush2.bf16.msra.mxu0 %v2991_v11  ;;  %v3083_v11 = vld [vmem:[%s3989_s1 + $0x6c4] ss:$8 sps:$4 sm:$0xff]  }
  0xbe   : > { %1627 = vmatpush2.bf16.msra.mxu1 %v2994_v13  ;;  %1587 = vmatprep.subr.bf16.mxu0 %v2999_v14  ;;  %v3086_v13 = vld [vmem:[%s3989_s1 + $0x7c4] ss:$8 sps:$4 sm:$0xff]   ;;  %v3081_v14 = vld [vmem:[%s3989_s1 + $0x6c0] ss:$8 sps:$4 sm:$0xff]  }
  0xbf   : > { %1628 = vmatprep.subr.bf16.mxu1 %v3002_v15  ;;  %v3084_v15 = vld [vmem:[%s3989_s1 + $0x7c0] ss:$8 sps:$4 sm:$0xff]  }
  0xc1   : > { %1588 = vmatpush2.bf16.msra.mxu0 %v2997_v16  ;;  %v3089_v16 = vld [vmem:[%s3989_s1 + $0x6b4] ss:$8 sps:$4 sm:$0xff]  }
  0xc2   : > { %1629 = vmatpush2.bf16.msra.mxu1 %v3000_v17  ;;  %1589 = vmatprep.subr.bf16.mxu0 %v3005_v18  ;;  %v3092_v17 = vld [vmem:[%s3989_s1 + $0x7b4] ss:$8 sps:$4 sm:$0xff]   ;;  %v3087_v18 = vld [vmem:[%s3989_s1 + $0x6b0] ss:$8 sps:$4 sm:$0xff]  }
  0xc3   : > { %1630 = vmatprep.subr.bf16.mxu1 %v3008_v19  ;;  %v3090_v19 = vld [vmem:[%s3989_s1 + $0x7b0] ss:$8 sps:$4 sm:$0xff]  }
  0xc5   : > { %1590 = vmatpush2.bf16.msra.mxu0 %v3003_v20  ;;  %v3095_v20 = vld [vmem:[%s3989_s1 + $0x6a4] ss:$8 sps:$4 sm:$0xff]  }
  0xc6   : > { %1631 = vmatpush2.bf16.msra.mxu1 %v3006_v21  ;;  %1591 = vmatprep.subr.bf16.mxu0 %v3011_v22  ;;  %v3098_v21 = vld [vmem:[%s3989_s1 + $0x7a4] ss:$8 sps:$4 sm:$0xff]   ;;  %v3093_v22 = vld [vmem:[%s3989_s1 + $0x6a0] ss:$8 sps:$4 sm:$0xff]  }
  0xc7   : > { %1632 = vmatprep.subr.bf16.mxu1 %v3014_v23  ;;  %v3096_v23 = vld [vmem:[%s3989_s1 + $0x7a0] ss:$8 sps:$4 sm:$0xff]  }
  0xc9   : > { %1592 = vmatpush2.bf16.msra.mxu0 %v3009_v25  ;;  %v3101_v25 = vld [vmem:[%s3989_s1 + $0x694] ss:$8 sps:$4 sm:$0xff]  }
  0xca   : > { %1633 = vmatpush2.bf16.msra.mxu1 %v3012_v27  ;;  %2072 = vmatprep.subr.bf16.mxu0 %v3017_v28  ;;  %v3104_v27 = vld [vmem:[%s3989_s1 + $0x794] ss:$8 sps:$4 sm:$0xff]   ;;  %v3099_v28 = vld [vmem:[%s3989_s1 + $0x690] ss:$8 sps:$4 sm:$0xff]  }
  0xcb   : > { %2113 = vmatprep.subr.bf16.mxu1 %v3020_v26  ;;  %v3102_v26 = vld [vmem:[%s3989_s1 + $0x790] ss:$8 sps:$4 sm:$0xff]  }
  0xcc   : > { %1594 = vmatmul.mubr.bf16.vlgmr.msra.gmra.mxu0 %v3764_v24 }
  0xcd   : > { %1635 = vmatmul.mubr.bf16.vlgmr.msra.gmra.mxu1 %v3780_v29  ;;  %2073 = vmatpush1.bf16.msra.mxu0 %v3015_v30  ;;  %v3107_v30 = vld [vmem:[%s3989_s1 + $0x684] ss:$8 sps:$4 sm:$0xff]  }
  0xce   : > { %2114 = vmatpush1.bf16.msra.mxu1 %v3018_v7  ;;  %2074 = vmatprep.subr.bf16.mxu0 %v3023_v32  ;;  %v3110_v7 = vld [vmem:[%s3989_s1 + $0x784] ss:$8 sps:$4 sm:$0xff]   ;;  %v3105_v32 = vld [vmem:[%s3989_s1 + $0x680] ss:$8 sps:$4 sm:$0xff]  }
  0xcf   : > { %2115 = vmatprep.subr.bf16.mxu1 %v3026_v33  ;;  %2104 = vmatprep.mubr.bf16.mxu0 %v1740_v34  ;;  %v3108_v33 = vld [vmem:[%s3989_s1 + $0x780] ss:$8 sps:$4 sm:$0xff]   ;;  %v1737_v34 = vshrl.u32 %v3764_v24, 16 }
  0xd0   : > { %2145 = vmatprep.mubr.bf16.mxu1 %v1746_v35  ;;  %v1743_v35 = vshrl.u32 %v3780_v29, 16 }
  0xd1   : > { %2075 = vmatpush1.bf16.msra.mxu0 %v3021_v36 }
  0xd2   : > { %2116 = vmatpush1.bf16.msra.mxu1 %v3024_v37  ;;  %2076 = vmatprep.subr.bf16.mxu0 %v3029_v31 }
  0xd3   : > { %2117 = vmatprep.subr.bf16.mxu1 %v3032_v12 }
  0xd5   : > { %2077 = vmatpush1.bf16.msra.mxu0 %v3027_v38 }
  0xd6   : > { %2118 = vmatpush1.bf16.msra.mxu1 %v3030_v39  ;;  %2078 = vmatprep.subr.bf16.mxu0 %v3035_v40 }
  0xd7   : > { %2119 = vmatprep.subr.bf16.mxu1 %v3038_v41 }
  0xd9   : > { %2079 = vmatpush1.bf16.msra.mxu0 %v3033_v42 }
  0xda   : > { %2120 = vmatpush1.bf16.msra.mxu1 %v3036_v43  ;;  %2080 = vmatprep.subr.bf16.mxu0 %v3041_v44 }
  0xdb   : > { %2121 = vmatprep.subr.bf16.mxu1 %v3044_v45 }
  0xdd   : > { %2081 = vmatpush1.bf16.msra.mxu0 %v3039_v47 }
  0xde   : > { %2122 = vmatpush1.bf16.msra.mxu1 %v3042_v48  ;;  %2082 = vmatprep.subr.bf16.mxu0 %v3047_v49 }
  0xdf   : > { %2123 = vmatprep.subr.bf16.mxu1 %v3050_v50 }
  0xe1   : > { %2083 = vmatpush1.bf16.msra.mxu0 %v3045_v52 }
  0xe2   : > { %2124 = vmatpush1.bf16.msra.mxu1 %v3048_v53  ;;  %2084 = vmatprep.subr.bf16.mxu0 %v3053_v54 }
  0xe3   : > { %2125 = vmatprep.subr.bf16.mxu1 %v3056_v55 }
  0xe5   : > { %2085 = vmatpush1.bf16.msra.mxu0 %v3051_v56 }
  0xe6   : > { %2126 = vmatpush1.bf16.msra.mxu1 %v3054_v57  ;;  %2086 = vmatprep.subr.bf16.mxu0 %v3059_v58 }
  0xe7   : > { %2127 = vmatprep.subr.bf16.mxu1 %v3062_v59 }
  0xe9   : > { %2087 = vmatpush1.bf16.msra.mxu0 %v3057_v60 }
  0xea   : > { %2128 = vmatpush1.bf16.msra.mxu1 %v3060_v61  ;;  %2088 = vmatprep.subr.bf16.mxu0 %v3065_v62 }
  0xeb   : > { %2129 = vmatprep.subr.bf16.mxu1 %v3068_v63 }
  0xed   : > { %2089 = vmatpush2.bf16.msra.mxu0 %v3063_v0 }
  0xee   : > { %2130 = vmatpush2.bf16.msra.mxu1 %v3066_v1  ;;  %2090 = vmatprep.subr.bf16.mxu0 %v3071_v2  ;;  %v2160_v2 = vsub.s32 0, %v3281_v46 }
  0xef   : > { %2131 = vmatprep.subr.bf16.mxu1 %v3074_v3  ;;  %v2156_v3 = vld [vmem:[%s3990_s2] sm:$0x3] }
  0xf1   : > { %2091 = vmatpush2.bf16.msra.mxu0 %v3069_v4 }
  0xf2   : > { %2132 = vmatpush2.bf16.msra.mxu1 %v3072_v5  ;;  %2092 = vmatprep.subr.bf16.mxu0 %v3077_v6  ;;  %v2164_v5 = vsub.s32 1, %v3281_v46 }
  0xf3   : > { %2133 = vmatprep.subr.bf16.mxu1 %v3080_v8 }
  0xf5   : > { %2093 = vmatpush2.bf16.msra.mxu0 %v3075_v9 }
  0xf6   : > { %2134 = vmatpush2.bf16.msra.mxu1 %v3078_v10  ;;  %2094 = vmatprep.subr.bf16.mxu0 %v3083_v11  ;;  %v2161_v10 = vrot.slane %v2156_v3, %v2160_v2 }
  0xf7   : > { %2135 = vmatprep.subr.bf16.mxu1 %v3086_v13 }
  0xf9   : > { %2095 = vmatpush2.bf16.msra.mxu0 %v3081_v14 }
  0xfa   : > { %2136 = vmatpush2.bf16.msra.mxu1 %v3084_v15  ;;  %2096 = vmatprep.subr.bf16.mxu0 %v3089_v16 }
  0xfb   : > { %2137 = vmatprep.subr.bf16.mxu1 %v3092_v17  ;;  %v2165_v17 = vrot.slane %v2156_v3, %v2164_v5 }
  0xfd   : > { %2097 = vmatpush2.bf16.msra.mxu0 %v3087_v18 }
  0xfe   : > { %2138 = vmatpush2.bf16.msra.mxu1 %v3090_v19  ;;  %2098 = vmatprep.subr.bf16.mxu0 %v3095_v20 }
  0xff   : > { %2139 = vmatprep.subr.bf16.mxu1 %v3098_v21 }
 0x101   : > { %2099 = vmatpush2.bf16.msra.mxu0 %v3093_v22 }
 0x102   : > { %2140 = vmatpush2.bf16.msra.mxu1 %v3096_v23  ;;  %2100 = vmatprep.subr.bf16.mxu0 %v3101_v25 }
 0x103   : > { %2141 = vmatprep.subr.bf16.mxu1 %v3104_v27 }
 0x105   : > { %2101 = vmatpush2.bf16.msra.mxu0 %v3099_v28 }
 0x106   : > { %2142 = vmatpush2.bf16.msra.mxu1 %v3102_v26  ;;  %2102 = vmatprep.subr.bf16.mxu0 %v3107_v30  ;;  %v2199_v30 = vld [vmem:[%s165_s17] sm:$0x3] }
 0x107   : > { %2143 = vmatprep.subr.bf16.mxu1 %v3110_v7 }
 0x109   : > { %2103 = vmatpush2.bf16.msra.mxu0 %v3105_v32 }
 0x10a   : > { %2144 = vmatpush2.bf16.msra.mxu1 %v3108_v33 }
 0x10c   : > { %v691_v36 = vpop.f32.mrf.mxu0  ;;  %2105 = vmatmul.mubr.bf16.vlgmr.msra.gmra.mxu0 %v1737_v34 }
 0x10d   : > { %v732_v37 = vpop.f32.mrf.mxu1  ;;  %2146 = vmatmul.mubr.bf16.vlgmr.msra.gmra.mxu1 %v1743_v35 }
 0x10e   : > { %v733_v31 = vadd.f32 %v732_v37, %v691_v36  ;;  %v693_v12 = vpop.f32.mrf.mxu0 }
 0x10f   : > { %v734_v38 = vpop.f32.mrf.mxu1 }
 0x110   : > { %v735_v39 = vadd.f32 %v734_v38, %v693_v12  ;;  %v695_v40 = vpop.f32.mrf.mxu0 }
 0x111   : > { %v736_v41 = vpop.f32.mrf.mxu1 }
 0x112   : > { %v696_v42 = vpop.f32.mrf.mxu0 }
 0x113   : > { %v737_v43 = vpop.f32.mrf.mxu1 }
 0x14c   : > { %v1097_v44 = vpop.f32.mrf.mxu0 }
 0x14d   : > { %v1138_v45 = vpop.f32.mrf.mxu1  ;;  %v1098_v47 = vadd.f32 %v1097_v44, %v733_v31 }
 0x14e   : > { %v1099_v24 = vpop.f32.mrf.mxu0 }
 0x14f   : > { %v1140_v48 = vpop.f32.mrf.mxu1  ;;  %v1139_v29 = vadd.f32 %v1138_v45, %v1098_v47  ;;  %v1100_v49 = vadd.f32 %v1099_v24, %v735_v39 }
 0x150   : > { %v1101_v50 = vpop.f32.mrf.mxu0 }
 0x151   : > { %v1142_v52 = vpop.f32.mrf.mxu1  ;;  %v1141_v53 = vadd.f32 %v1140_v48, %v1100_v49 }
 0x152   : > { %v1102_v54 = vpop.f32.mrf.mxu0 }
 0x153   : > { %v1143_v55 = vpop.f32.mrf.mxu1 }
 0x18c   : > { %v1595_v56 = vpop.f32.mrf.mxu0 }
 0x18d   : > { %v1636_v57 = vpop.f32.mrf.mxu1 }
 0x18e   : > { %v1637_v58 = vadd.f32 %v1636_v57, %v1595_v56  ;;  %v1597_v59 = vpop.f32.mrf.mxu0 }
 0x18f   : > { %v1638_v60 = vpop.f32.mrf.mxu1 }
 0x190   : > { %v1643_v61 = vadd.f32 %v1637_v58, %v1139_v29  ;;  %v1599_v62 = vpop.f32.mrf.mxu0  ;;  %v1639_v4 = vadd.f32 %v1638_v60, %v1597_v59 }
 0x191   : > { %v1640_v63 = vpop.f32.mrf.mxu1 }
 0x192   : > { %v1600_v0 = vpop.f32.mrf.mxu0  ;;  %v1644_v14 = vadd.f32 %v1639_v4, %v1141_v53 }
 0x193   : > { %v1641_v1 = vpop.f32.mrf.mxu1 }
 0x1cc   : > { %v2106_v6 = vpop.f32.mrf.mxu0 }
 0x1cd   : > { %v2147_v8 = vpop.f32.mrf.mxu1 }
 0x1ce   : > { %v2148_v9 = vadd.f32 %v2147_v8, %v2106_v6  ;;  %v2108_v11 = vpop.f32.mrf.mxu0 }
 0x1cf   : > { %v2149_v13 = vpop.f32.mrf.mxu1 }
 0x1d0   : > { %v2154_v15 = vadd.f32 %v2148_v9, %v1643_v61  ;;  %v2150_v16 = vadd.f32 %v2149_v13, %v2108_v11  ;;  %v2110_v18 = vpop.f32.mrf.mxu0 }
 0x1d1   : > { %v2151_v19 = vpop.f32.mrf.mxu1 }
 0x1d2   : > { %v2168_v20 = vadd.f32 %v2161_v10, %v2154_v15  ;;  %v2155_v21 = vadd.f32 %v2150_v16, %v1644_v14  ;;  %v2111_v22 = vpop.f32.mrf.mxu0 }
 0x1d3   : > { %v2152_v23 = vpop.f32.mrf.mxu1 }
 0x1d4   : > { %v2169_v25 = vadd.f32 %v2165_v17, %v2155_v21  ;;  %v2170_v46 = vmax.f32 %v2168_v20, 0.0 }
 0x1d6   : > { %v2171_v27 = vmax.f32 %v2169_v25, 0.0 }
 0x1d8   : > { %v2715_v28 = vpack.c.bf16 %v2171_v27, %v2170_v46 }
 0x1da   : > { %v2183_v26 = vrot.slane %v2715_v28, %v3301_v51 }
 0x1dc   : > { %v2190_v7 = vrot.slane %v2183_v26, %v3301_v51 }
 0x1de   : > { %v2200_v32 = vsel %vm2198_vm6, %v2190_v7, %v2199_v30 }
 0x1df   : > { %2201 = vst [vmem:[%s165_s17] sm:$0x3] %v2200_v32 }
 0x1e0 PF: > { %s13_s12 = sadd.s32 1, %s3117_s12  }
 0x1e1   : > { %p10_p4 = scmp.ge.s32.totalorder %s13_s12, 4  }
 0x1e3   :  { %12 = sbr.rel (!%p10_p4) target bundleno = 1 (0x1), region = 66 }

// kernel: vae_latent_ctrl_forward.11
= control target key start
LH: loop header
LB: loop body
LE: loop exit
PB: predicated region body
PF: predicated region fallthrough
CT: control target
= control target key end

     0   :  { %vm88_vm0 = vcmask 1045504   ;;  %v1441_v1 = vmov 0   ;;  %vm84_vm1 = vcmask 97280   ;;  %vm1118_vm2 = vcmask 7168   ;;  %s1877_s1 = inlined_call_operand.vmem [shape: bf16[12,512], index: 1, kind: input, shape index: {}]   ;;  %s1878_s0 = inlined_call_operand.vmem [shape: bf16[16,12], index: 0, kind: input, shape index: {}]   ;;  %s1879_s3 = inlined_call_operand.vmem [shape: bf16[512,256], index: 3, kind: input, shape index: {}]   ;;  %s1880_s5 = inlined_call_operand.vmem [shape: bf16[256,256], index: 5, kind: input, shape index: {}]   ;;  %s1881_s2 = inlined_call_operand.vmem [shape: f32[1,512], index: 2, kind: input, shape index: {}]   ;;  %s1882_s7 = inlined_call_operand.vmem [shape: bf16[256,1], index: 7, kind: input, shape index: {}]   ;;  %s1883_s4 = inlined_call_operand.vmem [shape: f32[1,256], index: 4, kind: input, shape index: {}]   ;;  %s1884_s6 = inlined_call_operand.vmem [shape: f32[1,256], index: 6, kind: input, shape index: {}]   ;;  %s1885_s8 = inlined_call_operand.<no memory space> [shape: f32[1,1], index: 8, kind: input, shape index: {}]   ;;  %s1886_s9 = inlined_call_operand.vmem [shape: f32[16,1], index: 9, kind: output, shape index: {}]  }
   0x1   :  { %v1270_v0 = vld [vmem:[%s1877_s1 + $0x4] ss:$16 sps:$4 sm:$0x3f]   ;;  %133 = vmatprep.mubr.bf16.mxu1 %v1441_v1  ;;  %v1272_v2 = vld [vmem:[%s1877_s1] ss:$16 sps:$4 sm:$0x3f]  }
   0x2   :  { %v1273_v3 = vld [vmem:[%s1878_s0] sm:$0xff]   ;;  %1130 = vmatprep.subr.msk.bf16.mxu1 %vm88_vm0, %v1270_v0  ;;  %v90_v4 = vsel %vm88_vm0, %v1272_v2, 0  ;;  %v1274_v5 = vld [vmem:[%s1877_s1 + $0xc] ss:$16 sps:$4 sm:$0x3f]  }
   0x3   :  { %116 = vmatpush1.bf16.msra.mxu1 %v90_v4  ;;  %v1276_v6 = vld [vmem:[%s1877_s1 + $0x8] ss:$16 sps:$4 sm:$0x3f]   ;;  %v1277_v7 = vld [vmem:[%s1879_s3 + $0x74] ss:$8 sps:$4 sm:$0xff]  }
   0x4   :  { %1132 = vmatprep.subr.msk.bf16.mxu1 %vm88_vm0, %v1274_v5  ;;  %v1279_v8 = vld [vmem:[%s1879_s3 + $0x70] ss:$8 sps:$4 sm:$0xff]   ;;  %v1280_v9 = vld [vmem:[%s1879_s3 + $0x64] ss:$8 sps:$4 sm:$0xff]   ;;  %v96_v10 = vsel %vm88_vm0, %v1276_v6, 0  ;;  %595 = vmatprep.subr.bf16.mxu0 %v1277_v7 }
   0x5   :  { %596 = vmatpush1.bf16.msra.mxu0 %v1279_v8  ;;  %v1282_v11 = vld [vmem:[%s1879_s3 + $0x60] ss:$8 sps:$4 sm:$0xff]   ;;  %v1283_v12 = vld [vmem:[%s1879_s3 + $0x54] ss:$8 sps:$4 sm:$0xff]   ;;  %v1285_v14 = vld [vmem:[%s1879_s3 + $0x170] ss:$8 sps:$4 sm:$0xff]  }
   0x6   :  { %1131 = vmatmul.mubr.msk.bf16.vlgmr.msra.gmra.mxu1 %vm84_vm1, %v1273_v3  ;;  %v1287_v13 = vld [vmem:[%s1879_s3 + $0x174] ss:$8 sps:$4 sm:$0xff]   ;;  %597 = vmatprep.subr.bf16.mxu0 %v1280_v9  ;;  %v1288_v15 = vld [vmem:[%s1879_s3 + $0x50] ss:$8 sps:$4 sm:$0xff]   ;;  %v1289_v16 = vld [vmem:[%s1879_s3 + $0x44] ss:$8 sps:$4 sm:$0xff]   ;;  %v43_v9 = vlaneseq }
   0x7   :  { %159 = vmatpush1.bf16.msra.mxu1 %v96_v10  ;;  %176 = vmatprep.mubr.bf16.mxu1 %v1441_v1  ;;  %v1293_v17 = vld [vmem:[%s1879_s3 + $0x164] ss:$8 sps:$4 sm:$0xff]   ;;  %v1294_v18 = vld [vmem:[%s1879_s3 + $0x40] ss:$8 sps:$4 sm:$0xff]   ;;  %v1295_v20 = vld [vmem:[%s1879_s3 + $0x34] ss:$8 sps:$4 sm:$0xff]  }
   0x8   :  { %638 = vmatprep.subr.bf16.mxu1 %v1287_v13  ;;  %v1291_v19 = vld [vmem:[%s1879_s3 + $0x160] ss:$8 sps:$4 sm:$0xff]   ;;  %v1299_v21 = vld [vmem:[%s1879_s3 + $0x154] ss:$8 sps:$4 sm:$0xff]   ;;  %v1297_v22 = vld [vmem:[%s1879_s3 + $0x150] ss:$8 sps:$4 sm:$0xff]  }
   0x9   :  { %598 = vmatpush1.bf16.msra.mxu0 %v1282_v11  ;;  %v1300_v23 = vld [vmem:[%s1879_s3 + $0x30] ss:$8 sps:$4 sm:$0xff]   ;;  %v1301_v24 = vld [vmem:[%s1879_s3 + $0x24] ss:$8 sps:$4 sm:$0xff]   ;;  %v1306_v26 = vld [vmem:[%s1879_s3 + $0x20] ss:$8 sps:$4 sm:$0xff]  }
   0xa   :  { %599 = vmatprep.subr.bf16.mxu0 %v1283_v12  ;;  %v1305_v25 = vld [vmem:[%s1879_s3 + $0x144] ss:$8 sps:$4 sm:$0xff]   ;;  %v1303_v27 = vld [vmem:[%s1879_s3 + $0x140] ss:$8 sps:$4 sm:$0xff]   ;;  %v1307_v28 = vld [vmem:[%s1879_s3 + $0x14] ss:$8 sps:$4 sm:$0xff]  }
   0xb   :  { %v1311_v29 = vld [vmem:[%s1879_s3 + $0x134] ss:$8 sps:$4 sm:$0xff]   ;;  %v1309_v30 = vld [vmem:[%s1879_s3 + $0x130] ss:$8 sps:$4 sm:$0xff]   ;;  %v1313_v32 = vld [vmem:[%s1879_s3 + $0x4] ss:$8 sps:$4 sm:$0xff]  }
   0xc   :  { %v1312_v31 = vld [vmem:[%s1879_s3 + $0x10] ss:$8 sps:$4 sm:$0xff]   ;;  %v1317_v33 = vld [vmem:[%s1879_s3 + $0x124] ss:$8 sps:$4 sm:$0xff]   ;;  %v1318_v34 = vld [vmem:[%s1879_s3] ss:$8 sps:$4 sm:$0xff]  }
   0xd   :  { %600 = vmatpush1.bf16.msra.mxu0 %v1288_v15  ;;  %v1315_v35 = vld [vmem:[%s1879_s3 + $0x120] ss:$8 sps:$4 sm:$0xff]   ;;  %v1319_v36 = vld [vmem:[%s1879_s3 + $0xf4] ss:$8 sps:$4 sm:$0xff]   ;;  %v1321_v38 = vld [vmem:[%s1879_s3 + $0x110] ss:$8 sps:$4 sm:$0xff]  }
   0xe   :  { %1133 = vmatmul.mubr.msk.bf16.vlgmr.msra.gmra.mxu1 %vm84_vm1, %v1273_v3  ;;  %601 = vmatprep.subr.bf16.mxu0 %v1289_v16  ;;  %v1323_v37 = vld [vmem:[%s1879_s3 + $0x114] ss:$8 sps:$4 sm:$0xff]   ;;  %v1324_v39 = vld [vmem:[%s1879_s3 + $0xf0] ss:$8 sps:$4 sm:$0xff]   ;;  %v1325_v40 = vld [vmem:[%s1879_s3 + $0xe4] ss:$8 sps:$4 sm:$0xff]  }
   0xf   :  { %639 = vmatpush1.bf16.msra.mxu1 %v1285_v14  ;;  %v1329_v41 = vld [vmem:[%s1879_s3 + $0x104] ss:$8 sps:$4 sm:$0xff]   ;;  %v1330_v42 = vld [vmem:[%s1879_s3 + $0xe0] ss:$8 sps:$4 sm:$0xff]   ;;  %v1331_v44 = vld [vmem:[%s1879_s3 + $0xd4] ss:$8 sps:$4 sm:$0xff]  }
  0x10   :  { %640 = vmatprep.subr.bf16.mxu1 %v1293_v17  ;;  %v1327_v43 = vld [vmem:[%s1879_s3 + $0x100] ss:$8 sps:$4 sm:$0xff]   ;;  %v1335_v45 = vld [vmem:[%s1879_s3 + $0x1f4] ss:$8 sps:$4 sm:$0xff]   ;;  %v1336_v46 = vld [vmem:[%s1879_s3 + $0xd0] ss:$8 sps:$4 sm:$0xff]  }
  0x11   :  { %602 = vmatpush1.bf16.msra.mxu0 %v1294_v18  ;;  %v1333_v47 = vld [vmem:[%s1879_s3 + $0x1f0] ss:$8 sps:$4 sm:$0xff]   ;;  %v1337_v48 = vld [vmem:[%s1879_s3 + $0xc4] ss:$8 sps:$4 sm:$0xff]   ;;  %v1342_v50 = vld [vmem:[%s1879_s3 + $0xc0] ss:$8 sps:$4 sm:$0xff]  }
  0x12   :  { %603 = vmatprep.subr.bf16.mxu0 %v1295_v20  ;;  %v1341_v49 = vld [vmem:[%s1879_s3 + $0x1e4] ss:$8 sps:$4 sm:$0xff]   ;;  %v1339_v51 = vld [vmem:[%s1879_s3 + $0x1e0] ss:$8 sps:$4 sm:$0xff]   ;;  %v1343_v52 = vld [vmem:[%s1879_s3 + $0xb4] ss:$8 sps:$4 sm:$0xff]  }
  0x13   :  { %641 = vmatpush1.bf16.msra.mxu1 %v1291_v19  ;;  %v1347_v53 = vld [vmem:[%s1879_s3 + $0x1d4] ss:$8 sps:$4 sm:$0xff]   ;;  %v1348_v54 = vld [vmem:[%s1879_s3 + $0xb0] ss:$8 sps:$4 sm:$0xff]   ;;  %v1349_v56 = vld [vmem:[%s1879_s3 + $0xa4] ss:$8 sps:$4 sm:$0xff]  }
  0x14   :  { %642 = vmatprep.subr.bf16.mxu1 %v1299_v21  ;;  %v1345_v55 = vld [vmem:[%s1879_s3 + $0x1d0] ss:$8 sps:$4 sm:$0xff]   ;;  %v1353_v57 = vld [vmem:[%s1879_s3 + $0x1c4] ss:$8 sps:$4 sm:$0xff]   ;;  %v1351_v58 = vld [vmem:[%s1879_s3 + $0x1c0] ss:$8 sps:$4 sm:$0xff]  }
  0x15   :  { %604 = vmatpush1.bf16.msra.mxu0 %v1300_v23  ;;  %v1354_v59 = vld [vmem:[%s1879_s3 + $0xa0] ss:$8 sps:$4 sm:$0xff]   ;;  %v1355_v60 = vld [vmem:[%s1879_s3 + $0x94] ss:$8 sps:$4 sm:$0xff]   ;;  %v1357_v62 = vld [vmem:[%s1879_s3 + $0x1b0] ss:$8 sps:$4 sm:$0xff]  }
  0x16   :  { %605 = vmatprep.subr.bf16.mxu0 %v1301_v24  ;;  %v1359_v61 = vld [vmem:[%s1879_s3 + $0x1b4] ss:$8 sps:$4 sm:$0xff]   ;;  %v1360_v63 = vld [vmem:[%s1879_s3 + $0x90] ss:$8 sps:$4 sm:$0xff]   ;;  %v1361_v0 = vld [vmem:[%s1879_s3 + $0x84] ss:$8 sps:$4 sm:$0xff]  }
  0x17   :  { %643 = vmatpush1.bf16.msra.mxu1 %v1297_v22  ;;  %v1365_v1 = vld [vmem:[%s1879_s3 + $0x1a4] ss:$8 sps:$4 sm:$0xff]   ;;  %v1363_v2 = vld [vmem:[%s1879_s3 + $0x1a0] ss:$8 sps:$4 sm:$0xff]   ;;  %v1369_v4 = vld [vmem:[%s1879_s3 + $0x194] ss:$8 sps:$4 sm:$0xff]  }
  0x18   :  { %644 = vmatprep.subr.bf16.mxu1 %v1305_v25  ;;  %v1366_v3 = vld [vmem:[%s1879_s3 + $0x80] ss:$8 sps:$4 sm:$0xff]   ;;  %v1367_v5 = vld [vmem:[%s1879_s3 + $0x190] ss:$8 sps:$4 sm:$0xff]   ;;  %v1372_v6 = vld [vmem:[%s1879_s3 + $0x184] ss:$8 sps:$4 sm:$0xff]  }
  0x19   :  { %606 = vmatpush1.bf16.msra.mxu0 %v1306_v26  ;;  %v1370_v7 = vld [vmem:[%s1879_s3 + $0x180] ss:$8 sps:$4 sm:$0xff]   ;;  %v1375_v8 = vld [vmem:[%s1880_s5 + $0x74] ss:$8 sps:$4 sm:$0xff]   ;;  %v44_v10 = vshrl.u32 %v43_v9, 7 }
  0x1a   :  { %607 = vmatprep.subr.bf16.mxu0 %v1307_v28  ;;  %v41_v13 = vld [vmem:[%s1881_s2] sm:$0xf]  ;;  %v1414_v9 = vld [vmem:[%s1880_s5 + $0xa4] ss:$8 sps:$4 sm:$0xff]  }
  0x1b   :  { %645 = vmatpush1.bf16.msra.mxu1 %v1303_v27  ;;  %v1708_v11 = vsub.s32 1, %v44_v10  ;;  %v1710_v12 = vsub.s32 0, %v44_v10  ;;  %v57_v21 = vsub.s32 3, %v44_v10  ;;  %v53_v24 = vsub.s32 2, %v44_v10  ;;  %v1412_v10 = vld [vmem:[%s1880_s5 + $0xa0] ss:$8 sps:$4 sm:$0xff]  }
  0x1c   :  { %646 = vmatprep.subr.bf16.mxu1 %v1311_v29 }
  0x1d   :  { %608 = vmatpush1.bf16.msra.mxu0 %v1312_v31  ;;  %v50_v15 = vrot.slane %v41_v13, %v1708_v11  ;;  %v46_v16 = vrot.slane %v41_v13, %v1710_v12 }
  0x1e   :  { %609 = vmatprep.subr.bf16.mxu0 %v1313_v32  ;;  %v54_v32 = vrot.slane %v41_v13, %v53_v24  ;;  %v1428_v24 = vld [vmem:[%s1882_s7 + $0x20] sm:$0xff]  }
  0x1f   :  { %647 = vmatpush1.bf16.msra.mxu1 %v1309_v30  ;;  %v58_v30 = vrot.slane %v41_v13, %v57_v21  ;;  %v1417_v13 = vld [vmem:[%s1880_s5 + $0x94] ss:$8 sps:$4 sm:$0xff]   ;;  %v1425_v21 = vld [vmem:[%s1882_s7 + $0x68] sm:$0xff]  }
  0x20   :  { %648 = vmatprep.subr.bf16.mxu1 %v1317_v33 }
  0x21   :  { %610 = vmatpush1.bf16.msra.mxu0 %v1318_v34 }
  0x22   :  { %611 = vmatprep.subr.bf16.mxu0 %v1319_v36 }
  0x23   :  { %649 = vmatpush1.bf16.msra.mxu1 %v1315_v35  ;;  %v1373_v35 = vld [vmem:[%s1880_s5 + $0x70] ss:$8 sps:$4 sm:$0xff]  }
  0x24   :  { %650 = vmatprep.subr.bf16.mxu1 %v1323_v37 }
  0x25   :  { %612 = vmatpush2.bf16.msra.mxu0 %v1324_v39 }
  0x26   :  { %613 = vmatprep.subr.bf16.mxu0 %v1325_v40 }
  0x27   :  { %651 = vmatpush1.bf16.msra.mxu1 %v1321_v38  ;;  %v1378_v38 = vld [vmem:[%s1880_s5 + $0x64] ss:$8 sps:$4 sm:$0xff]  }
  0x28   :  { %652 = vmatprep.subr.bf16.mxu1 %v1329_v41 }
  0x29   :  { %614 = vmatpush2.bf16.msra.mxu0 %v1330_v42 }
  0x2a   :  { %615 = vmatprep.subr.bf16.mxu0 %v1331_v44  ;;  %v1376_v44 = vld [vmem:[%s1880_s5 + $0x60] ss:$8 sps:$4 sm:$0xff]  }
  0x2b   :  { %653 = vmatpush1.bf16.msra.mxu1 %v1327_v43 }
  0x2c   :  { %654 = vmatprep.subr.bf16.mxu1 %v1335_v45 }
  0x2d   :  { %616 = vmatpush2.bf16.msra.mxu0 %v1336_v46  ;;  %v1381_v46 = vld [vmem:[%s1880_s5 + $0x54] ss:$8 sps:$4 sm:$0xff]  }
  0x2e   :  { %617 = vmatprep.subr.bf16.mxu0 %v1337_v48 }
  0x2f   :  { %655 = vmatpush2.bf16.msra.mxu1 %v1333_v47 }
  0x30   :  { %656 = vmatprep.subr.bf16.mxu1 %v1341_v49 }
  0x31   :  { %618 = vmatpush2.bf16.msra.mxu0 %v1342_v50 }
  0x32   :  { %619 = vmatprep.subr.bf16.mxu0 %v1343_v52 }
  0x33   :  { %657 = vmatpush2.bf16.msra.mxu1 %v1339_v51  ;;  %v1379_v51 = vld [vmem:[%s1880_s5 + $0x50] ss:$8 sps:$4 sm:$0xff]  }
  0x34   :  { %658 = vmatprep.subr.bf16.mxu1 %v1347_v53  ;;  %v1384_v53 = vld [vmem:[%s1880_s5 + $0x44] ss:$8 sps:$4 sm:$0xff]  }
  0x35   :  { %620 = vmatpush2.bf16.msra.mxu0 %v1348_v54  ;;  %v1382_v54 = vld [vmem:[%s1880_s5 + $0x40] ss:$8 sps:$4 sm:$0xff]  }
  0x36   :  { %621 = vmatprep.subr.bf16.mxu0 %v1349_v56  ;;  %v1385_v56 = vld [vmem:[%s1880_s5 + $0x30] ss:$8 sps:$4 sm:$0xff]  }
  0x37   :  { %659 = vmatpush2.bf16.msra.mxu1 %v1345_v55  ;;  %v1387_v55 = vld [vmem:[%s1880_s5 + $0x34] ss:$8 sps:$4 sm:$0xff]  }
  0x38   :  { %660 = vmatprep.subr.bf16.mxu1 %v1353_v57  ;;  %v1390_v57 = vld [vmem:[%s1880_s5 + $0x24] ss:$8 sps:$4 sm:$0xff]  }
  0x39   :  { %622 = vmatpush2.bf16.msra.mxu0 %v1354_v59  ;;  %v1393_v59 = vld [vmem:[%s1880_s5 + $0x14] ss:$8 sps:$4 sm:$0xff]  }
  0x3a   :  { %623 = vmatprep.subr.bf16.mxu0 %v1355_v60  ;;  %v1391_v60 = vld [vmem:[%s1880_s5 + $0x10] ss:$8 sps:$4 sm:$0xff]  }
  0x3b   :  { %661 = vmatpush2.bf16.msra.mxu1 %v1351_v58  ;;  %v1388_v58 = vld [vmem:[%s1880_s5 + $0x20] ss:$8 sps:$4 sm:$0xff]  }
  0x3c   :  { %662 = vmatprep.subr.bf16.mxu1 %v1359_v61  ;;  %v1396_v61 = vld [vmem:[%s1880_s5 + $0x4] ss:$8 sps:$4 sm:$0xff]  }
  0x3d   :  { %624 = vmatpush2.bf16.msra.mxu0 %v1360_v63  ;;  %v1399_v63 = vld [vmem:[%s1880_s5 + $0xf4] ss:$8 sps:$4 sm:$0xff]  }
  0x3e   :  { %625 = vmatprep.subr.bf16.mxu0 %v1361_v0  ;;  %v1397_v0 = vld [vmem:[%s1880_s5 + $0xf0] ss:$8 sps:$4 sm:$0xff]  }
  0x3f   :  { %663 = vmatpush2.bf16.msra.mxu1 %v1357_v62  ;;  %v1394_v62 = vld [vmem:[%s1880_s5] ss:$8 sps:$4 sm:$0xff]  }
  0x40   :  { %664 = vmatprep.subr.bf16.mxu1 %v1365_v1  ;;  %v1402_v1 = vld [vmem:[%s1880_s5 + $0xe4] ss:$8 sps:$4 sm:$0xff]  }
  0x41   :  { %626 = vmatpush2.bf16.msra.mxu0 %v1366_v3  ;;  %v1405_v3 = vld [vmem:[%s1880_s5 + $0xd4] ss:$8 sps:$4 sm:$0xff]  }
  0x42   :  { %891 = vmatprep.subr.bf16.mxu0 %v1375_v8  ;;  %v1409_v8 = vld [vmem:[%s1880_s5 + $0xb0] ss:$8 sps:$4 sm:$0xff]  }
  0x43   :  { %665 = vmatpush2.bf16.msra.mxu1 %v1363_v2  ;;  %v1400_v2 = vld [vmem:[%s1880_s5 + $0xe0] ss:$8 sps:$4 sm:$0xff]  }
  0x44   :  { %666 = vmatprep.subr.bf16.mxu1 %v1369_v4  ;;  %v1403_v4 = vld [vmem:[%s1880_s5 + $0xd0] ss:$8 sps:$4 sm:$0xff]  }
  0x47   :  { %667 = vmatpush2.bf16.msra.mxu1 %v1367_v5  ;;  %v1408_v5 = vld [vmem:[%s1880_s5 + $0xc4] ss:$8 sps:$4 sm:$0xff]  }
  0x48   :  { %668 = vmatprep.subr.bf16.mxu1 %v1372_v6  ;;  %v1406_v6 = vld [vmem:[%s1880_s5 + $0xc0] ss:$8 sps:$4 sm:$0xff]  }
  0x4b   :  { %669 = vmatpush2.bf16.msra.mxu1 %v1370_v7  ;;  %v1411_v7 = vld [vmem:[%s1880_s5 + $0xb4] ss:$8 sps:$4 sm:$0xff]  }
  0xc6   :  { %v135_v14 = vpop.f32.mrf.mxu1 }
  0xc7   :  { %v136_v22 = vadd.f32 %v135_v14, %v46_v16  ;;  %v1415_v14 = vld [vmem:[%s1880_s5 + $0x90] ss:$8 sps:$4 sm:$0xff]  }
  0xc8   :  { %v137_v17 = vpop.f32.mrf.mxu1 }
  0xc9   :  { %v138_v19 = vadd.f32 %v137_v17, %v50_v15  ;;  %v187_v31 = vmax.f32 %v136_v22, 0.0  ;;  %v1421_v17 = vld [vmem:[%s1882_s7 + $0x78] sm:$0xff]   ;;  %v1426_v22 = vld [vmem:[%s1882_s7 + $0x28] sm:$0xff]  }
  0xca   :  { %v139_v18 = vpop.f32.mrf.mxu1  ;;  %1247 = vmatprep.subr.bf16.mxu1 %v1421_v17 }
  0xcb   :  { %v140_v20 = vadd.f32 %v139_v18, %v46_v16  ;;  %v188_v28 = vmax.f32 %v138_v19, 0.0  ;;  %v1418_v16 = vld [vmem:[%s1880_s5 + $0x80] ss:$8 sps:$4 sm:$0xff]   ;;  %v1422_v18 = vld [vmem:[%s1882_s7 + $0x38] sm:$0xff]   ;;  %v1423_v19 = vld [vmem:[%s1882_s7 + $0x70] sm:$0xff]  }
  0xcc   :  { %v141_v23 = vpop.f32.mrf.mxu1 }
  0xcd   :  { %v142_v25 = vadd.f32 %v141_v23, %v50_v15  ;;  %v191_v26 = vmax.f32 %v140_v20, 0.0  ;;  %v1420_v15 = vld [vmem:[%s1880_s5 + $0x84] ss:$8 sps:$4 sm:$0xff]   ;;  %v1424_v20 = vld [vmem:[%s1882_s7 + $0x30] sm:$0xff]  }
  0xce   :  { %v178_v27 = vpop.f32.mrf.mxu1  ;;  %v1427_v23 = vld [vmem:[%s1882_s7 + $0x60] sm:$0xff]  }
  0xcf   :  { %v192_v29 = vmax.f32 %v142_v25, 0.0  ;;  %v195_v36 = vpack.c.bf16 %v191_v26, %v187_v31  ;;  %v179_v41 = vadd.f32 %v178_v27, %v54_v32  ;;  %v1429_v25 = vld [vmem:[%s1882_s7 + $0x58] sm:$0xff]  }
  0xd0   :  { %v180_v33 = vpop.f32.mrf.mxu1  ;;  %v1430_v26 = vld [vmem:[%s1882_s7 + $0x18] sm:$0xff]  }
  0xd1   :  { %v196_v34 = vpack.c.bf16 %v192_v29, %v188_v28  ;;  %v181_v39 = vadd.f32 %v180_v33, %v58_v30  ;;  %v189_v49 = vmax.f32 %v179_v41, 0.0  ;;  %v263_v29 = vld [vmem:[%s1883_s4] sm:$0x3] }
  0xd2   :  { %v182_v37 = vpop.f32.mrf.mxu1  ;;  %v272_v31 = vrot.slane %v263_v29, %v1708_v11 }
  0xd3   :  { %v183_v40 = vadd.f32 %v182_v37, %v54_v32  ;;  %627 = vmatprep.mubr.bf16.mxu0 %v196_v34  ;;  %v190_v47 = vmax.f32 %v181_v39, 0.0  ;;  %v268_v32 = vrot.slane %v263_v29, %v1710_v12 }
  0xd4   :  { %v184_v42 = vpop.f32.mrf.mxu1  ;;  %628 = vmatmul.mubr.bf16.vlgmr.msra.gmra.mxu0 %v195_v36 }
  0xd5   :  { %v185_v43 = vadd.f32 %v184_v42, %v58_v30  ;;  %892 = vmatpush1.bf16.msra.mxu0 %v1373_v35  ;;  %v193_v45 = vmax.f32 %v183_v40, 0.0 }
  0xd6   :  { %893 = vmatprep.subr.bf16.mxu0 %v1378_v38 }
  0xd7   :  { %v194_v48 = vmax.f32 %v185_v43, 0.0  ;;  %v197_v52 = vpack.c.bf16 %v193_v45, %v189_v49 }
  0xd9   :  { %v198_v50 = vpack.c.bf16 %v194_v48, %v190_v47  ;;  %894 = vmatpush1.bf16.msra.mxu0 %v1376_v44 }
  0xda   :  { %895 = vmatprep.subr.bf16.mxu0 %v1381_v46 }
  0xdb   :  { %670 = vmatprep.mubr.bf16.mxu1 %v198_v50 }
  0xdc   :  { %671 = vmatmul.mubr.bf16.vlgmr.msra.gmra.mxu1 %v197_v52  ;;  %v1431_v52 = vld [vmem:[%s1882_s7 + $0x50] sm:$0xff]  }
  0xdd   :  { %896 = vmatpush1.bf16.msra.mxu0 %v1379_v51  ;;  %1248 = vmatpush3.bf16.msra.mxu1 %v1422_v18 }
  0xde   :  { %897 = vmatprep.subr.bf16.mxu0 %v1384_v53  ;;  %1249 = vmatprep.subr.bf16.mxu1 %v1423_v19  ;;  %v1432_v53 = vld [vmem:[%s1882_s7 + $0x10] sm:$0xff]  }
  0xe1   :  { %898 = vmatpush1.bf16.msra.mxu0 %v1382_v54  ;;  %1250 = vmatpush3.bf16.msra.mxu1 %v1424_v20  ;;  %v1433_v54 = vld [vmem:[%s1882_s7 + $0x48] sm:$0xff]  }
  0xe2   :  { %899 = vmatprep.subr.bf16.mxu0 %v1387_v55  ;;  %1251 = vmatprep.subr.bf16.mxu1 %v1425_v21  ;;  %v1434_v55 = vld [vmem:[%s1882_s7 + $0x8] sm:$0xff]  }
  0xe5   :  { %900 = vmatpush1.bf16.msra.mxu0 %v1385_v56  ;;  %1252 = vmatpush3.bf16.msra.mxu1 %v1426_v22  ;;  %v1435_v56 = vld [vmem:[%s1882_s7 + $0x40] sm:$0xff]  }
  0xe6   :  { %901 = vmatprep.subr.bf16.mxu0 %v1390_v57  ;;  %1253 = vmatprep.subr.bf16.mxu1 %v1427_v23  ;;  %v1436_v57 = vld [vmem:[%s1882_s7] sm:$0xff]  }
  0xe9   :  { %902 = vmatpush1.bf16.msra.mxu0 %v1388_v58  ;;  %1254 = vmatpush3.bf16.msra.mxu1 %v1428_v24  ;;  %v719_v58 = vld [vmem:[%s1884_s6] sm:$0x3] }
  0xea   :  { %903 = vmatprep.subr.bf16.mxu0 %v1393_v59  ;;  %1255 = vmatprep.subr.bf16.mxu1 %v1429_v25 }
  0xed   :  { %904 = vmatpush1.bf16.msra.mxu0 %v1391_v60  ;;  %1256 = vmatpush3.bf16.msra.mxu1 %v1430_v26  ;;  %v728_v60 = vrot.slane %v719_v58, %v1708_v11  ;;  %v14_v11 = vstv %s1885_s8 }
  0xee   :  { %905 = vmatprep.subr.bf16.mxu0 %v1396_v61  ;;  %1257 = vmatprep.subr.bf16.mxu1 %v1431_v52  ;;  %v724_v61 = vrot.slane %v719_v58, %v1710_v12  ;;  %15 = vst [vmem:[#allocation2] sm:$0x1] %v14_v11 }
  0xf1   :  { %906 = vmatpush1.bf16.msra.mxu0 %v1394_v62  ;;  %1258 = vmatpush3.bf16.msra.mxu1 %v1432_v53 }
  0xf2   :  { %907 = vmatprep.subr.bf16.mxu0 %v1399_v63  ;;  %1259 = vmatprep.subr.bf16.mxu1 %v1433_v54 }
  0xf5   :  { %908 = vmatpush2.bf16.msra.mxu0 %v1397_v0  ;;  %1260 = vmatpush3.bf16.msra.mxu1 %v1434_v55 }
  0xf6   :  { %909 = vmatprep.subr.bf16.mxu0 %v1402_v1  ;;  %1261 = vmatprep.subr.bf16.mxu1 %v1435_v56 }
  0xf9   :  { %910 = vmatpush2.bf16.msra.mxu0 %v1400_v2  ;;  %1262 = vmatpush3.bf16.msra.mxu1 %v1436_v57 }
  0xfa   :  { %911 = vmatprep.subr.bf16.mxu0 %v1405_v3 }
  0xfd   :  { %912 = vmatpush2.bf16.msra.mxu0 %v1403_v4 }
  0xfe   :  { %913 = vmatprep.subr.bf16.mxu0 %v1408_v5 }
 0x101   :  { %914 = vmatpush2.bf16.msra.mxu0 %v1406_v6 }
 0x102   :  { %915 = vmatprep.subr.bf16.mxu0 %v1411_v7 }
 0x105   :  { %916 = vmatpush2.bf16.msra.mxu0 %v1409_v8 }
 0x106   :  { %917 = vmatprep.subr.bf16.mxu0 %v1414_v9 }
 0x109   :  { %918 = vmatpush2.bf16.msra.mxu0 %v1412_v10 }
 0x10a   :  { %919 = vmatprep.subr.bf16.mxu0 %v1417_v13  ;;  %v1230_v13 = vld [vmem:[#allocation2] ss:$0 sm:$0xff] }
 0x10d   :  { %920 = vmatpush2.bf16.msra.mxu0 %v1415_v14 }
 0x10e   :  { %921 = vmatprep.subr.bf16.mxu0 %v1420_v15 }
 0x111   :  { %922 = vmatpush2.bf16.msra.mxu0 %v1418_v16 }
 0x194   :  { %v629_v27 = vpop.f32.mrf.mxu0 }
 0x195   :  { %v630_v38 = vadd.f32 %v629_v27, %v268_v32 }
 0x196   :  { %v631_v28 = vpop.f32.mrf.mxu0 }
 0x197   :  { %v632_v36 = vadd.f32 %v631_v28, %v272_v31 }
 0x198   :  { %v633_v30 = vpop.f32.mrf.mxu0 }
 0x199   :  { %v634_v37 = vadd.f32 %v633_v30, %v268_v32 }
 0x19a   :  { %v635_v34 = vpop.f32.mrf.mxu0 }
 0x19b   :  { %v636_v40 = vadd.f32 %v635_v34, %v272_v31 }
 0x19c   :  { %v672_v33 = vpop.f32.mrf.mxu1 }
 0x19d   :  { %v673_v43 = vadd.f32 %v672_v33, %v630_v38 }
 0x19e   :  { %v674_v35 = vpop.f32.mrf.mxu1 }
 0x19f   :  { %v675_v41 = vadd.f32 %v674_v35, %v632_v36  ;;  %v681_v49 = vmax.f32 %v673_v43, 0.0 }
 0x1a0   :  { %v676_v39 = vpop.f32.mrf.mxu1 }
 0x1a1   :  { %v677_v42 = vadd.f32 %v676_v39, %v634_v37  ;;  %v682_v47 = vmax.f32 %v675_v41, 0.0 }
 0x1a2   :  { %v678_v44 = vpop.f32.mrf.mxu1 }
 0x1a3   :  { %v679_v45 = vadd.f32 %v678_v44, %v636_v40  ;;  %v683_v46 = vmax.f32 %v677_v42, 0.0 }
 0x1a5   :  { %v684_v48 = vmax.f32 %v679_v45, 0.0  ;;  %v685_v51 = vpack.c.bf16 %v683_v46, %v681_v49 }
 0x1a7   :  { %v686_v50 = vpack.c.bf16 %v684_v48, %v682_v47 }
 0x1a9   :  { %923 = vmatprep.mubr.bf16.mxu0 %v686_v50 }
 0x1aa   :  { %924 = vmatmul.mubr.bf16.vlgmr.msra.gmra.mxu0 %v685_v51 }
 0x26a   :  { %v925_v59 = vpop.f32.mrf.mxu0 }
 0x26b   :  { %v926_v2 = vadd.f32 %v925_v59, %v724_v61 }
 0x26c   :  { %v927_v62 = vpop.f32.mrf.mxu0 }
 0x26d   :  { %v928_v0 = vadd.f32 %v927_v62, %v728_v60  ;;  %v934_v8 = vmax.f32 %v926_v2, 0.0 }
 0x26e   :  { %v929_v63 = vpop.f32.mrf.mxu0 }
 0x26f   :  { %v930_v1 = vadd.f32 %v929_v63, %v724_v61  ;;  %v935_v6 = vmax.f32 %v928_v0, 0.0 }
 0x270   :  { %v931_v3 = vpop.f32.mrf.mxu0 }
 0x271   :  { %v932_v4 = vadd.f32 %v931_v3, %v728_v60  ;;  %v936_v5 = vmax.f32 %v930_v1, 0.0 }
 0x273   :  { %v937_v7 = vmax.f32 %v932_v4, 0.0  ;;  %v938_v10 = vpack.c.bf16 %v936_v5, %v934_v8 }
 0x275   :  { %v939_v9 = vpack.c.bf16 %v937_v7, %v935_v6 }
 0x277   :  { %1107 = vmatprep.mubr.bf16.mxu1 %v939_v9 }
 0x278   :  { %1108 = vmatmul.mubr.bf16.vlgmr.msra.gmra.mxu1 %v938_v10 }
 0x338   :  { %v1263_v12 = vpop.f32.mrf.mxu1 }
 0x33a   :  { %v1264_v14 = vpop.f32.mrf.mxu1 }
 0x33b   :  { %v1265_v15 = vadd.f32 %v1264_v14, %v1263_v12 }
 0x33c   :  { %v1266_v16 = vpop.f32.mrf.mxu1 }
 0x33d   :  { %v1110_v17 = vadd.f32 %v1265_v15, %v1230_v13 }
 0x33e   :  { %v1267_v18 = vpop.f32.mrf.mxu1 }
 0x33f   :  { %1437 = vtanh.f32 %v1110_v17  ;;  %v1268_v19 = vadd.f32 %v1267_v18, %v1266_v16 }
 0x341   :  { %v1113_v20 = vadd.f32 %v1268_v19, %v1230_v13 }
 0x343   :  { %1439 = vtanh.f32 %v1113_v20 }
 0x34c   :  { %v1438_v21 = vpop.eup %1437 }
 0x34d   :  { %1119 = vst.msk [vmem:[%s1886_s9] sm:$0xff] %vm1118_vm2, %v1438_v21 }
 0x350   :  { %v1440_v22 = vpop.eup %1439 }
 0x351   :  { %1120 = vst.msk [vmem:[%s1886_s9 + $0x8] sm:$0xff] %vm1118_vm2, %v1440_v22 }

</bundles_post_ra>
